<compile_context>
chip_gen: v7x
topology: tpu7x:2x2x1
jax: 0.10.0
libtpu: 0.0.40
codegen_flags: <defaults>
</compile_context>

<pallas_src>
import jax
import jax.numpy as jnp
import numpy as np
from jax.experimental import pallas as pl
from jax.experimental.pallas import tpu as pltpu

KERNEL = 5          # first conv kernel size
K2 = 3              # second conv kernel size
PAD = 3             # ReplicationPad1d for odd kernel=5: (k-1)//2 + 1
NEG_SLOPE = 0.01    # LeakyReLU slope

VMEM_SPEC = pl.BlockSpec(memory_space=pltpu.MemorySpace.VMEM)


# ----------------------------------------------------------------------------
# Fused SCINet forward kernel (num_levels=2, num_stacks=1)
# ----------------------------------------------------------------------------
def make_scinet_call(B, T, C, H, PRED):
    BC = B * C
    Th, Tq = T // 2, T // 4
    NW = H * KERNEL + H + H * K2 + 1   # packed weight columns per branch (=19)

    def branch_group(x, w):
        """ReplicationPad -> Conv1d(k=5, grouped) -> LeakyReLU -> Conv1d(k=3, grouped)
        -> Tanh, evaluated simultaneously for all sublane-stacked branch slots.
        Pure-value: no scratch, no VMEM round trips.

        x : (S, Tp) stacked branch slots (rows = slot*B*C + b*C + c)
        w : (S, NW) packed per-row weights
        """
        S, Tp = x.shape
        L1 = Tp + 2 * PAD - KERNEL + 1
        # Replication pad along time (lanes) as a value concat.
        left = jnp.broadcast_to(x[:, 0:1], (S, PAD))
        right = jnp.broadcast_to(x[:, Tp - 1:Tp], (S, PAD))
        xp = jnp.concatenate([left, x, right], axis=1)       # (S, Tp + 2*PAD)
        acc2 = jnp.zeros((S, Tp), jnp.float32)
        for j in range(H):                                    # per-group hidden channel
            acc1 = jnp.zeros((S, L1), jnp.float32)
            for k in range(KERNEL):                           # grouped Conv1d, k=5
                col = j * KERNEL + k
                acc1 = acc1 + xp[:, k:k + L1] * w[:, col:col + 1]
            y1 = acc1 + w[:, H * KERNEL + j:H * KERNEL + j + 1]
            y1 = jnp.where(y1 > 0, y1, NEG_SLOPE * y1)        # LeakyReLU
            for k in range(K2):                               # grouped Conv1d, k=3
                col = H * KERNEL + H + j * K2 + k
                acc2 = acc2 + y1[:, k:k + Tp] * w[:, col:col + 1]
        return jnp.tanh(acc2 + w[:, NW - 1:NW])               # Tanh

    def kernel(x_ref, wtp_ref, wtu_ref, wqp_ref, wqu_ref, sel_ref, wproj_ref, o_ref):
        # Input arrives host-deinterleaved: lanes [0, Th) = x_even, [Th, T) = x_odd.
        x = x_ref[...]                                        # (BC, T)
        xe = x[:, 0:Th]
        xo = x[:, Th:T]

        # ---- top level interactor
        # phase 1: [phi(x_even) | psi(x_odd)] evaluated in one pass
        r = branch_group(jnp.concatenate([xe, xo], axis=0), wtp_ref[...])   # (2BC, Th)
        d = xo * jnp.exp(r[0:BC, :])                          # x_odd  * exp(phi(x_even))
        c = xe * jnp.exp(r[BC:2 * BC, :])                     # x_even * exp(psi(x_odd))
        # phase 2: [U(d) | P(c)]
        r = branch_group(jnp.concatenate([d, c], axis=0), wtu_ref[...])
        even_u = c + r[0:BC, :]
        odd_u = d - r[BC:2 * BC, :]

        # ---- quarter-level even/odd split via 0/1 selection matmul (idle MXU)
        eu_ou = jnp.concatenate([even_u, odd_u], axis=0)      # (2BC, Th)
        split = jnp.dot(eu_ou, sel_ref[...],
                        preferred_element_type=jnp.float32)   # (2BC, 2Tq)
        ee = split[0:BC, 0:Tq]
        eo = split[0:BC, Tq:2 * Tq]
        oe = split[BC:2 * BC, 0:Tq]
        oo = split[BC:2 * BC, Tq:2 * Tq]

        # ---- quarter level (both sub-trees fused)
        # phase 1: [phi_e(ee) | psi_e(eo) | phi_o(oe) | psi_o(oo)]
        r = branch_group(jnp.concatenate([ee, eo, oe, oo], axis=0), wqp_ref[...])
        d_e = eo * jnp.exp(r[0:BC, :])
        c_e = ee * jnp.exp(r[BC:2 * BC, :])
        d_o = oo * jnp.exp(r[2 * BC:3 * BC, :])
        c_o = oe * jnp.exp(r[3 * BC:4 * BC, :])
        # phase 2: [U_e(d_e) | P_e(c_e) | U_o(d_o) | P_o(c_o)]
        r = branch_group(jnp.concatenate([d_e, c_e, d_o, c_o], axis=0), wqu_ref[...])
        ee_u = c_e + r[0:BC, :]
        eo_u = d_e - r[BC:2 * BC, :]
        oe_u = c_o + r[2 * BC:3 * BC, :]
        oo_u = d_o - r[3 * BC:4 * BC, :]

        # ---- zip_up_the_pants + residual + projection1 in ONE dot:
        # the time permutation of the zip (and of the deinterleaved residual) is
        # absorbed into a host-side row permutation of the projection weight.
        slab = jnp.concatenate([ee_u, eo_u, oe_u, oo_u, x], axis=1)   # (BC, 2T)
        o_ref[...] = jnp.dot(slab, wproj_ref[...],
                             preferred_element_type=jnp.float32)      # (BC, PRED)

    return pl.pallas_call(
        kernel,
        out_shape=jax.ShapeDtypeStruct((BC, PRED), jnp.float32),
        in_specs=[VMEM_SPEC] * 7,
        out_specs=VMEM_SPEC,
    )


# ----------------------------------------------------------------------------
# Parameter construction + dense packing for the kernel
# ----------------------------------------------------------------------------
def make_branch_raw(key, C, H):
    """Raw weights of one branch: Conv1d(C, C*H, 5, groups=C) -> Conv1d(C*H, C, 3, groups=C)."""
    k1, k2, k3, k4 = jax.random.split(key, 4)
    W1 = jax.random.normal(k1, (C * H, 1, KERNEL), jnp.float32) * 0.3
    b1 = jax.random.normal(k2, (C * H,), jnp.float32) * 0.1
    W2 = jax.random.normal(k3, (C, H, K2), jnp.float32) * 0.3
    b2 = jax.random.normal(k4, (C,), jnp.float32) * 0.1
    return (W1, b1, W2, b2)


def make_interactor_raw(key, C, H):
    # branch order: phi, psi, U, P
    return [make_branch_raw(k, C, H) for k in jax.random.split(key, 4)]


def per_channel_cols(branch, C, H):
    """(C, NW) matrix: row = channel, col = packed weight index."""
    W1, b1, W2, b2 = branch
    w1 = W1.reshape(C, H * KERNEL)          # col = j*KERNEL + k
    b1r = b1.reshape(C, H)                  # col = j
    w2 = W2.reshape(C, H * K2)              # col = j*K2 + k
    b2r = b2.reshape(C, 1)
    return jnp.concatenate([w1, b1r, w2, b2r], axis=1)


def group_weight(branches, B, C, H):
    """Dense per-row weights for a stack of branch slots: rows = slot*B*C + b*C + c."""
    blocks = [jnp.tile(per_channel_cols(br, C, H), (B, 1)) for br in branches]
    return jnp.concatenate(blocks, axis=0)


def pack_model_weights(raw_top, raw_even, raw_odd, Wp, B, C, H, T):
    Th, Tq = T // 2, T // 4
    # selection matrix: lanes [0,Tq) pick even positions, [Tq,2Tq) pick odd positions
    sel = np.zeros((Th, 2 * Tq), np.float32)
    for j in range(Tq):
        sel[2 * j, j] = 1.0
        sel[2 * j + 1, Tq + j] = 1.0
    # projection weight (T, PRED), rows permuted so that:
    #   first T rows match the kernel's [ee_u | eo_u | oe_u | oo_u] lane slab
    #   (zip order: t=4j -> ee_u[j], 4j+1 -> oe_u[j], 4j+2 -> eo_u[j], 4j+3 -> oo_u[j])
    #   last  T rows match the deinterleaved residual [x_even | x_odd]
    wpt = jnp.transpose(Wp)                                   # (T, PRED)
    perm_blocks = np.concatenate([np.arange(0, T, 4), np.arange(2, T, 4),
                                  np.arange(1, T, 4), np.arange(3, T, 4)])
    perm_x = np.concatenate([np.arange(0, T, 2), np.arange(1, T, 2)])
    wproj = jnp.concatenate([wpt[perm_blocks], wpt[perm_x]], axis=0)   # (2T, PRED)
    return {
        'w_top_ps': group_weight([raw_top[0], raw_top[1]], B, C, H),   # [phi | psi]
        'w_top_up': group_weight([raw_top[2], raw_top[3]], B, C, H),   # [U | P]
        'w_q_ps': group_weight([raw_even[0], raw_even[1],
                                raw_odd[0], raw_odd[1]], B, C, H),
        'w_q_up': group_weight([raw_even[2], raw_even[3],
                                raw_odd[2], raw_odd[3]], B, C, H),
        'sel': jnp.asarray(sel),
        'wproj': wproj,
    }


def model_forward(x_enc, x_mark_enc, x_dec, x_mark_dec, packed, call, B, C, PRED):
    """Model.forward — x_mark_enc / x_dec / x_mark_dec are unused by SCINet."""
    del x_mark_enc, x_dec, x_mark_dec
    # Host-side relayout: (B, T, C) -> (B*C, T), and fold the top-level even/odd
    # split into the same transpose (input arrives deinterleaved: [x_even | x_odd]).
    xk = jnp.transpose(x_enc, (0, 2, 1)).reshape(B * C, -1)
    xk = jnp.concatenate([xk[:, 0::2], xk[:, 1::2]], axis=1)
    y = call(xk, packed['w_top_ps'], packed['w_top_up'],
             packed['w_q_ps'], packed['w_q_up'],
             packed['sel'], packed['wproj'])                           # (B*C, PRED)
    y = jnp.transpose(y.reshape(B, C, PRED), (0, 2, 1))                # (B, PRED, C)
    return y[:, -PRED:, :]                                             # identity slice


# ----------------------------------------------------------------------------
# Pure-JAX reference (same math, no Pallas) for the correctness check
# ----------------------------------------------------------------------------
def zip_up(even, odd):
    Bb, L, Cc = even.shape
    return jnp.stack([even, odd], axis=2).reshape(Bb, 2 * L, Cc)


def ref_branch(x, W1, b1, W2, b2, C, H):
    Tp = x.shape[-1]
    xp = jnp.concatenate([jnp.repeat(x[:, :, :1], PAD, axis=2), x,
                          jnp.repeat(x[:, :, -1:], PAD, axis=2)], axis=2)
    L1 = Tp + 2
    y1 = []
    for o in range(C * H):
        ch = o // H
        s = b1[o]
        for k in range(KERNEL):
            s = s + W1[o, 0, k] * xp[:, ch, k:k + L1]
        y1.append(s)
    y1 = jnp.stack(y1, axis=1)
    y1 = jnp.where(y1 > 0, y1, NEG_SLOPE * y1)
    y2 = []
    for ch in range(C):
        s = b2[ch]
        for j in range(H):
            for k in range(K2):
                s = s + W2[ch, j, k] * y1[:, ch * H + j, k:k + Tp]
        y2.append(s)
    return jnp.tanh(jnp.stack(y2, axis=1))


def ref_interactor(x, raw, C, H):
    xe = jnp.transpose(x[:, 0::2, :], (0, 2, 1))
    xo = jnp.transpose(x[:, 1::2, :], (0, 2, 1))
    phi, psi, U, P = raw
    d = xo * jnp.exp(ref_branch(xe, *phi, C, H))
    c = xe * jnp.exp(ref_branch(xo, *psi, C, H))
    e_u = c + ref_branch(d, *U, C, H)
    o_u = d - ref_branch(c, *P, C, H)
    return jnp.transpose(e_u, (0, 2, 1)), jnp.transpose(o_u, (0, 2, 1))


def ref_forward(x, raw_top, raw_even, raw_odd, Wp, C, H, pred_len):
    e1, o1 = ref_interactor(x, raw_top, C, H)
    ee, eo = ref_interactor(e1, raw_even, C, H)
    oe, oo = ref_interactor(o1, raw_odd, C, H)
    out = zip_up(zip_up(ee, eo), zip_up(oe, oo)) + x
    y = jnp.einsum('pt,btc->bpc', Wp, out, precision=jax.lax.Precision.HIGHEST)
    return y[:, -pred_len:, :]


# ----------------------------------------------------------------------------
if __name__ == "__main__":
    # configs: enc_in=4, seq_len=16, pred_len=4, hidden_size=2, d_layers=1
    B, T, C, PRED, H = 2, 16, 4, 4, 2
    assert T % (2 ** 2) == 0   # seq_len % 2**num_levels == 0

    key = jax.random.PRNGKey(0)
    kx, km, kd, kmd, kp, kt, ke, ko = jax.random.split(key, 8)
    x_enc = jax.random.normal(kx, (B, T, C), jnp.float32)
    x_mark_enc = jax.random.normal(km, (B, T, C), jnp.float32)       # unused
    x_dec = jax.random.normal(kd, (B, PRED, C), jnp.float32)         # unused
    x_mark_dec = jax.random.normal(kmd, (B, PRED, C), jnp.float32)   # unused

    raw_top = make_interactor_raw(kt, C, H)
    raw_even = make_interactor_raw(ke, C, H)
    raw_odd = make_interactor_raw(ko, C, H)
    Wp = jax.random.normal(kp, (PRED, T), jnp.float32) * 0.1

    packed = pack_model_weights(raw_top, raw_even, raw_odd, Wp, B, C, H, T)
    call = make_scinet_call(B, T, C, H, PRED)

    @jax.jit
    def fwd(a, b, c_, d):
        return model_forward(a, b, c_, d, packed, call, B, C, PRED)

    out = jax.block_until_ready(fwd(x_enc, x_mark_enc, x_dec, x_mark_dec))

    ref = ref_forward(x_enc, raw_top, raw_even, raw_odd, Wp, C, H, PRED)
    assert out.shape == (B, PRED, C)
    assert np.all(np.isfinite(np.asarray(out)))
    assert np.allclose(np.asarray(out), np.asarray(ref), atol=2e-3, rtol=2e-3), \
        "Pallas output does not match pure-JAX reference"

    print("KERNEL_OK")
</pallas_src>

<mosaic_0001>
module attributes {stable_mosaic.version = 11 : i64} {
  func.func @kernel(%arg0: memref<8x16xf32, #tpu.memory_space<vmem>>, %arg1: memref<16x19xf32, #tpu.memory_space<vmem>>, %arg2: memref<16x19xf32, #tpu.memory_space<vmem>>, %arg3: memref<32x19xf32, #tpu.memory_space<vmem>>, %arg4: memref<32x19xf32, #tpu.memory_space<vmem>>, %arg5: memref<8x8xf32, #tpu.memory_space<vmem>>, %arg6: memref<32x4xf32, #tpu.memory_space<vmem>>, %arg7: memref<8x4xf32, #tpu.memory_space<vmem>>) attributes {dimension_semantics = [], scalar_prefetch = 0 : i64, scratch_operands = 0 : i64, tpu.core_type = #tpu.core_type<tc>} {
    %c0 = arith.constant 0 : index
    %c0_0 = arith.constant 0 : index
    %0 = vector.load %arg0[%c0, %c0_0] : memref<8x16xf32, #tpu.memory_space<vmem>>, vector<8x16xf32>
    %1 = vector.extract_strided_slice %0 {offsets = [0, 0], sizes = [8, 8], strides = [1, 1]} : vector<8x16xf32> to vector<8x8xf32>
    %2 = vector.extract_strided_slice %0 {offsets = [0, 8], sizes = [8, 8], strides = [1, 1]} : vector<8x16xf32> to vector<8x8xf32>
    %3 = tpu.concatenate %1, %2 in 0 : vector<8x8xf32>, vector<8x8xf32> -> vector<16x8xf32>
    %c0_1 = arith.constant 0 : index
    %c0_2 = arith.constant 0 : index
    %4 = vector.load %arg1[%c0_1, %c0_2] : memref<16x19xf32, #tpu.memory_space<vmem>>, vector<16x19xf32>
    %5 = vector.extract_strided_slice %3 {offsets = [0, 0], sizes = [16, 1], strides = [1, 1]} : vector<16x8xf32> to vector<16x1xf32>
    %6 = vector.shape_cast %5 : vector<16x1xf32> to vector<16x1xf32>
    %7 = vector.broadcast %6 : vector<16x1xf32> to vector<16x3xf32>
    %8 = vector.extract_strided_slice %3 {offsets = [0, 7], sizes = [16, 1], strides = [1, 1]} : vector<16x8xf32> to vector<16x1xf32>
    %9 = vector.shape_cast %8 : vector<16x1xf32> to vector<16x1xf32>
    %10 = vector.broadcast %9 : vector<16x1xf32> to vector<16x3xf32>
    %11 = tpu.concatenate %7, %3, %10 in 1 : vector<16x3xf32>, vector<16x8xf32>, vector<16x3xf32> -> vector<16x14xf32>
    %cst = arith.constant 0.000000e+00 : f32
    %12 = vector.broadcast %cst : f32 to vector<16x8xf32>
    %cst_3 = arith.constant 0.000000e+00 : f32
    %13 = vector.broadcast %cst_3 : f32 to vector<16x10xf32>
    %14 = vector.extract_strided_slice %11 {offsets = [0, 0], sizes = [16, 10], strides = [1, 1]} : vector<16x14xf32> to vector<16x10xf32>
    %15 = vector.extract_strided_slice %4 {offsets = [0, 0], sizes = [16, 1], strides = [1, 1]} : vector<16x19xf32> to vector<16x1xf32>
    %16 = vector.broadcast %15 : vector<16x1xf32> to vector<16x10xf32>
    %17 = arith.mulf %14, %16 : vector<16x10xf32>
    %18 = arith.addf %13, %17 : vector<16x10xf32>
    %19 = vector.extract_strided_slice %11 {offsets = [0, 1], sizes = [16, 10], strides = [1, 1]} : vector<16x14xf32> to vector<16x10xf32>
    %20 = vector.extract_strided_slice %4 {offsets = [0, 1], sizes = [16, 1], strides = [1, 1]} : vector<16x19xf32> to vector<16x1xf32>
    %21 = vector.broadcast %20 : vector<16x1xf32> to vector<16x10xf32>
    %22 = arith.mulf %19, %21 : vector<16x10xf32>
    %23 = arith.addf %18, %22 : vector<16x10xf32>
    %24 = vector.extract_strided_slice %11 {offsets = [0, 2], sizes = [16, 10], strides = [1, 1]} : vector<16x14xf32> to vector<16x10xf32>
    %25 = vector.extract_strided_slice %4 {offsets = [0, 2], sizes = [16, 1], strides = [1, 1]} : vector<16x19xf32> to vector<16x1xf32>
    %26 = vector.broadcast %25 : vector<16x1xf32> to vector<16x10xf32>
    %27 = arith.mulf %24, %26 : vector<16x10xf32>
    %28 = arith.addf %23, %27 : vector<16x10xf32>
    %29 = vector.extract_strided_slice %11 {offsets = [0, 3], sizes = [16, 10], strides = [1, 1]} : vector<16x14xf32> to vector<16x10xf32>
    %30 = vector.extract_strided_slice %4 {offsets = [0, 3], sizes = [16, 1], strides = [1, 1]} : vector<16x19xf32> to vector<16x1xf32>
    %31 = vector.broadcast %30 : vector<16x1xf32> to vector<16x10xf32>
    %32 = arith.mulf %29, %31 : vector<16x10xf32>
    %33 = arith.addf %28, %32 : vector<16x10xf32>
    %34 = vector.extract_strided_slice %11 {offsets = [0, 4], sizes = [16, 10], strides = [1, 1]} : vector<16x14xf32> to vector<16x10xf32>
    %35 = vector.extract_strided_slice %4 {offsets = [0, 4], sizes = [16, 1], strides = [1, 1]} : vector<16x19xf32> to vector<16x1xf32>
    %36 = vector.broadcast %35 : vector<16x1xf32> to vector<16x10xf32>
    %37 = arith.mulf %34, %36 : vector<16x10xf32>
    %38 = arith.addf %33, %37 : vector<16x10xf32>
    %39 = vector.extract_strided_slice %4 {offsets = [0, 10], sizes = [16, 1], strides = [1, 1]} : vector<16x19xf32> to vector<16x1xf32>
    %40 = vector.broadcast %39 : vector<16x1xf32> to vector<16x10xf32>
    %41 = arith.addf %38, %40 : vector<16x10xf32>
    %cst_4 = arith.constant 0.000000e+00 : f32
    %42 = vector.broadcast %cst_4 : f32 to vector<16x10xf32>
    %43 = arith.cmpf ogt, %41, %42 : vector<16x10xf32>
    %cst_5 = arith.constant 0.00999999977 : f32
    %44 = vector.broadcast %cst_5 : f32 to vector<16x10xf32>
    %45 = arith.mulf %44, %41 : vector<16x10xf32>
    %46 = arith.select %43, %41, %45 : vector<16x10xi1>, vector<16x10xf32>
    %47 = vector.extract_strided_slice %46 {offsets = [0, 0], sizes = [16, 8], strides = [1, 1]} : vector<16x10xf32> to vector<16x8xf32>
    %48 = vector.extract_strided_slice %4 {offsets = [0, 12], sizes = [16, 1], strides = [1, 1]} : vector<16x19xf32> to vector<16x1xf32>
    %49 = vector.broadcast %48 : vector<16x1xf32> to vector<16x8xf32>
    %50 = arith.mulf %47, %49 : vector<16x8xf32>
    %51 = arith.addf %12, %50 : vector<16x8xf32>
    %52 = vector.extract_strided_slice %46 {offsets = [0, 1], sizes = [16, 8], strides = [1, 1]} : vector<16x10xf32> to vector<16x8xf32>
    %53 = vector.extract_strided_slice %4 {offsets = [0, 13], sizes = [16, 1], strides = [1, 1]} : vector<16x19xf32> to vector<16x1xf32>
    %54 = vector.broadcast %53 : vector<16x1xf32> to vector<16x8xf32>
    %55 = arith.mulf %52, %54 : vector<16x8xf32>
    %56 = arith.addf %51, %55 : vector<16x8xf32>
    %57 = vector.extract_strided_slice %46 {offsets = [0, 2], sizes = [16, 8], strides = [1, 1]} : vector<16x10xf32> to vector<16x8xf32>
    %58 = vector.extract_strided_slice %4 {offsets = [0, 14], sizes = [16, 1], strides = [1, 1]} : vector<16x19xf32> to vector<16x1xf32>
    %59 = vector.broadcast %58 : vector<16x1xf32> to vector<16x8xf32>
    %60 = arith.mulf %57, %59 : vector<16x8xf32>
    %61 = arith.addf %56, %60 : vector<16x8xf32>
    %cst_6 = arith.constant 0.000000e+00 : f32
    %62 = vector.broadcast %cst_6 : f32 to vector<16x10xf32>
    %63 = vector.extract_strided_slice %11 {offsets = [0, 0], sizes = [16, 10], strides = [1, 1]} : vector<16x14xf32> to vector<16x10xf32>
    %64 = vector.extract_strided_slice %4 {offsets = [0, 5], sizes = [16, 1], strides = [1, 1]} : vector<16x19xf32> to vector<16x1xf32>
    %65 = vector.broadcast %64 : vector<16x1xf32> to vector<16x10xf32>
    %66 = arith.mulf %63, %65 : vector<16x10xf32>
    %67 = arith.addf %62, %66 : vector<16x10xf32>
    %68 = vector.extract_strided_slice %11 {offsets = [0, 1], sizes = [16, 10], strides = [1, 1]} : vector<16x14xf32> to vector<16x10xf32>
    %69 = vector.extract_strided_slice %4 {offsets = [0, 6], sizes = [16, 1], strides = [1, 1]} : vector<16x19xf32> to vector<16x1xf32>
    %70 = vector.broadcast %69 : vector<16x1xf32> to vector<16x10xf32>
    %71 = arith.mulf %68, %70 : vector<16x10xf32>
    %72 = arith.addf %67, %71 : vector<16x10xf32>
    %73 = vector.extract_strided_slice %11 {offsets = [0, 2], sizes = [16, 10], strides = [1, 1]} : vector<16x14xf32> to vector<16x10xf32>
    %74 = vector.extract_strided_slice %4 {offsets = [0, 7], sizes = [16, 1], strides = [1, 1]} : vector<16x19xf32> to vector<16x1xf32>
    %75 = vector.broadcast %74 : vector<16x1xf32> to vector<16x10xf32>
    %76 = arith.mulf %73, %75 : vector<16x10xf32>
    %77 = arith.addf %72, %76 : vector<16x10xf32>
    %78 = vector.extract_strided_slice %11 {offsets = [0, 3], sizes = [16, 10], strides = [1, 1]} : vector<16x14xf32> to vector<16x10xf32>
    %79 = vector.extract_strided_slice %4 {offsets = [0, 8], sizes = [16, 1], strides = [1, 1]} : vector<16x19xf32> to vector<16x1xf32>
    %80 = vector.broadcast %79 : vector<16x1xf32> to vector<16x10xf32>
    %81 = arith.mulf %78, %80 : vector<16x10xf32>
    %82 = arith.addf %77, %81 : vector<16x10xf32>
    %83 = vector.extract_strided_slice %11 {offsets = [0, 4], sizes = [16, 10], strides = [1, 1]} : vector<16x14xf32> to vector<16x10xf32>
    %84 = vector.extract_strided_slice %4 {offsets = [0, 9], sizes = [16, 1], strides = [1, 1]} : vector<16x19xf32> to vector<16x1xf32>
    %85 = vector.broadcast %84 : vector<16x1xf32> to vector<16x10xf32>
    %86 = arith.mulf %83, %85 : vector<16x10xf32>
    %87 = arith.addf %82, %86 : vector<16x10xf32>
    %88 = vector.extract_strided_slice %4 {offsets = [0, 11], sizes = [16, 1], strides = [1, 1]} : vector<16x19xf32> to vector<16x1xf32>
    %89 = vector.broadcast %88 : vector<16x1xf32> to vector<16x10xf32>
    %90 = arith.addf %87, %89 : vector<16x10xf32>
    %cst_7 = arith.constant 0.000000e+00 : f32
    %91 = vector.broadcast %cst_7 : f32 to vector<16x10xf32>
    %92 = arith.cmpf ogt, %90, %91 : vector<16x10xf32>
    %cst_8 = arith.constant 0.00999999977 : f32
    %93 = vector.broadcast %cst_8 : f32 to vector<16x10xf32>
    %94 = arith.mulf %93, %90 : vector<16x10xf32>
    %95 = arith.select %92, %90, %94 : vector<16x10xi1>, vector<16x10xf32>
    %96 = vector.extract_strided_slice %95 {offsets = [0, 0], sizes = [16, 8], strides = [1, 1]} : vector<16x10xf32> to vector<16x8xf32>
    %97 = vector.extract_strided_slice %4 {offsets = [0, 15], sizes = [16, 1], strides = [1, 1]} : vector<16x19xf32> to vector<16x1xf32>
    %98 = vector.broadcast %97 : vector<16x1xf32> to vector<16x8xf32>
    %99 = arith.mulf %96, %98 : vector<16x8xf32>
    %100 = arith.addf %61, %99 : vector<16x8xf32>
    %101 = vector.extract_strided_slice %95 {offsets = [0, 1], sizes = [16, 8], strides = [1, 1]} : vector<16x10xf32> to vector<16x8xf32>
    %102 = vector.extract_strided_slice %4 {offsets = [0, 16], sizes = [16, 1], strides = [1, 1]} : vector<16x19xf32> to vector<16x1xf32>
    %103 = vector.broadcast %102 : vector<16x1xf32> to vector<16x8xf32>
    %104 = arith.mulf %101, %103 : vector<16x8xf32>
    %105 = arith.addf %100, %104 : vector<16x8xf32>
    %106 = vector.extract_strided_slice %95 {offsets = [0, 2], sizes = [16, 8], strides = [1, 1]} : vector<16x10xf32> to vector<16x8xf32>
    %107 = vector.extract_strided_slice %4 {offsets = [0, 17], sizes = [16, 1], strides = [1, 1]} : vector<16x19xf32> to vector<16x1xf32>
    %108 = vector.broadcast %107 : vector<16x1xf32> to vector<16x8xf32>
    %109 = arith.mulf %106, %108 : vector<16x8xf32>
    %110 = arith.addf %105, %109 : vector<16x8xf32>
    %111 = vector.extract_strided_slice %4 {offsets = [0, 18], sizes = [16, 1], strides = [1, 1]} : vector<16x19xf32> to vector<16x1xf32>
    %112 = vector.broadcast %111 : vector<16x1xf32> to vector<16x8xf32>
    %113 = arith.addf %110, %112 : vector<16x8xf32>
    %114 = math.tanh %113 : vector<16x8xf32>
    %115 = vector.extract_strided_slice %114 {offsets = [0, 0], sizes = [8, 8], strides = [1, 1]} : vector<16x8xf32> to vector<8x8xf32>
    %116 = math.exp %115 : vector<8x8xf32>
    %117 = arith.mulf %2, %116 : vector<8x8xf32>
    %118 = vector.extract_strided_slice %114 {offsets = [8, 0], sizes = [8, 8], strides = [1, 1]} : vector<16x8xf32> to vector<8x8xf32>
    %119 = math.exp %118 : vector<8x8xf32>
    %120 = arith.mulf %1, %119 : vector<8x8xf32>
    %121 = tpu.concatenate %117, %120 in 0 : vector<8x8xf32>, vector<8x8xf32> -> vector<16x8xf32>
    %c0_9 = arith.constant 0 : index
    %c0_10 = arith.constant 0 : index
    %122 = vector.load %arg2[%c0_9, %c0_10] : memref<16x19xf32, #tpu.memory_space<vmem>>, vector<16x19xf32>
    %123 = vector.extract_strided_slice %121 {offsets = [0, 0], sizes = [16, 1], strides = [1, 1]} : vector<16x8xf32> to vector<16x1xf32>
    %124 = vector.shape_cast %123 : vector<16x1xf32> to vector<16x1xf32>
    %125 = vector.broadcast %124 : vector<16x1xf32> to vector<16x3xf32>
    %126 = vector.extract_strided_slice %121 {offsets = [0, 7], sizes = [16, 1], strides = [1, 1]} : vector<16x8xf32> to vector<16x1xf32>
    %127 = vector.shape_cast %126 : vector<16x1xf32> to vector<16x1xf32>
    %128 = vector.broadcast %127 : vector<16x1xf32> to vector<16x3xf32>
    %129 = tpu.concatenate %125, %121, %128 in 1 : vector<16x3xf32>, vector<16x8xf32>, vector<16x3xf32> -> vector<16x14xf32>
    %cst_11 = arith.constant 0.000000e+00 : f32
    %130 = vector.broadcast %cst_11 : f32 to vector<16x8xf32>
    %cst_12 = arith.constant 0.000000e+00 : f32
    %131 = vector.broadcast %cst_12 : f32 to vector<16x10xf32>
    %132 = vector.extract_strided_slice %129 {offsets = [0, 0], sizes = [16, 10], strides = [1, 1]} : vector<16x14xf32> to vector<16x10xf32>
    %133 = vector.extract_strided_slice %122 {offsets = [0, 0], sizes = [16, 1], strides = [1, 1]} : vector<16x19xf32> to vector<16x1xf32>
    %134 = vector.broadcast %133 : vector<16x1xf32> to vector<16x10xf32>
    %135 = arith.mulf %132, %134 : vector<16x10xf32>
    %136 = arith.addf %131, %135 : vector<16x10xf32>
    %137 = vector.extract_strided_slice %129 {offsets = [0, 1], sizes = [16, 10], strides = [1, 1]} : vector<16x14xf32> to vector<16x10xf32>
    %138 = vector.extract_strided_slice %122 {offsets = [0, 1], sizes = [16, 1], strides = [1, 1]} : vector<16x19xf32> to vector<16x1xf32>
    %139 = vector.broadcast %138 : vector<16x1xf32> to vector<16x10xf32>
    %140 = arith.mulf %137, %139 : vector<16x10xf32>
    %141 = arith.addf %136, %140 : vector<16x10xf32>
    %142 = vector.extract_strided_slice %129 {offsets = [0, 2], sizes = [16, 10], strides = [1, 1]} : vector<16x14xf32> to vector<16x10xf32>
    %143 = vector.extract_strided_slice %122 {offsets = [0, 2], sizes = [16, 1], strides = [1, 1]} : vector<16x19xf32> to vector<16x1xf32>
    %144 = vector.broadcast %143 : vector<16x1xf32> to vector<16x10xf32>
    %145 = arith.mulf %142, %144 : vector<16x10xf32>
    %146 = arith.addf %141, %145 : vector<16x10xf32>
    %147 = vector.extract_strided_slice %129 {offsets = [0, 3], sizes = [16, 10], strides = [1, 1]} : vector<16x14xf32> to vector<16x10xf32>
    %148 = vector.extract_strided_slice %122 {offsets = [0, 3], sizes = [16, 1], strides = [1, 1]} : vector<16x19xf32> to vector<16x1xf32>
    %149 = vector.broadcast %148 : vector<16x1xf32> to vector<16x10xf32>
    %150 = arith.mulf %147, %149 : vector<16x10xf32>
    %151 = arith.addf %146, %150 : vector<16x10xf32>
    %152 = vector.extract_strided_slice %129 {offsets = [0, 4], sizes = [16, 10], strides = [1, 1]} : vector<16x14xf32> to vector<16x10xf32>
    %153 = vector.extract_strided_slice %122 {offsets = [0, 4], sizes = [16, 1], strides = [1, 1]} : vector<16x19xf32> to vector<16x1xf32>
    %154 = vector.broadcast %153 : vector<16x1xf32> to vector<16x10xf32>
    %155 = arith.mulf %152, %154 : vector<16x10xf32>
    %156 = arith.addf %151, %155 : vector<16x10xf32>
    %157 = vector.extract_strided_slice %122 {offsets = [0, 10], sizes = [16, 1], strides = [1, 1]} : vector<16x19xf32> to vector<16x1xf32>
    %158 = vector.broadcast %157 : vector<16x1xf32> to vector<16x10xf32>
    %159 = arith.addf %156, %158 : vector<16x10xf32>
    %cst_13 = arith.constant 0.000000e+00 : f32
    %160 = vector.broadcast %cst_13 : f32 to vector<16x10xf32>
    %161 = arith.cmpf ogt, %159, %160 : vector<16x10xf32>
    %cst_14 = arith.constant 0.00999999977 : f32
    %162 = vector.broadcast %cst_14 : f32 to vector<16x10xf32>
    %163 = arith.mulf %162, %159 : vector<16x10xf32>
    %164 = arith.select %161, %159, %163 : vector<16x10xi1>, vector<16x10xf32>
    %165 = vector.extract_strided_slice %164 {offsets = [0, 0], sizes = [16, 8], strides = [1, 1]} : vector<16x10xf32> to vector<16x8xf32>
    %166 = vector.extract_strided_slice %122 {offsets = [0, 12], sizes = [16, 1], strides = [1, 1]} : vector<16x19xf32> to vector<16x1xf32>
    %167 = vector.broadcast %166 : vector<16x1xf32> to vector<16x8xf32>
    %168 = arith.mulf %165, %167 : vector<16x8xf32>
    %169 = arith.addf %130, %168 : vector<16x8xf32>
    %170 = vector.extract_strided_slice %164 {offsets = [0, 1], sizes = [16, 8], strides = [1, 1]} : vector<16x10xf32> to vector<16x8xf32>
    %171 = vector.extract_strided_slice %122 {offsets = [0, 13], sizes = [16, 1], strides = [1, 1]} : vector<16x19xf32> to vector<16x1xf32>
    %172 = vector.broadcast %171 : vector<16x1xf32> to vector<16x8xf32>
    %173 = arith.mulf %170, %172 : vector<16x8xf32>
    %174 = arith.addf %169, %173 : vector<16x8xf32>
    %175 = vector.extract_strided_slice %164 {offsets = [0, 2], sizes = [16, 8], strides = [1, 1]} : vector<16x10xf32> to vector<16x8xf32>
    %176 = vector.extract_strided_slice %122 {offsets = [0, 14], sizes = [16, 1], strides = [1, 1]} : vector<16x19xf32> to vector<16x1xf32>
    %177 = vector.broadcast %176 : vector<16x1xf32> to vector<16x8xf32>
    %178 = arith.mulf %175, %177 : vector<16x8xf32>
    %179 = arith.addf %174, %178 : vector<16x8xf32>
    %cst_15 = arith.constant 0.000000e+00 : f32
    %180 = vector.broadcast %cst_15 : f32 to vector<16x10xf32>
    %181 = vector.extract_strided_slice %129 {offsets = [0, 0], sizes = [16, 10], strides = [1, 1]} : vector<16x14xf32> to vector<16x10xf32>
    %182 = vector.extract_strided_slice %122 {offsets = [0, 5], sizes = [16, 1], strides = [1, 1]} : vector<16x19xf32> to vector<16x1xf32>
    %183 = vector.broadcast %182 : vector<16x1xf32> to vector<16x10xf32>
    %184 = arith.mulf %181, %183 : vector<16x10xf32>
    %185 = arith.addf %180, %184 : vector<16x10xf32>
    %186 = vector.extract_strided_slice %129 {offsets = [0, 1], sizes = [16, 10], strides = [1, 1]} : vector<16x14xf32> to vector<16x10xf32>
    %187 = vector.extract_strided_slice %122 {offsets = [0, 6], sizes = [16, 1], strides = [1, 1]} : vector<16x19xf32> to vector<16x1xf32>
    %188 = vector.broadcast %187 : vector<16x1xf32> to vector<16x10xf32>
    %189 = arith.mulf %186, %188 : vector<16x10xf32>
    %190 = arith.addf %185, %189 : vector<16x10xf32>
    %191 = vector.extract_strided_slice %129 {offsets = [0, 2], sizes = [16, 10], strides = [1, 1]} : vector<16x14xf32> to vector<16x10xf32>
    %192 = vector.extract_strided_slice %122 {offsets = [0, 7], sizes = [16, 1], strides = [1, 1]} : vector<16x19xf32> to vector<16x1xf32>
    %193 = vector.broadcast %192 : vector<16x1xf32> to vector<16x10xf32>
    %194 = arith.mulf %191, %193 : vector<16x10xf32>
    %195 = arith.addf %190, %194 : vector<16x10xf32>
    %196 = vector.extract_strided_slice %129 {offsets = [0, 3], sizes = [16, 10], strides = [1, 1]} : vector<16x14xf32> to vector<16x10xf32>
    %197 = vector.extract_strided_slice %122 {offsets = [0, 8], sizes = [16, 1], strides = [1, 1]} : vector<16x19xf32> to vector<16x1xf32>
    %198 = vector.broadcast %197 : vector<16x1xf32> to vector<16x10xf32>
    %199 = arith.mulf %196, %198 : vector<16x10xf32>
    %200 = arith.addf %195, %199 : vector<16x10xf32>
    %201 = vector.extract_strided_slice %129 {offsets = [0, 4], sizes = [16, 10], strides = [1, 1]} : vector<16x14xf32> to vector<16x10xf32>
    %202 = vector.extract_strided_slice %122 {offsets = [0, 9], sizes = [16, 1], strides = [1, 1]} : vector<16x19xf32> to vector<16x1xf32>
    %203 = vector.broadcast %202 : vector<16x1xf32> to vector<16x10xf32>
    %204 = arith.mulf %201, %203 : vector<16x10xf32>
    %205 = arith.addf %200, %204 : vector<16x10xf32>
    %206 = vector.extract_strided_slice %122 {offsets = [0, 11], sizes = [16, 1], strides = [1, 1]} : vector<16x19xf32> to vector<16x1xf32>
    %207 = vector.broadcast %206 : vector<16x1xf32> to vector<16x10xf32>
    %208 = arith.addf %205, %207 : vector<16x10xf32>
    %cst_16 = arith.constant 0.000000e+00 : f32
    %209 = vector.broadcast %cst_16 : f32 to vector<16x10xf32>
    %210 = arith.cmpf ogt, %208, %209 : vector<16x10xf32>
    %cst_17 = arith.constant 0.00999999977 : f32
    %211 = vector.broadcast %cst_17 : f32 to vector<16x10xf32>
    %212 = arith.mulf %211, %208 : vector<16x10xf32>
    %213 = arith.select %210, %208, %212 : vector<16x10xi1>, vector<16x10xf32>
    %214 = vector.extract_strided_slice %213 {offsets = [0, 0], sizes = [16, 8], strides = [1, 1]} : vector<16x10xf32> to vector<16x8xf32>
    %215 = vector.extract_strided_slice %122 {offsets = [0, 15], sizes = [16, 1], strides = [1, 1]} : vector<16x19xf32> to vector<16x1xf32>
    %216 = vector.broadcast %215 : vector<16x1xf32> to vector<16x8xf32>
    %217 = arith.mulf %214, %216 : vector<16x8xf32>
    %218 = arith.addf %179, %217 : vector<16x8xf32>
    %219 = vector.extract_strided_slice %213 {offsets = [0, 1], sizes = [16, 8], strides = [1, 1]} : vector<16x10xf32> to vector<16x8xf32>
    %220 = vector.extract_strided_slice %122 {offsets = [0, 16], sizes = [16, 1], strides = [1, 1]} : vector<16x19xf32> to vector<16x1xf32>
    %221 = vector.broadcast %220 : vector<16x1xf32> to vector<16x8xf32>
    %222 = arith.mulf %219, %221 : vector<16x8xf32>
    %223 = arith.addf %218, %222 : vector<16x8xf32>
    %224 = vector.extract_strided_slice %213 {offsets = [0, 2], sizes = [16, 8], strides = [1, 1]} : vector<16x10xf32> to vector<16x8xf32>
    %225 = vector.extract_strided_slice %122 {offsets = [0, 17], sizes = [16, 1], strides = [1, 1]} : vector<16x19xf32> to vector<16x1xf32>
    %226 = vector.broadcast %225 : vector<16x1xf32> to vector<16x8xf32>
    %227 = arith.mulf %224, %226 : vector<16x8xf32>
    %228 = arith.addf %223, %227 : vector<16x8xf32>
    %229 = vector.extract_strided_slice %122 {offsets = [0, 18], sizes = [16, 1], strides = [1, 1]} : vector<16x19xf32> to vector<16x1xf32>
    %230 = vector.broadcast %229 : vector<16x1xf32> to vector<16x8xf32>
    %231 = arith.addf %228, %230 : vector<16x8xf32>
    %232 = math.tanh %231 : vector<16x8xf32>
    %233 = vector.extract_strided_slice %232 {offsets = [0, 0], sizes = [8, 8], strides = [1, 1]} : vector<16x8xf32> to vector<8x8xf32>
    %234 = arith.addf %120, %233 : vector<8x8xf32>
    %235 = vector.extract_strided_slice %232 {offsets = [8, 0], sizes = [8, 8], strides = [1, 1]} : vector<16x8xf32> to vector<8x8xf32>
    %236 = arith.subf %117, %235 : vector<8x8xf32>
    %237 = tpu.concatenate %234, %236 in 0 : vector<8x8xf32>, vector<8x8xf32> -> vector<16x8xf32>
    %c0_18 = arith.constant 0 : index
    %c0_19 = arith.constant 0 : index
    %238 = vector.load %arg5[%c0_18, %c0_19] : memref<8x8xf32, #tpu.memory_space<vmem>>, vector<8x8xf32>
    %cst_20 = arith.constant dense<0.000000e+00> : vector<16x8xf32>
    %239 = tpu.matmul %237, %238, %cst_20 {dimension_numbers = #tpu.dot_dimension_numbers<[1], [0], [0], [1], [0, 0, 1, 1], [], []>} : vector<16x8xf32>, vector<8x8xf32>, vector<16x8xf32> -> vector<16x8xf32>
    %240 = vector.extract_strided_slice %239 {offsets = [0, 0], sizes = [8, 4], strides = [1, 1]} : vector<16x8xf32> to vector<8x4xf32>
    %241 = vector.extract_strided_slice %239 {offsets = [0, 4], sizes = [8, 4], strides = [1, 1]} : vector<16x8xf32> to vector<8x4xf32>
    %242 = vector.extract_strided_slice %239 {offsets = [8, 0], sizes = [8, 4], strides = [1, 1]} : vector<16x8xf32> to vector<8x4xf32>
    %243 = vector.extract_strided_slice %239 {offsets = [8, 4], sizes = [8, 4], strides = [1, 1]} : vector<16x8xf32> to vector<8x4xf32>
    %244 = tpu.concatenate %240, %241, %242, %243 in 0 : vector<8x4xf32>, vector<8x4xf32>, vector<8x4xf32>, vector<8x4xf32> -> vector<32x4xf32>
    %c0_21 = arith.constant 0 : index
    %c0_22 = arith.constant 0 : index
    %245 = vector.load %arg3[%c0_21, %c0_22] : memref<32x19xf32, #tpu.memory_space<vmem>>, vector<32x19xf32>
    %246 = vector.extract_strided_slice %244 {offsets = [0, 0], sizes = [32, 1], strides = [1, 1]} : vector<32x4xf32> to vector<32x1xf32>
    %247 = vector.shape_cast %246 : vector<32x1xf32> to vector<32x1xf32>
    %248 = vector.broadcast %247 : vector<32x1xf32> to vector<32x3xf32>
    %249 = vector.extract_strided_slice %244 {offsets = [0, 3], sizes = [32, 1], strides = [1, 1]} : vector<32x4xf32> to vector<32x1xf32>
    %250 = vector.shape_cast %249 : vector<32x1xf32> to vector<32x1xf32>
    %251 = vector.broadcast %250 : vector<32x1xf32> to vector<32x3xf32>
    %252 = tpu.concatenate %248, %244, %251 in 1 : vector<32x3xf32>, vector<32x4xf32>, vector<32x3xf32> -> vector<32x10xf32>
    %cst_23 = arith.constant 0.000000e+00 : f32
    %253 = vector.broadcast %cst_23 : f32 to vector<32x4xf32>
    %cst_24 = arith.constant 0.000000e+00 : f32
    %254 = vector.broadcast %cst_24 : f32 to vector<32x6xf32>
    %255 = vector.extract_strided_slice %252 {offsets = [0, 0], sizes = [32, 6], strides = [1, 1]} : vector<32x10xf32> to vector<32x6xf32>
    %256 = vector.extract_strided_slice %245 {offsets = [0, 0], sizes = [32, 1], strides = [1, 1]} : vector<32x19xf32> to vector<32x1xf32>
    %257 = vector.broadcast %256 : vector<32x1xf32> to vector<32x6xf32>
    %258 = arith.mulf %255, %257 : vector<32x6xf32>
    %259 = arith.addf %254, %258 : vector<32x6xf32>
    %260 = vector.extract_strided_slice %252 {offsets = [0, 1], sizes = [32, 6], strides = [1, 1]} : vector<32x10xf32> to vector<32x6xf32>
    %261 = vector.extract_strided_slice %245 {offsets = [0, 1], sizes = [32, 1], strides = [1, 1]} : vector<32x19xf32> to vector<32x1xf32>
    %262 = vector.broadcast %261 : vector<32x1xf32> to vector<32x6xf32>
    %263 = arith.mulf %260, %262 : vector<32x6xf32>
    %264 = arith.addf %259, %263 : vector<32x6xf32>
    %265 = vector.extract_strided_slice %252 {offsets = [0, 2], sizes = [32, 6], strides = [1, 1]} : vector<32x10xf32> to vector<32x6xf32>
    %266 = vector.extract_strided_slice %245 {offsets = [0, 2], sizes = [32, 1], strides = [1, 1]} : vector<32x19xf32> to vector<32x1xf32>
    %267 = vector.broadcast %266 : vector<32x1xf32> to vector<32x6xf32>
    %268 = arith.mulf %265, %267 : vector<32x6xf32>
    %269 = arith.addf %264, %268 : vector<32x6xf32>
    %270 = vector.extract_strided_slice %252 {offsets = [0, 3], sizes = [32, 6], strides = [1, 1]} : vector<32x10xf32> to vector<32x6xf32>
    %271 = vector.extract_strided_slice %245 {offsets = [0, 3], sizes = [32, 1], strides = [1, 1]} : vector<32x19xf32> to vector<32x1xf32>
    %272 = vector.broadcast %271 : vector<32x1xf32> to vector<32x6xf32>
    %273 = arith.mulf %270, %272 : vector<32x6xf32>
    %274 = arith.addf %269, %273 : vector<32x6xf32>
    %275 = vector.extract_strided_slice %252 {offsets = [0, 4], sizes = [32, 6], strides = [1, 1]} : vector<32x10xf32> to vector<32x6xf32>
    %276 = vector.extract_strided_slice %245 {offsets = [0, 4], sizes = [32, 1], strides = [1, 1]} : vector<32x19xf32> to vector<32x1xf32>
    %277 = vector.broadcast %276 : vector<32x1xf32> to vector<32x6xf32>
    %278 = arith.mulf %275, %277 : vector<32x6xf32>
    %279 = arith.addf %274, %278 : vector<32x6xf32>
    %280 = vector.extract_strided_slice %245 {offsets = [0, 10], sizes = [32, 1], strides = [1, 1]} : vector<32x19xf32> to vector<32x1xf32>
    %281 = vector.broadcast %280 : vector<32x1xf32> to vector<32x6xf32>
    %282 = arith.addf %279, %281 : vector<32x6xf32>
    %cst_25 = arith.constant 0.000000e+00 : f32
    %283 = vector.broadcast %cst_25 : f32 to vector<32x6xf32>
    %284 = arith.cmpf ogt, %282, %283 : vector<32x6xf32>
    %cst_26 = arith.constant 0.00999999977 : f32
    %285 = vector.broadcast %cst_26 : f32 to vector<32x6xf32>
    %286 = arith.mulf %285, %282 : vector<32x6xf32>
    %287 = arith.select %284, %282, %286 : vector<32x6xi1>, vector<32x6xf32>
    %288 = vector.extract_strided_slice %287 {offsets = [0, 0], sizes = [32, 4], strides = [1, 1]} : vector<32x6xf32> to vector<32x4xf32>
    %289 = vector.extract_strided_slice %245 {offsets = [0, 12], sizes = [32, 1], strides = [1, 1]} : vector<32x19xf32> to vector<32x1xf32>
    %290 = vector.broadcast %289 : vector<32x1xf32> to vector<32x4xf32>
    %291 = arith.mulf %288, %290 : vector<32x4xf32>
    %292 = arith.addf %253, %291 : vector<32x4xf32>
    %293 = vector.extract_strided_slice %287 {offsets = [0, 1], sizes = [32, 4], strides = [1, 1]} : vector<32x6xf32> to vector<32x4xf32>
    %294 = vector.extract_strided_slice %245 {offsets = [0, 13], sizes = [32, 1], strides = [1, 1]} : vector<32x19xf32> to vector<32x1xf32>
    %295 = vector.broadcast %294 : vector<32x1xf32> to vector<32x4xf32>
    %296 = arith.mulf %293, %295 : vector<32x4xf32>
    %297 = arith.addf %292, %296 : vector<32x4xf32>
    %298 = vector.extract_strided_slice %287 {offsets = [0, 2], sizes = [32, 4], strides = [1, 1]} : vector<32x6xf32> to vector<32x4xf32>
    %299 = vector.extract_strided_slice %245 {offsets = [0, 14], sizes = [32, 1], strides = [1, 1]} : vector<32x19xf32> to vector<32x1xf32>
    %300 = vector.broadcast %299 : vector<32x1xf32> to vector<32x4xf32>
    %301 = arith.mulf %298, %300 : vector<32x4xf32>
    %302 = arith.addf %297, %301 : vector<32x4xf32>
    %cst_27 = arith.constant 0.000000e+00 : f32
    %303 = vector.broadcast %cst_27 : f32 to vector<32x6xf32>
    %304 = vector.extract_strided_slice %252 {offsets = [0, 0], sizes = [32, 6], strides = [1, 1]} : vector<32x10xf32> to vector<32x6xf32>
    %305 = vector.extract_strided_slice %245 {offsets = [0, 5], sizes = [32, 1], strides = [1, 1]} : vector<32x19xf32> to vector<32x1xf32>
    %306 = vector.broadcast %305 : vector<32x1xf32> to vector<32x6xf32>
    %307 = arith.mulf %304, %306 : vector<32x6xf32>
    %308 = arith.addf %303, %307 : vector<32x6xf32>
    %309 = vector.extract_strided_slice %252 {offsets = [0, 1], sizes = [32, 6], strides = [1, 1]} : vector<32x10xf32> to vector<32x6xf32>
    %310 = vector.extract_strided_slice %245 {offsets = [0, 6], sizes = [32, 1], strides = [1, 1]} : vector<32x19xf32> to vector<32x1xf32>
    %311 = vector.broadcast %310 : vector<32x1xf32> to vector<32x6xf32>
    %312 = arith.mulf %309, %311 : vector<32x6xf32>
    %313 = arith.addf %308, %312 : vector<32x6xf32>
    %314 = vector.extract_strided_slice %252 {offsets = [0, 2], sizes = [32, 6], strides = [1, 1]} : vector<32x10xf32> to vector<32x6xf32>
    %315 = vector.extract_strided_slice %245 {offsets = [0, 7], sizes = [32, 1], strides = [1, 1]} : vector<32x19xf32> to vector<32x1xf32>
    %316 = vector.broadcast %315 : vector<32x1xf32> to vector<32x6xf32>
    %317 = arith.mulf %314, %316 : vector<32x6xf32>
    %318 = arith.addf %313, %317 : vector<32x6xf32>
    %319 = vector.extract_strided_slice %252 {offsets = [0, 3], sizes = [32, 6], strides = [1, 1]} : vector<32x10xf32> to vector<32x6xf32>
    %320 = vector.extract_strided_slice %245 {offsets = [0, 8], sizes = [32, 1], strides = [1, 1]} : vector<32x19xf32> to vector<32x1xf32>
    %321 = vector.broadcast %320 : vector<32x1xf32> to vector<32x6xf32>
    %322 = arith.mulf %319, %321 : vector<32x6xf32>
    %323 = arith.addf %318, %322 : vector<32x6xf32>
    %324 = vector.extract_strided_slice %252 {offsets = [0, 4], sizes = [32, 6], strides = [1, 1]} : vector<32x10xf32> to vector<32x6xf32>
    %325 = vector.extract_strided_slice %245 {offsets = [0, 9], sizes = [32, 1], strides = [1, 1]} : vector<32x19xf32> to vector<32x1xf32>
    %326 = vector.broadcast %325 : vector<32x1xf32> to vector<32x6xf32>
    %327 = arith.mulf %324, %326 : vector<32x6xf32>
    %328 = arith.addf %323, %327 : vector<32x6xf32>
    %329 = vector.extract_strided_slice %245 {offsets = [0, 11], sizes = [32, 1], strides = [1, 1]} : vector<32x19xf32> to vector<32x1xf32>
    %330 = vector.broadcast %329 : vector<32x1xf32> to vector<32x6xf32>
    %331 = arith.addf %328, %330 : vector<32x6xf32>
    %cst_28 = arith.constant 0.000000e+00 : f32
    %332 = vector.broadcast %cst_28 : f32 to vector<32x6xf32>
    %333 = arith.cmpf ogt, %331, %332 : vector<32x6xf32>
    %cst_29 = arith.constant 0.00999999977 : f32
    %334 = vector.broadcast %cst_29 : f32 to vector<32x6xf32>
    %335 = arith.mulf %334, %331 : vector<32x6xf32>
    %336 = arith.select %333, %331, %335 : vector<32x6xi1>, vector<32x6xf32>
    %337 = vector.extract_strided_slice %336 {offsets = [0, 0], sizes = [32, 4], strides = [1, 1]} : vector<32x6xf32> to vector<32x4xf32>
    %338 = vector.extract_strided_slice %245 {offsets = [0, 15], sizes = [32, 1], strides = [1, 1]} : vector<32x19xf32> to vector<32x1xf32>
    %339 = vector.broadcast %338 : vector<32x1xf32> to vector<32x4xf32>
    %340 = arith.mulf %337, %339 : vector<32x4xf32>
    %341 = arith.addf %302, %340 : vector<32x4xf32>
    %342 = vector.extract_strided_slice %336 {offsets = [0, 1], sizes = [32, 4], strides = [1, 1]} : vector<32x6xf32> to vector<32x4xf32>
    %343 = vector.extract_strided_slice %245 {offsets = [0, 16], sizes = [32, 1], strides = [1, 1]} : vector<32x19xf32> to vector<32x1xf32>
    %344 = vector.broadcast %343 : vector<32x1xf32> to vector<32x4xf32>
    %345 = arith.mulf %342, %344 : vector<32x4xf32>
    %346 = arith.addf %341, %345 : vector<32x4xf32>
    %347 = vector.extract_strided_slice %336 {offsets = [0, 2], sizes = [32, 4], strides = [1, 1]} : vector<32x6xf32> to vector<32x4xf32>
    %348 = vector.extract_strided_slice %245 {offsets = [0, 17], sizes = [32, 1], strides = [1, 1]} : vector<32x19xf32> to vector<32x1xf32>
    %349 = vector.broadcast %348 : vector<32x1xf32> to vector<32x4xf32>
    %350 = arith.mulf %347, %349 : vector<32x4xf32>
    %351 = arith.addf %346, %350 : vector<32x4xf32>
    %352 = vector.extract_strided_slice %245 {offsets = [0, 18], sizes = [32, 1], strides = [1, 1]} : vector<32x19xf32> to vector<32x1xf32>
    %353 = vector.broadcast %352 : vector<32x1xf32> to vector<32x4xf32>
    %354 = arith.addf %351, %353 : vector<32x4xf32>
    %355 = math.tanh %354 : vector<32x4xf32>
    %356 = vector.extract_strided_slice %355 {offsets = [0, 0], sizes = [8, 4], strides = [1, 1]} : vector<32x4xf32> to vector<8x4xf32>
    %357 = math.exp %356 : vector<8x4xf32>
    %358 = arith.mulf %241, %357 : vector<8x4xf32>
    %359 = vector.extract_strided_slice %355 {offsets = [8, 0], sizes = [8, 4], strides = [1, 1]} : vector<32x4xf32> to vector<8x4xf32>
    %360 = math.exp %359 : vector<8x4xf32>
    %361 = arith.mulf %240, %360 : vector<8x4xf32>
    %362 = vector.extract_strided_slice %355 {offsets = [16, 0], sizes = [8, 4], strides = [1, 1]} : vector<32x4xf32> to vector<8x4xf32>
    %363 = math.exp %362 : vector<8x4xf32>
    %364 = arith.mulf %243, %363 : vector<8x4xf32>
    %365 = vector.extract_strided_slice %355 {offsets = [24, 0], sizes = [8, 4], strides = [1, 1]} : vector<32x4xf32> to vector<8x4xf32>
    %366 = math.exp %365 : vector<8x4xf32>
    %367 = arith.mulf %242, %366 : vector<8x4xf32>
    %368 = tpu.concatenate %358, %361, %364, %367 in 0 : vector<8x4xf32>, vector<8x4xf32>, vector<8x4xf32>, vector<8x4xf32> -> vector<32x4xf32>
    %c0_30 = arith.constant 0 : index
    %c0_31 = arith.constant 0 : index
    %369 = vector.load %arg4[%c0_30, %c0_31] : memref<32x19xf32, #tpu.memory_space<vmem>>, vector<32x19xf32>
    %370 = vector.extract_strided_slice %368 {offsets = [0, 0], sizes = [32, 1], strides = [1, 1]} : vector<32x4xf32> to vector<32x1xf32>
    %371 = vector.shape_cast %370 : vector<32x1xf32> to vector<32x1xf32>
    %372 = vector.broadcast %371 : vector<32x1xf32> to vector<32x3xf32>
    %373 = vector.extract_strided_slice %368 {offsets = [0, 3], sizes = [32, 1], strides = [1, 1]} : vector<32x4xf32> to vector<32x1xf32>
    %374 = vector.shape_cast %373 : vector<32x1xf32> to vector<32x1xf32>
    %375 = vector.broadcast %374 : vector<32x1xf32> to vector<32x3xf32>
    %376 = tpu.concatenate %372, %368, %375 in 1 : vector<32x3xf32>, vector<32x4xf32>, vector<32x3xf32> -> vector<32x10xf32>
    %cst_32 = arith.constant 0.000000e+00 : f32
    %377 = vector.broadcast %cst_32 : f32 to vector<32x4xf32>
    %cst_33 = arith.constant 0.000000e+00 : f32
    %378 = vector.broadcast %cst_33 : f32 to vector<32x6xf32>
    %379 = vector.extract_strided_slice %376 {offsets = [0, 0], sizes = [32, 6], strides = [1, 1]} : vector<32x10xf32> to vector<32x6xf32>
    %380 = vector.extract_strided_slice %369 {offsets = [0, 0], sizes = [32, 1], strides = [1, 1]} : vector<32x19xf32> to vector<32x1xf32>
    %381 = vector.broadcast %380 : vector<32x1xf32> to vector<32x6xf32>
    %382 = arith.mulf %379, %381 : vector<32x6xf32>
    %383 = arith.addf %378, %382 : vector<32x6xf32>
    %384 = vector.extract_strided_slice %376 {offsets = [0, 1], sizes = [32, 6], strides = [1, 1]} : vector<32x10xf32> to vector<32x6xf32>
    %385 = vector.extract_strided_slice %369 {offsets = [0, 1], sizes = [32, 1], strides = [1, 1]} : vector<32x19xf32> to vector<32x1xf32>
    %386 = vector.broadcast %385 : vector<32x1xf32> to vector<32x6xf32>
    %387 = arith.mulf %384, %386 : vector<32x6xf32>
    %388 = arith.addf %383, %387 : vector<32x6xf32>
    %389 = vector.extract_strided_slice %376 {offsets = [0, 2], sizes = [32, 6], strides = [1, 1]} : vector<32x10xf32> to vector<32x6xf32>
    %390 = vector.extract_strided_slice %369 {offsets = [0, 2], sizes = [32, 1], strides = [1, 1]} : vector<32x19xf32> to vector<32x1xf32>
    %391 = vector.broadcast %390 : vector<32x1xf32> to vector<32x6xf32>
    %392 = arith.mulf %389, %391 : vector<32x6xf32>
    %393 = arith.addf %388, %392 : vector<32x6xf32>
    %394 = vector.extract_strided_slice %376 {offsets = [0, 3], sizes = [32, 6], strides = [1, 1]} : vector<32x10xf32> to vector<32x6xf32>
    %395 = vector.extract_strided_slice %369 {offsets = [0, 3], sizes = [32, 1], strides = [1, 1]} : vector<32x19xf32> to vector<32x1xf32>
    %396 = vector.broadcast %395 : vector<32x1xf32> to vector<32x6xf32>
    %397 = arith.mulf %394, %396 : vector<32x6xf32>
    %398 = arith.addf %393, %397 : vector<32x6xf32>
    %399 = vector.extract_strided_slice %376 {offsets = [0, 4], sizes = [32, 6], strides = [1, 1]} : vector<32x10xf32> to vector<32x6xf32>
    %400 = vector.extract_strided_slice %369 {offsets = [0, 4], sizes = [32, 1], strides = [1, 1]} : vector<32x19xf32> to vector<32x1xf32>
    %401 = vector.broadcast %400 : vector<32x1xf32> to vector<32x6xf32>
    %402 = arith.mulf %399, %401 : vector<32x6xf32>
    %403 = arith.addf %398, %402 : vector<32x6xf32>
    %404 = vector.extract_strided_slice %369 {offsets = [0, 10], sizes = [32, 1], strides = [1, 1]} : vector<32x19xf32> to vector<32x1xf32>
    %405 = vector.broadcast %404 : vector<32x1xf32> to vector<32x6xf32>
    %406 = arith.addf %403, %405 : vector<32x6xf32>
    %cst_34 = arith.constant 0.000000e+00 : f32
    %407 = vector.broadcast %cst_34 : f32 to vector<32x6xf32>
    %408 = arith.cmpf ogt, %406, %407 : vector<32x6xf32>
    %cst_35 = arith.constant 0.00999999977 : f32
    %409 = vector.broadcast %cst_35 : f32 to vector<32x6xf32>
    %410 = arith.mulf %409, %406 : vector<32x6xf32>
    %411 = arith.select %408, %406, %410 : vector<32x6xi1>, vector<32x6xf32>
    %412 = vector.extract_strided_slice %411 {offsets = [0, 0], sizes = [32, 4], strides = [1, 1]} : vector<32x6xf32> to vector<32x4xf32>
    %413 = vector.extract_strided_slice %369 {offsets = [0, 12], sizes = [32, 1], strides = [1, 1]} : vector<32x19xf32> to vector<32x1xf32>
    %414 = vector.broadcast %413 : vector<32x1xf32> to vector<32x4xf32>
    %415 = arith.mulf %412, %414 : vector<32x4xf32>
    %416 = arith.addf %377, %415 : vector<32x4xf32>
    %417 = vector.extract_strided_slice %411 {offsets = [0, 1], sizes = [32, 4], strides = [1, 1]} : vector<32x6xf32> to vector<32x4xf32>
    %418 = vector.extract_strided_slice %369 {offsets = [0, 13], sizes = [32, 1], strides = [1, 1]} : vector<32x19xf32> to vector<32x1xf32>
    %419 = vector.broadcast %418 : vector<32x1xf32> to vector<32x4xf32>
    %420 = arith.mulf %417, %419 : vector<32x4xf32>
    %421 = arith.addf %416, %420 : vector<32x4xf32>
    %422 = vector.extract_strided_slice %411 {offsets = [0, 2], sizes = [32, 4], strides = [1, 1]} : vector<32x6xf32> to vector<32x4xf32>
    %423 = vector.extract_strided_slice %369 {offsets = [0, 14], sizes = [32, 1], strides = [1, 1]} : vector<32x19xf32> to vector<32x1xf32>
    %424 = vector.broadcast %423 : vector<32x1xf32> to vector<32x4xf32>
    %425 = arith.mulf %422, %424 : vector<32x4xf32>
    %426 = arith.addf %421, %425 : vector<32x4xf32>
    %cst_36 = arith.constant 0.000000e+00 : f32
    %427 = vector.broadcast %cst_36 : f32 to vector<32x6xf32>
    %428 = vector.extract_strided_slice %376 {offsets = [0, 0], sizes = [32, 6], strides = [1, 1]} : vector<32x10xf32> to vector<32x6xf32>
    %429 = vector.extract_strided_slice %369 {offsets = [0, 5], sizes = [32, 1], strides = [1, 1]} : vector<32x19xf32> to vector<32x1xf32>
    %430 = vector.broadcast %429 : vector<32x1xf32> to vector<32x6xf32>
    %431 = arith.mulf %428, %430 : vector<32x6xf32>
    %432 = arith.addf %427, %431 : vector<32x6xf32>
    %433 = vector.extract_strided_slice %376 {offsets = [0, 1], sizes = [32, 6], strides = [1, 1]} : vector<32x10xf32> to vector<32x6xf32>
    %434 = vector.extract_strided_slice %369 {offsets = [0, 6], sizes = [32, 1], strides = [1, 1]} : vector<32x19xf32> to vector<32x1xf32>
    %435 = vector.broadcast %434 : vector<32x1xf32> to vector<32x6xf32>
    %436 = arith.mulf %433, %435 : vector<32x6xf32>
    %437 = arith.addf %432, %436 : vector<32x6xf32>
    %438 = vector.extract_strided_slice %376 {offsets = [0, 2], sizes = [32, 6], strides = [1, 1]} : vector<32x10xf32> to vector<32x6xf32>
    %439 = vector.extract_strided_slice %369 {offsets = [0, 7], sizes = [32, 1], strides = [1, 1]} : vector<32x19xf32> to vector<32x1xf32>
    %440 = vector.broadcast %439 : vector<32x1xf32> to vector<32x6xf32>
    %441 = arith.mulf %438, %440 : vector<32x6xf32>
    %442 = arith.addf %437, %441 : vector<32x6xf32>
    %443 = vector.extract_strided_slice %376 {offsets = [0, 3], sizes = [32, 6], strides = [1, 1]} : vector<32x10xf32> to vector<32x6xf32>
    %444 = vector.extract_strided_slice %369 {offsets = [0, 8], sizes = [32, 1], strides = [1, 1]} : vector<32x19xf32> to vector<32x1xf32>
    %445 = vector.broadcast %444 : vector<32x1xf32> to vector<32x6xf32>
    %446 = arith.mulf %443, %445 : vector<32x6xf32>
    %447 = arith.addf %442, %446 : vector<32x6xf32>
    %448 = vector.extract_strided_slice %376 {offsets = [0, 4], sizes = [32, 6], strides = [1, 1]} : vector<32x10xf32> to vector<32x6xf32>
    %449 = vector.extract_strided_slice %369 {offsets = [0, 9], sizes = [32, 1], strides = [1, 1]} : vector<32x19xf32> to vector<32x1xf32>
    %450 = vector.broadcast %449 : vector<32x1xf32> to vector<32x6xf32>
    %451 = arith.mulf %448, %450 : vector<32x6xf32>
    %452 = arith.addf %447, %451 : vector<32x6xf32>
    %453 = vector.extract_strided_slice %369 {offsets = [0, 11], sizes = [32, 1], strides = [1, 1]} : vector<32x19xf32> to vector<32x1xf32>
    %454 = vector.broadcast %453 : vector<32x1xf32> to vector<32x6xf32>
    %455 = arith.addf %452, %454 : vector<32x6xf32>
    %cst_37 = arith.constant 0.000000e+00 : f32
    %456 = vector.broadcast %cst_37 : f32 to vector<32x6xf32>
    %457 = arith.cmpf ogt, %455, %456 : vector<32x6xf32>
    %cst_38 = arith.constant 0.00999999977 : f32
    %458 = vector.broadcast %cst_38 : f32 to vector<32x6xf32>
    %459 = arith.mulf %458, %455 : vector<32x6xf32>
    %460 = arith.select %457, %455, %459 : vector<32x6xi1>, vector<32x6xf32>
    %461 = vector.extract_strided_slice %460 {offsets = [0, 0], sizes = [32, 4], strides = [1, 1]} : vector<32x6xf32> to vector<32x4xf32>
    %462 = vector.extract_strided_slice %369 {offsets = [0, 15], sizes = [32, 1], strides = [1, 1]} : vector<32x19xf32> to vector<32x1xf32>
    %463 = vector.broadcast %462 : vector<32x1xf32> to vector<32x4xf32>
    %464 = arith.mulf %461, %463 : vector<32x4xf32>
    %465 = arith.addf %426, %464 : vector<32x4xf32>
    %466 = vector.extract_strided_slice %460 {offsets = [0, 1], sizes = [32, 4], strides = [1, 1]} : vector<32x6xf32> to vector<32x4xf32>
    %467 = vector.extract_strided_slice %369 {offsets = [0, 16], sizes = [32, 1], strides = [1, 1]} : vector<32x19xf32> to vector<32x1xf32>
    %468 = vector.broadcast %467 : vector<32x1xf32> to vector<32x4xf32>
    %469 = arith.mulf %466, %468 : vector<32x4xf32>
    %470 = arith.addf %465, %469 : vector<32x4xf32>
    %471 = vector.extract_strided_slice %460 {offsets = [0, 2], sizes = [32, 4], strides = [1, 1]} : vector<32x6xf32> to vector<32x4xf32>
    %472 = vector.extract_strided_slice %369 {offsets = [0, 17], sizes = [32, 1], strides = [1, 1]} : vector<32x19xf32> to vector<32x1xf32>
    %473 = vector.broadcast %472 : vector<32x1xf32> to vector<32x4xf32>
    %474 = arith.mulf %471, %473 : vector<32x4xf32>
    %475 = arith.addf %470, %474 : vector<32x4xf32>
    %476 = vector.extract_strided_slice %369 {offsets = [0, 18], sizes = [32, 1], strides = [1, 1]} : vector<32x19xf32> to vector<32x1xf32>
    %477 = vector.broadcast %476 : vector<32x1xf32> to vector<32x4xf32>
    %478 = arith.addf %475, %477 : vector<32x4xf32>
    %479 = math.tanh %478 : vector<32x4xf32>
    %480 = vector.extract_strided_slice %479 {offsets = [0, 0], sizes = [8, 4], strides = [1, 1]} : vector<32x4xf32> to vector<8x4xf32>
    %481 = arith.addf %361, %480 : vector<8x4xf32>
    %482 = vector.extract_strided_slice %479 {offsets = [8, 0], sizes = [8, 4], strides = [1, 1]} : vector<32x4xf32> to vector<8x4xf32>
    %483 = arith.subf %358, %482 : vector<8x4xf32>
    %484 = vector.extract_strided_slice %479 {offsets = [16, 0], sizes = [8, 4], strides = [1, 1]} : vector<32x4xf32> to vector<8x4xf32>
    %485 = arith.addf %367, %484 : vector<8x4xf32>
    %486 = vector.extract_strided_slice %479 {offsets = [24, 0], sizes = [8, 4], strides = [1, 1]} : vector<32x4xf32> to vector<8x4xf32>
    %487 = arith.subf %364, %486 : vector<8x4xf32>
    %488 = tpu.concatenate %481, %483, %485, %487, %0 in 1 : vector<8x4xf32>, vector<8x4xf32>, vector<8x4xf32>, vector<8x4xf32>, vector<8x16xf32> -> vector<8x32xf32>
    %c0_39 = arith.constant 0 : index
    %c0_40 = arith.constant 0 : index
    %489 = vector.load %arg6[%c0_39, %c0_40] : memref<32x4xf32, #tpu.memory_space<vmem>>, vector<32x4xf32>
    %cst_41 = arith.constant dense<0.000000e+00> : vector<8x4xf32>
    %490 = tpu.matmul %488, %489, %cst_41 {dimension_numbers = #tpu.dot_dimension_numbers<[1], [0], [0], [1], [0, 0, 1, 1], [], []>} : vector<8x32xf32>, vector<32x4xf32>, vector<8x4xf32> -> vector<8x4xf32>
    %c0_42 = arith.constant 0 : index
    %c0_43 = arith.constant 0 : index
    %491 = vector.load %arg7[%c0_42, %c0_43] : memref<8x4xf32, #tpu.memory_space<vmem>>, vector<8x4xf32>
    tpu.vector_store %arg7[%c0_42, %c0_43], %490 {strides = array<i32>} : memref<8x4xf32, #tpu.memory_space<vmem>>, vector<8x4xf32>,
    return
  }
}

</mosaic_0001>

<bundles_post_ra>
// kernel: fwd.1
= control target key start
LH: loop header
LB: loop body
LE: loop exit
PB: predicated region body
PF: predicated region fallthrough
CT: control target
= control target key end

     0   :  { %12 = vsyncpa [#allocation3], 0  ;;  %s4417_s0 = inlined_call_operand.vmem [shape: f32[8,16], index: 0, kind: input, shape index: {}]   ;;  %s4418_s1 = inlined_call_operand.hbm [shape: f32[16,19], index: 1, kind: input, shape index: {}]   ;;  %s4419_s2 = inlined_call_operand.hbm [shape: f32[16,19], index: 2, kind: input, shape index: {}]   ;;  %s4420_s3 = inlined_call_operand.hbm [shape: f32[32,19], index: 3, kind: input, shape index: {}]   ;;  %s4421_s4 = inlined_call_operand.vmem [shape: f32[32,19], index: 4, kind: input, shape index: {}]   ;;  %s4422_s5 = inlined_call_operand.vmem [shape: f32[8,8], index: 5, kind: input, shape index: {}]   ;;  %s4423_s6 = inlined_call_operand.vmem [shape: f32[32,4], index: 6, kind: input, shape index: {}]   ;;  %s4424_s7 = inlined_call_operand.vmem [shape: f32[8,4], index: 7, kind: output, shape index: {}]  }
   0x1   :  { %13 = vsyncpa [#allocation5], 0  ;;  %s2896_s24 = smov [#allocation4]   ;;  %s2897_s26 = smov [#allocation2]  }
   0x2   :  { %s33_s25 = sshll.u32 %s2896_s24, 4  ;;  %s21_s27 = sshll.u32 %s2897_s26, 4  ;;  %s34_s25 = int_to_ptr.vmem [resolvable:$true] %s33_s25  ;;  %s2972_s27 = int_to_ptr.vmem [resolvable:$true] %s21_s27 }
   0x3   :  { %s2826_s30 = scalar_lea.hbm %s4419_s2, 256 }
   0x4   :  { %p2827_p0 = scmp.ne.s32.totalorder %s4419_s2, %s2826_s30  ;;  %p2830_p1 = scmp.lt.u32.totalorder %s2826_s30, %s4419_s2 }
   0x6   :  { %p2832_p2 = pnand %p2830_p1, %p2827_p0 }
   0x8   :  { %2835 = shalt.err (!%p2832_p2)
}
   0x9   :  { %s2836_s12 = scalar_lea.vmem %s34_s25, 256  ;;  %p2841_p4 = scmp.lt.s32.totalorder %s34_s25, %s34_s25 }
   0xa   :  { %p2837_p3 = scmp.ne.s32.totalorder %s34_s25, %s2836_s12  ;;  %p2842_p5 = scmp.lt.s32.totalorder %s2836_s12, %s2836_s12 }
   0xc   :  { %p2843_p6 = por %p2842_p5, %p2841_p4 }
   0xe   :  { %p2844_p7 = pnand %p2843_p6, %p2837_p3 }
  0x10   :  { %2847 = shalt.err (!%p2844_p7)
}
  0x11   :  { %s2898_s13 = smov 128   ;;  %s2899_s14 = smov 8  }
  0x12   :  { %39 = dma.hbm_to_vmem [thread:$0]  %s4419_s2, 256, %s34_s25, [#allocation5], %s2898_s13, %s2898_s13, %s2899_s14  }
  0x13   :  { %s2848_s19 = scalar_lea.hbm %s4418_s1, 256 }
  0x14   :  { %p2849_p8 = scmp.ne.s32.totalorder %s4418_s1, %s2848_s19  ;;  %p2852_p9 = scmp.lt.u32.totalorder %s2848_s19, %s4418_s1 }
  0x16   :  { %p2854_p10 = pnand %p2852_p9, %p2849_p8 }
  0x18   :  { %2857 = shalt.err (!%p2854_p10)
}
  0x19   :  { %s2858_s24 = scalar_lea.vmem %s2972_s27, 256  ;;  %p2863_p12 = scmp.lt.s32.totalorder %s2972_s27, %s2972_s27 }
  0x1a   :  { %p2859_p11 = scmp.ne.s32.totalorder %s2972_s27, %s2858_s24  ;;  %p2864_p13 = scmp.lt.s32.totalorder %s2858_s24, %s2858_s24 }
  0x1c   :  { %p2865_p0 = por %p2864_p13, %p2863_p12 }
  0x1e   :  { %p2866_p1 = pnand %p2865_p0, %p2859_p11 }
  0x20   :  { %2869 = shalt.err (!%p2866_p1)
}
  0x21   :  { %27 = dma.hbm_to_vmem [thread:$0]  %s4418_s1, 256, %s2972_s27, [#allocation3], %s2898_s13, %s2898_s13, %s2899_s14  }
  0x22   :  { %s2900_s26 = smov [#allocation6]   ;;  %s2870_s8 = scalar_lea.hbm %s4420_s3, 512 }
  0x23   :  { %s45_s28 = sshll.u32 %s2900_s26, 4  ;;  %p2871_p2 = scmp.ne.s32.totalorder %s4420_s3, %s2870_s8  ;;  %s46_s28 = int_to_ptr.vmem [resolvable:$true] %s45_s28 }
  0x24   :  { %p2874_p3 = scmp.lt.u32.totalorder %s2870_s8, %s4420_s3 }
  0x26   :  { %p2876_p4 = pnand %p2874_p3, %p2871_p2 }
  0x28   :  { %2879 = shalt.err (!%p2876_p4)
}
  0x29   :  { %s2880_s15 = scalar_lea.vmem %s46_s28, 512  ;;  %p2885_p6 = scmp.lt.s32.totalorder %s46_s28, %s46_s28 }
  0x2a   :  { %p2881_p5 = scmp.ne.s32.totalorder %s46_s28, %s2880_s15  ;;  %p2886_p7 = scmp.lt.s32.totalorder %s2880_s15, %s2880_s15 }
  0x2c   :  { %p2887_p8 = por %p2886_p7, %p2885_p6 }
  0x2e   :  { %p2888_p9 = pnand %p2887_p8, %p2881_p5 }
  0x30   :  { %2891 = shalt.err (!%p2888_p9)
}
  0x31   :  { %51 = dma.hbm_to_vmem [thread:$0]  %s4420_s3, 512, %s46_s28, [#allocation5], %s2898_s13, %s2898_s13, %s2899_s14  }
  0x32   :  { %2892 = dma.done.wait [#allocation3], 256  }
  0x33   :  { %2893 = vsyncadd [#allocation3], 4294967040 }
  0x34   :  { %2894 = dma.done.wait [#allocation5], 768  }
  0x35   :  { %2895 = vsyncadd [#allocation5], 4294966528  ;;  %v4437_v0 = vmov 1   ;;  %v4455_v1 = vmov 3   ;;  %v3029_v2 = vld [vmem:[%s4417_s0] sm:$0xff]  ;;  %v3031_v3 = vld [vmem:[#allocation2 + $0x8] sm:$0xff] }
  0x36   :  { %2569 = vset.pattern.permute.xlu1 %v4437_v0  ;;  %2571 = vset.pattern.permute.xlu0 %v4455_v1  ;;  %s2903_s18 = smov 120   ;;  %v4435_v4 = vmov 2   ;;  %v4441_v5 = vmov 0   ;;  %v4433_v6 = vmov 4   ;;  %v4427_v7 = vmov 7   ;;  %s2908_s3 = smov 3  }
  0x37   :  { %69 = vrot.lane.b32.xlu0 %v3029_v2, %s2903_s18  ;;  %120 = vperm.xlu1 %2569, %v3031_v3   ;;  %v4429_v9 = vmov 6   ;;  %v4425_v10 = vmov 9   ;;  %v4431_v11 = vmov 8   ;;  %v4451_v12 = vmov 14   ;;  %s2919_s13 = smov 125   ;;  %s2920_s19 = smov 127  }
  0x38   :  { %v4447_v13 = vmov 5   ;;  %v4449_v14 = vmov 17   ;;  %v4453_v15 = vmov 10   ;;  %v4443_v16 = vmov 13   ;;  %s2921_s20 = smov 126   ;;  %s2922_s21 = smov 124  }
  0x39   :  { %v4439_v17 = vmov 11   ;;  %v4445_v18 = vmov 16   ;;  %vm95_vm0 = vcmask 23552   ;;  %vm98_vm1 = vcmask 89088   ;;  %v3091_v40 = vld [vmem:[#allocation2] sm:$0xff]  ;;  %s2926_s22 = smov 123  }
  0x3a   :  { %v4461_v41 = vmov 18   ;;  %v4459_v42 = vmov 12   ;;  %v4457_v43 = vmov 15   ;;  %vm821_vm10 = vcmask 64512   ;;  %s2927_s30 = smov 4  }
  0x3b   :  { %2570 = vset.pattern.permute.xlu1 %v4435_v4  ;;  %160 = vperm.xlu0 %2571, %v3031_v3   ;;  %vm960_vm11 = vcmask 56320  }
  0x3c   :  { %140 = vperm.xlu1 %2570, %v3031_v3  }
  0x3f   :  { %2573 = vset.pattern.permute.xlu0 %v4441_v5 }
  0x40   :  { %2572 = vset.pattern.permute.xlu1 %v4433_v6 }
  0x41   :  { %180 = vperm.xlu1 %2572, %v3031_v3  }
  0x45   :  { %2575 = vset.pattern.permute.xlu1 %v4427_v7 }
  0xa9   :  { %v70_v8 = vpop.permute.xlu0 %69 }
  0xaa   :  { %86 = vperm.xlu1 %2575, %v70_v8   ;;  %78 = vperm.xlu0 %2573, %v70_v8  }
  0xae   :  { %91 = vrot.lane.b32.xlu1 %v70_v8, %s2908_s3  ;;  %2574 = vset.pattern.permute.xlu0 %v4429_v9 }
  0xaf   :  { %280 = vperm.xlu0 %2574, %v3031_v3  }
  0xb2   :  { %300 = vperm.xlu1 %2575, %v3031_v3  }
  0xb3   :  { %2577 = vset.pattern.permute.xlu0 %v4425_v10 }
  0xb4   :  { %340 = vperm.xlu0 %2577, %v3031_v3  }
  0xb6   :  { %2576 = vset.pattern.permute.xlu1 %v4431_v11  ;;  %v121_v19 = vpop.permute.xlu1 %120 }
  0xb7   :  { %320 = vperm.xlu1 %2576, %v3031_v3  }
  0xb8   :  { %2583 = vset.pattern.permute.xlu0 %v4451_v12 }
  0xb9   :  { %248 = vperm.xlu0 %2583, %v3031_v3  }
  0xba   :  { %v161_v22 = vpop.permute.xlu0 %160 }
  0xbb   :  { %2578 = vset.pattern.permute.xlu1 %v4441_v5  ;;  %v141_v20 = vpop.permute.xlu1 %140 }
  0xbc   :  { %108 = vperm.xlu1 %2578, %v3031_v3  }
  0xbd   :  { %2585 = vset.pattern.permute.xlu0 %v4449_v14 }
  0xc0   :  { %2579 = vset.pattern.permute.xlu1 %v4447_v13  ;;  %v181_v21 = vpop.permute.xlu1 %180 }
  0xc1   :  { %268 = vperm.xlu1 %2579, %v3031_v3  }
  0xc5   :  { %2580 = vset.pattern.permute.xlu1 %v4453_v15 }
  0xc6   :  { %200 = vperm.xlu1 %2580, %v3031_v3  }
  0xca   :  { %2581 = vset.pattern.permute.xlu1 %v4443_v16 }
  0xcb   :  { %228 = vperm.xlu1 %2581, %v3031_v3  }
  0xcf   :  { %2582 = vset.pattern.permute.xlu1 %v4439_v17 }
  0xd0   :  { %360 = vperm.xlu1 %2582, %v3031_v3  }
  0xd4   :  { %2584 = vset.pattern.permute.xlu1 %v4445_v18 }
 0x129   :  { %v87_v23 = vpop.permute.xlu1 %86  ;;  %v79_v24 = vpop.permute.xlu0 %78 }
 0x12d   :  { %v92_v25 = vpop.permute.xlu1 %91 }
 0x12e   :  { %v97_v26 = vsel %vm95_vm0, %v79_v24, %v92_v25  ;;  %v281_v34 = vpop.permute.xlu0 %280 }
 0x12f   :  { %v3067_v27 = vsel %vm98_vm1, %v97_v26, %v87_v23 }
 0x130   :  { %v164_v28 = vmul.f32 %v161_v22, %v3067_v27  ;;  %v124_v29 = vmul.f32 %v121_v19, %v3067_v27  ;;  %v144_v32 = vmul.f32 %v141_v20, %v3067_v27  ;;  %v184_v36 = vmul.f32 %v181_v21, %v3067_v27 }
 0x131   :  { %v301_v30 = vpop.permute.xlu1 %300  ;;  %v284_v37 = vmul.f32 %v281_v34, %v3067_v27 }
 0x132   :  { %169 = vrot.lane.b32.xlu1 %v164_v28, %s2919_s13  ;;  %129 = vrot.lane.b32.xlu0 %v124_v29, %s2920_s19  ;;  %v304_v31 = vmul.f32 %v301_v30, %v3067_v27 }
 0x133   :  { %v341_v38 = vpop.permute.xlu0 %340 }
 0x134   :  { %v344_v39 = vmul.f32 %v341_v38, %v3067_v27 }
 0x136   :  { %v321_v33 = vpop.permute.xlu1 %320  ;;  %309 = vrot.lane.b32.xlu1 %v304_v31, %s2921_s20  ;;  %149 = vrot.lane.b32.xlu0 %v144_v32, %s2921_s20 }
 0x137   :  { %v324_v35 = vmul.f32 %v321_v33, %v3067_v27 }
 0x138   :  { %v249_v48 = vpop.permute.xlu0 %248 }
 0x13a   :  { %329 = vrot.lane.b32.xlu1 %v324_v35, %s2919_s13  ;;  %189 = vrot.lane.b32.xlu0 %v184_v36, %s2922_s21 }
 0x13b   :  { %v109_v44 = vpop.permute.xlu1 %108 }
 0x13c   :  { %v112_v51 = vmul.f32 %v109_v44, %v3067_v27 }
 0x13e   :  { %388 = vperm.xlu1 %2584, %v3031_v3   ;;  %289 = vrot.lane.b32.xlu0 %v284_v37, %s2920_s19 }
 0x140   :  { %v269_v45 = vpop.permute.xlu1 %268 }
 0x141   :  { %v272_v60 = vmul.f32 %v269_v45, %v3067_v27 }
 0x142   :  { %2586 = vset.pattern.permute.xlu1 %v4441_v5  ;;  %349 = vrot.lane.b32.xlu0 %v344_v39, %s2922_s21 }
 0x143   :  { %74 = vperm.xlu1 %2586, %v3029_v2  }
 0x145   :  { %v201_v46 = vpop.permute.xlu1 %200 }
 0x146   :  { %408 = vperm.xlu0 %2585, %v3031_v3  }
 0x147   :  { %2587 = vset.pattern.permute.xlu1 %v4427_v7 }
 0x148   :  { %82 = vperm.xlu1 %2587, %v3029_v2  }
 0x14a   :  { %2588 = vset.pattern.permute.xlu0 %v4437_v0  ;;  %v229_v47 = vpop.permute.xlu1 %228 }
 0x14b   :  { %116 = vperm.xlu0 %2588, %v3091_v40  }
 0x14c   :  { %2589 = vset.pattern.permute.xlu1 %v4435_v4 }
 0x14d   :  { %136 = vperm.xlu1 %2589, %v3091_v40  }
 0x14f   :  { %89 = vrot.lane.b32.xlu0 %v3029_v2, %s2908_s3  ;;  %v361_v49 = vpop.permute.xlu1 %360 }
 0x150   :  { %2592 = vset.pattern.permute.xlu0 %v4429_v9 }
 0x151   :  { %2590 = vset.pattern.permute.xlu1 %v4455_v1 }
 0x152   :  { %156 = vperm.xlu1 %2590, %v3091_v40  }
 0x153   :  { %276 = vperm.xlu0 %2592, %v3091_v40  }
 0x156   :  { %2591 = vset.pattern.permute.xlu1 %v4433_v6 }
 0x157   :  { %176 = vperm.xlu1 %2591, %v3091_v40   ;;  %2595 = vset.pattern.permute.xlu0 %v4425_v10 }
 0x158   :  { %336 = vperm.xlu0 %2595, %v3091_v40  }
 0x15b   :  { %2593 = vset.pattern.permute.xlu1 %v4427_v7 }
 0x15c   :  { %296 = vperm.xlu1 %2593, %v3091_v40   ;;  %2598 = vset.pattern.permute.xlu0 %v4461_v41 }
 0x160   :  { %2594 = vset.pattern.permute.xlu1 %v4431_v11 }
 0x161   :  { %316 = vperm.xlu1 %2594, %v3091_v40  }
 0x165   :  { %2596 = vset.pattern.permute.xlu1 %v4459_v42 }
 0x166   :  { %216 = vperm.xlu1 %2596, %v3031_v3  }
 0x16a   :  { %2597 = vset.pattern.permute.xlu1 %v4457_v43 }
 0x16b   :  { %376 = vperm.xlu1 %2597, %v3031_v3  }
 0x16f   :  { %2600 = vset.pattern.permute.xlu1 %v4447_v13 }
 0x1a4   :  { %v130_v50 = vpop.permute.xlu0 %129  ;;  %v170_v53 = vpop.permute.xlu1 %169 }
 0x1a5   :  { %v134_v52 = vadd.f32 %v130_v50, %v112_v51 }
 0x1a8   :  { %v150_v54 = vpop.permute.xlu0 %149  ;;  %v310_v59 = vpop.permute.xlu1 %309 }
 0x1a9   :  { %v154_v55 = vadd.f32 %v150_v54, %v134_v52 }
 0x1ab   :  { %v174_v56 = vadd.f32 %v170_v53, %v154_v55 }
 0x1ac   :  { %v190_v57 = vpop.permute.xlu0 %189  ;;  %v330_v21 = vpop.permute.xlu1 %329 }
 0x1ad   :  { %v194_v58 = vadd.f32 %v190_v57, %v174_v56 }
 0x1af   :  { %v204_v61 = vadd.f32 %v201_v46, %v194_v58  ;;  %v3173_v58 = vld [vmem:[#allocation4 + $0x8] sm:$0xff] }
 0x1b0   :  { %v290_v62 = vpop.permute.xlu0 %289 }
 0x1b1   :  { %vm206_vm2 = vcmp.gt.f32.partialorder %v204_v61, 0.0  ;;  %v208_v63 = vmul.f32 0.01, %v204_v61  ;;  %v294_v8 = vadd.f32 %v290_v62, %v272_v60 }
 0x1b3   :  { %v314_v19 = vadd.f32 %v310_v59, %v294_v8  ;;  %v3119_v20 = vsel %vm206_vm2, %v204_v61, %v208_v63 }
 0x1b4   :  { %v252_v22 = vmul.f32 %v249_v48, %v3119_v20  ;;  %v232_v23 = vmul.f32 %v229_v47, %v3119_v20  ;;  %v350_v25 = vpop.permute.xlu0 %349 }
 0x1b5   :  { %v334_v24 = vadd.f32 %v330_v21, %v314_v19 }
 0x1b6   :  { %257 = vrot.lane.b32.xlu1 %v252_v22, %s2921_s20  ;;  %237 = vrot.lane.b32.xlu0 %v232_v23, %s2920_s19 }
 0x1b7   :  { %v354_v26 = vadd.f32 %v350_v25, %v334_v24 }
 0x1b9   :  { %v364_v27 = vadd.f32 %v361_v49, %v354_v26 }
 0x1ba   :  { %428 = vperm.xlu0 %2598, %v3031_v3  }
 0x1bb   :  { %v368_v28 = vmul.f32 0.01, %v364_v27  ;;  %vm366_vm3 = vcmp.gt.f32.partialorder %v364_v27, 0.0 }
 0x1bd   :  { %v389_v29 = vpop.permute.xlu1 %388  ;;  %v3126_v30 = vsel %vm366_vm3, %v364_v27, %v368_v28 }
 0x1be   :  { %v392_v31 = vmul.f32 %v389_v29, %v3126_v30  ;;  %2599 = vset.pattern.permute.xlu0 %v4441_v5 }
 0x1bf   :  { %103 = vperm.xlu0 %2599, %v3091_v40  }
 0x1c0   :  { %397 = vrot.lane.b32.xlu1 %v392_v31, %s2920_s19 }
 0x1c2   :  { %v75_v32 = vpop.permute.xlu1 %74 }
 0x1c3   :  { %2601 = vset.pattern.permute.xlu0 %v4453_v15 }
 0x1c4   :  { %196 = vperm.xlu0 %2601, %v3091_v40  }
 0x1c5   :  { %v409_v33 = vpop.permute.xlu0 %408 }
 0x1c6   :  { %v412_v3 = vmul.f32 %v409_v33, %v3126_v30 }
 0x1c7   :  { %v83_v34 = vpop.permute.xlu1 %82 }
 0x1c8   :  { %417 = vrot.lane.b32.xlu1 %v412_v3, %s2921_s20  ;;  %2604 = vset.pattern.permute.xlu0 %v4451_v12 }
 0x1ca   :  { %v117_v35 = vpop.permute.xlu0 %116 }
 0x1cc   :  { %264 = vperm.xlu1 %2600, %v3091_v40   ;;  %v137_v36 = vpop.permute.xlu1 %136 }
 0x1ce   :  { %v90_v37 = vpop.permute.xlu0 %89 }
 0x1cf   :  { %v96_v38 = vsel %vm95_vm0, %v75_v32, %v90_v37 }
 0x1d0   :  { %v3140_v39 = vsel %vm98_vm1, %v96_v38, %v83_v34  ;;  %2602 = vset.pattern.permute.xlu1 %v4443_v16 }
 0x1d1   :  { %v157_v44 = vpop.permute.xlu1 %156  ;;  %v123_v45 = vmul.f32 %v117_v35, %v3140_v39  ;;  %v143_v46 = vmul.f32 %v137_v36, %v3140_v39 }
 0x1d2   :  { %v277_v48 = vpop.permute.xlu0 %276  ;;  %v163_v49 = vmul.f32 %v157_v44, %v3140_v39 }
 0x1d3   :  { %127 = vrot.lane.b32.xlu1 %v123_v45, %s2920_s19  ;;  %v283_v51 = vmul.f32 %v277_v48, %v3140_v39 }
 0x1d6   :  { %v177_v47 = vpop.permute.xlu1 %176 }
 0x1d7   :  { %v183_v50 = vmul.f32 %v177_v47, %v3140_v39  ;;  %147 = vrot.lane.b32.xlu1 %v143_v46, %s2921_s20  ;;  %v337_v52 = vpop.permute.xlu0 %336 }
 0x1d8   :  { %v343_v54 = vmul.f32 %v337_v52, %v3140_v39 }
 0x1d9   :  { %187 = vrot.lane.b32.xlu0 %v183_v50, %s2922_s21 }
 0x1db   :  { %167 = vrot.lane.b32.xlu1 %v163_v49, %s2919_s13  ;;  %v297_v53 = vpop.permute.xlu1 %296 }
 0x1dc   :  { %v303_v55 = vmul.f32 %v297_v53, %v3140_v39 }
 0x1dd   :  { %287 = vrot.lane.b32.xlu0 %v283_v51, %s2920_s19 }
 0x1df   :  { %224 = vperm.xlu1 %2602, %v3091_v40  }
 0x1e0   :  { %v317_v56 = vpop.permute.xlu1 %316 }
 0x1e1   :  { %244 = vperm.xlu0 %2604, %v3091_v40   ;;  %v323_v57 = vmul.f32 %v317_v56, %v3140_v39 }
 0x1e3   :  { %2603 = vset.pattern.permute.xlu1 %v4439_v17 }
 0x1e4   :  { %356 = vperm.xlu1 %2603, %v3091_v40  }
 0x1e5   :  { %347 = vrot.lane.b32.xlu0 %v343_v54, %s2922_s21  ;;  %v217_v59 = vpop.permute.xlu1 %216 }
 0x1e6   :  { %2606 = vset.pattern.permute.xlu0 %v4449_v14  ;;  %v220_v61 = vmul.f32 %v217_v59, %v3119_v20 }
 0x1e8   :  { %307 = vrot.lane.b32.xlu1 %v303_v55, %s2921_s20 }
 0x1e9   :  { %404 = vperm.xlu0 %2606, %v3091_v40   ;;  %2605 = vset.pattern.permute.xlu1 %v4445_v18 }
 0x1ea   :  { %v377_v60 = vpop.permute.xlu1 %376 }
 0x1eb   :  { %v380_v19 = vmul.f32 %v377_v60, %v3126_v30 }
 0x1ec   :  { %327 = vrot.lane.b32.xlu1 %v323_v57, %s2919_s13 }
 0x1ed   :  { %2608 = vset.pattern.permute.xlu0 %v4457_v43 }
 0x1ee   :  { %372 = vperm.xlu0 %2608, %v3091_v40  }
 0x1f0   :  { %384 = vperm.xlu1 %2605, %v3091_v40  }
 0x1f2   :  { %2609 = vset.pattern.permute.xlu0 %v4461_v41 }
 0x1f3   :  { %424 = vperm.xlu0 %2609, %v3091_v40  }
 0x1f4   :  { %2607 = vset.pattern.permute.xlu1 %v4459_v42 }
 0x1f7   :  { %2611 = vset.pattern.permute.xlu0 %v4435_v4 }
 0x1f8   :  { %516 = vperm.xlu0 %2611, %v3173_v58  }
 0x1fc   :  { %2613 = vset.pattern.permute.xlu0 %v4431_v11 }
 0x228   :  { %v238_v62 = vpop.permute.xlu0 %237  ;;  %v258_v8 = vpop.permute.xlu1 %257 }
 0x229   :  { %v242_v63 = vadd.f32 %v238_v62, %v220_v61 }
 0x22b   :  { %v262_v21 = vadd.f32 %v258_v8, %v242_v63 }
 0x22d   :  { %v382_v22 = vadd.f32 %v380_v19, %v262_v21 }
 0x232   :  { %v398_v23 = vpop.permute.xlu1 %397 }
 0x233   :  { %v402_v24 = vadd.f32 %v398_v23, %v382_v22 }
 0x239   :  { %v429_v27 = vpop.permute.xlu0 %428 }
 0x23a   :  { %v418_v25 = vpop.permute.xlu1 %417 }
 0x23b   :  { %v422_v26 = vadd.f32 %v418_v25, %v402_v24 }
 0x23d   :  { %v432_v28 = vadd.f32 %v429_v27, %v422_v26 }
 0x23e   :  { %v104_v33 = vpop.permute.xlu0 %103 }
 0x23f   :  { %2789 = vtanh.f32 %v432_v28  ;;  %v111_v3 = vmul.f32 %v104_v33, %v3140_v39 }
 0x243   :  { %v197_v34 = vpop.permute.xlu0 %196 }
 0x249   :  { %v2790_v29 = vpop.eup %2789 }
 0x24a   :  { %v442_v31 = vmul.f32 1.442695, %v2790_v29 }
 0x24b   :  { %v265_v32 = vpop.permute.xlu1 %264  ;;  %v188_v45 = vpop.permute.xlu0 %187 }
 0x24c   :  { %2791 = vpow2.f32 %v442_v31  ;;  %v271_v57 = vmul.f32 %v265_v32, %v3140_v39 }
 0x24f   :  { %v128_v20 = vpop.permute.xlu1 %127  ;;  %v288_v49 = vpop.permute.xlu0 %287 }
 0x250   :  { %v133_v30 = vadd.f32 %v128_v20, %v111_v3  ;;  %v293_v60 = vadd.f32 %v288_v49, %v271_v57 }
 0x253   :  { %v148_v35 = vpop.permute.xlu1 %147 }
 0x254   :  { %v153_v37 = vadd.f32 %v148_v35, %v133_v30 }
 0x256   :  { %v2792_v36 = vpop.eup %2791 }
 0x257   :  { %v168_v38 = vpop.permute.xlu1 %167  ;;  %v3181_v44 = vmul.f32 %v2792_v36, %v3029_v2 }
 0x258   :  { %v173_v46 = vadd.f32 %v168_v38, %v153_v37 }
 0x259   :  { %446 = vrot.lane.b32.xlu1 %v3181_v44, %s2899_s14 }
 0x25a   :  { %v193_v47 = vadd.f32 %v188_v45, %v173_v46 }
 0x25c   :  { %v203_v48 = vadd.f32 %v197_v34, %v193_v47 }
 0x25d   :  { %212 = vperm.xlu1 %2607, %v3091_v40  }
 0x25e   :  { %v225_v50 = vpop.permute.xlu1 %224  ;;  %vm205_vm4 = vcmp.gt.f32.partialorder %v203_v48, 0.0  ;;  %v207_v51 = vmul.f32 0.01, %v203_v48 }
 0x260   :  { %v209_v52 = vsel %vm205_vm4, %v203_v48, %v207_v51  ;;  %v245_v54 = vpop.permute.xlu0 %244 }
 0x261   :  { %v231_v53 = vmul.f32 %v225_v50, %v209_v52  ;;  %2610 = vset.pattern.permute.xlu1 %v4437_v0  ;;  %v251_v56 = vmul.f32 %v245_v54, %v209_v52 }
 0x263   :  { %v357_v55 = vpop.permute.xlu1 %356  ;;  %235 = vrot.lane.b32.xlu1 %v231_v53, %s2920_s19 }
 0x264   :  { %v348_v63 = vpop.permute.xlu0 %347 }
 0x267   :  { %v308_v59 = vpop.permute.xlu1 %307  ;;  %255 = vrot.lane.b32.xlu1 %v251_v56, %s2921_s20 }
 0x268   :  { %v313_v40 = vadd.f32 %v308_v59, %v293_v60  ;;  %v405_v25 = vpop.permute.xlu0 %404 }
 0x26b   :  { %v328_v61 = vpop.permute.xlu1 %327 }
 0x26c   :  { %v333_v62 = vadd.f32 %v328_v61, %v313_v40 }
 0x26d   :  { %v373_v31 = vpop.permute.xlu0 %372 }
 0x26e   :  { %v353_v8 = vadd.f32 %v348_v63, %v333_v62 }
 0x26f   :  { %v385_v22 = vpop.permute.xlu1 %384 }
 0x270   :  { %v363_v19 = vadd.f32 %v357_v55, %v353_v8 }
 0x272   :  { %vm365_vm5 = vcmp.gt.f32.partialorder %v363_v19, 0.0  ;;  %v367_v21 = vmul.f32 0.01, %v363_v19  ;;  %v425_v37 = vpop.permute.xlu0 %424 }
 0x274   :  { %v369_v23 = vsel %vm365_vm5, %v363_v19, %v367_v21 }
 0x275   :  { %v391_v24 = vmul.f32 %v385_v22, %v369_v23  ;;  %v411_v26 = vmul.f32 %v405_v25, %v369_v23  ;;  %v379_v3 = vmul.f32 %v373_v31, %v369_v23  ;;  %v3242_v25 = vld [vmem:[#allocation4] sm:$0xff] }
 0x277   :  { %395 = vrot.lane.b32.xlu1 %v391_v24, %s2920_s19 }
 0x27b   :  { %415 = vrot.lane.b32.xlu1 %v411_v26, %s2921_s20 }
 0x27f   :  { %496 = vperm.xlu1 %2610, %v3173_v58  }
 0x283   :  { %2612 = vset.pattern.permute.xlu1 %v4455_v1 }
 0x284   :  { %536 = vperm.xlu1 %2612, %v3173_v58  }
 0x288   :  { %2615 = vset.pattern.permute.xlu1 %v4457_v43 }
 0x2cb   :  { %v447_v39 = vpop.permute.xlu1 %446 }
 0x2cc   :  { %456 = vperm.xlu0 %2613, %v447_v39   ;;  %464 = vperm.xlu1 %2615, %v447_v39  }
 0x2d0   :  { %2614 = vset.pattern.permute.xlu0 %v4433_v6  ;;  %2616 = vset.pattern.permute.xlu1 %v4429_v9 }
 0x2d1   :  { %556 = vperm.xlu0 %2614, %v3173_v58   ;;  %656 = vperm.xlu1 %2616, %v3173_v58  }
 0x2d5   :  { %2618 = vset.pattern.permute.xlu0 %v4431_v11  ;;  %469 = vrot.lane.b32.xlu1 %v447_v39, %s2926_s22 }
 0x2d6   :  { %696 = vperm.xlu0 %2618, %v3173_v58   ;;  %2617 = vset.pattern.permute.xlu1 %v4427_v7 }
 0x2d9   :  { %676 = vperm.xlu1 %2617, %v3173_v58  }
 0x2da   :  { %2620 = vset.pattern.permute.xlu0 %v4441_v5 }
 0x2db   :  { %484 = vperm.xlu0 %2620, %v3173_v58  }
 0x2dc   :  { %v213_v27 = vpop.permute.xlu1 %212 }
 0x2dd   :  { %2619 = vset.pattern.permute.xlu1 %v4425_v10  ;;  %v219_v29 = vmul.f32 %v213_v27, %v209_v52  ;;  %v517_v52 = vpop.permute.xlu0 %516 }
 0x2de   :  { %716 = vperm.xlu1 %2619, %v3173_v58  }
 0x2df   :  { %2622 = vset.pattern.permute.xlu0 %v4453_v15 }
 0x2e0   :  { %v236_v28 = vpop.permute.xlu1 %235  ;;  %576 = vperm.xlu0 %2622, %v3173_v58  }
 0x2e1   :  { %v241_v32 = vadd.f32 %v236_v28, %v219_v29 }
 0x2e2   :  { %2621 = vset.pattern.permute.xlu1 %v4447_v13 }
 0x2e4   :  { %v256_v33 = vpop.permute.xlu1 %255  ;;  %2625 = vset.pattern.permute.xlu0 %v4451_v12 }
 0x2e5   :  { %v261_v20 = vadd.f32 %v256_v33, %v241_v32  ;;  %624 = vperm.xlu0 %2625, %v3173_v58  }
 0x2e7   :  { %v381_v34 = vadd.f32 %v379_v3, %v261_v20 }
 0x2e9   :  { %v396_v35 = vpop.permute.xlu1 %395  ;;  %2627 = vset.pattern.permute.xlu0 %v4449_v14 }
 0x2ea   :  { %v401_v30 = vadd.f32 %v396_v35, %v381_v34 }
 0x2ed   :  { %v416_v36 = vpop.permute.xlu1 %415 }
 0x2ee   :  { %v421_v38 = vadd.f32 %v416_v36, %v401_v30 }
 0x2f0   :  { %v431_v45 = vadd.f32 %v425_v37, %v421_v38 }
 0x2f2   :  { %2793 = vtanh.f32 %v431_v45 }
 0x2fc   :  { %v2794_v46 = vpop.eup %2793 }
 0x2fd   :  { %v435_v47 = vmul.f32 1.442695, %v2794_v46 }
 0x2fe   :  { %v497_v49 = vpop.permute.xlu1 %496 }
 0x2ff   :  { %2795 = vpow2.f32 %v435_v47 }
 0x303   :  { %v537_v50 = vpop.permute.xlu1 %536 }
 0x309   :  { %v2796_v48 = vpop.eup %2795 }
 0x30a   :  { %438 = vrot.lane.b32.xlu1 %v2796_v48, %s2899_s14 }
 0x30e   :  { %644 = vperm.xlu1 %2621, %v3173_v58  }
 0x312   :  { %2623 = vset.pattern.permute.xlu1 %v4443_v16 }
 0x313   :  { %604 = vperm.xlu1 %2623, %v3173_v58  }
 0x317   :  { %2624 = vset.pattern.permute.xlu1 %v4439_v17 }
 0x318   :  { %736 = vperm.xlu1 %2624, %v3173_v58  }
 0x31c   :  { %2626 = vset.pattern.permute.xlu1 %v4445_v18 }
 0x34b   :  { %v465_v51 = vpop.permute.xlu1 %464  ;;  %v457_v54 = vpop.permute.xlu0 %456 }
 0x350   :  { %v657_v53 = vpop.permute.xlu1 %656  ;;  %v557_v57 = vpop.permute.xlu0 %556 }
 0x354   :  { %v470_v55 = vpop.permute.xlu1 %469 }
 0x355   :  { %v474_v56 = vsel %vm95_vm0, %v457_v54, %v470_v55  ;;  %v697_v23 = vpop.permute.xlu0 %696 }
 0x356   :  { %v3224_v59 = vsel %vm98_vm1, %v474_v56, %v465_v51 }
 0x357   :  { %v500_v60 = vmul.f32 %v497_v49, %v3224_v59  ;;  %v560_v40 = vmul.f32 %v557_v57, %v3224_v59  ;;  %v520_v62 = vmul.f32 %v517_v52, %v3224_v59  ;;  %v660_v63 = vmul.f32 %v657_v53, %v3224_v59 }
 0x358   :  { %v677_v61 = vpop.permute.xlu1 %676  ;;  %v540_v21 = vmul.f32 %v537_v50, %v3224_v59  ;;  %v700_v24 = vmul.f32 %v697_v23, %v3224_v59 }
 0x359   :  { %505 = vrot.lane.b32.xlu1 %v500_v60, %s2920_s19  ;;  %565 = vrot.lane.b32.xlu0 %v560_v40, %s2922_s21  ;;  %v680_v22 = vmul.f32 %v677_v61, %v3224_v59 }
 0x35a   :  { %v485_v27 = vpop.permute.xlu0 %484 }
 0x35b   :  { %v488_v20 = vmul.f32 %v485_v27, %v3224_v59 }
 0x35d   :  { %v717_v8 = vpop.permute.xlu1 %716  ;;  %525 = vrot.lane.b32.xlu1 %v520_v62, %s2921_s20  ;;  %665 = vrot.lane.b32.xlu0 %v660_v63, %s2920_s19 }
 0x35e   :  { %v720_v19 = vmul.f32 %v717_v8, %v3224_v59 }
 0x35f   :  { %v577_v29 = vpop.permute.xlu0 %576 }
 0x361   :  { %545 = vrot.lane.b32.xlu1 %v540_v21, %s2919_s13  ;;  %725 = vrot.lane.b32.xlu0 %v720_v19, %s2922_s21 }
 0x364   :  { %v625_v32 = vpop.permute.xlu0 %624 }
 0x365   :  { %685 = vrot.lane.b32.xlu1 %v680_v22, %s2921_s20  ;;  %784 = vperm.xlu0 %2627, %v3173_v58  }
 0x369   :  { %705 = vrot.lane.b32.xlu1 %v700_v24, %s2919_s13  ;;  %2630 = vset.pattern.permute.xlu0 %v4437_v0 }
 0x36a   :  { %492 = vperm.xlu0 %2630, %v3242_v25  }
 0x36d   :  { %764 = vperm.xlu1 %2626, %v3173_v58  }
 0x36e   :  { %2634 = vset.pattern.permute.xlu0 %v4429_v9 }
 0x371   :  { %2628 = vset.pattern.permute.xlu1 %v4431_v11 }
 0x37c   :  { %v439_v26 = vpop.permute.xlu1 %438 }
 0x37d   :  { %v3251_v39 = vmul.f32 %v439_v26, %v3029_v2 }
 0x37f   :  { %467 = vrot.lane.b32.xlu0 %v3251_v39, %s2926_s22  ;;  %452 = vperm.xlu1 %2628, %v3251_v39  }
 0x383   :  { %652 = vperm.xlu0 %2634, %v3242_v25   ;;  %2629 = vset.pattern.permute.xlu1 %v4457_v43 }
 0x384   :  { %460 = vperm.xlu1 %2629, %v3251_v39  }
 0x387   :  { %2637 = vset.pattern.permute.xlu0 %v4425_v10 }
 0x388   :  { %712 = vperm.xlu0 %2637, %v3242_v25   ;;  %2631 = vset.pattern.permute.xlu1 %v4435_v4 }
 0x389   :  { %512 = vperm.xlu1 %2631, %v3242_v25  }
 0x38c   :  { %2640 = vset.pattern.permute.xlu0 %v4461_v41 }
 0x38d   :  { %2632 = vset.pattern.permute.xlu1 %v4455_v1  ;;  %v645_v2 = vpop.permute.xlu1 %644 }
 0x38e   :  { %532 = vperm.xlu1 %2632, %v3242_v25   ;;  %v648_v45 = vmul.f32 %v645_v2, %v3224_v59 }
 0x392   :  { %2633 = vset.pattern.permute.xlu1 %v4433_v6  ;;  %v605_v28 = vpop.permute.xlu1 %604 }
 0x393   :  { %552 = vperm.xlu1 %2633, %v3242_v25  }
 0x397   :  { %2635 = vset.pattern.permute.xlu1 %v4427_v7  ;;  %v737_v31 = vpop.permute.xlu1 %736 }
 0x398   :  { %672 = vperm.xlu1 %2635, %v3242_v25  }
 0x39c   :  { %2636 = vset.pattern.permute.xlu1 %v4431_v11 }
 0x39d   :  { %692 = vperm.xlu1 %2636, %v3242_v25  }
 0x3a1   :  { %2638 = vset.pattern.permute.xlu1 %v4459_v42 }
 0x3a2   :  { %592 = vperm.xlu1 %2638, %v3173_v58  }
 0x3a6   :  { %2639 = vset.pattern.permute.xlu1 %v4457_v43 }
 0x3a7   :  { %752 = vperm.xlu1 %2639, %v3173_v58  }
 0x3ab   :  { %2642 = vset.pattern.permute.xlu1 %v4447_v13 }
 0x3cb   :  { %v506_v33 = vpop.permute.xlu1 %505  ;;  %v566_v3 = vpop.permute.xlu0 %565 }
 0x3cc   :  { %v510_v35 = vadd.f32 %v506_v33, %v488_v20 }
 0x3cf   :  { %v526_v34 = vpop.permute.xlu1 %525  ;;  %v666_v38 = vpop.permute.xlu0 %665 }
 0x3d0   :  { %v530_v30 = vadd.f32 %v526_v34, %v510_v35  ;;  %v670_v48 = vadd.f32 %v666_v38, %v648_v45 }
 0x3d3   :  { %v546_v36 = vpop.permute.xlu1 %545  ;;  %v726_v57 = vpop.permute.xlu0 %725 }
 0x3d4   :  { %v550_v37 = vadd.f32 %v546_v36, %v530_v30 }
 0x3d6   :  { %v570_v46 = vadd.f32 %v566_v3, %v550_v37 }
 0x3d7   :  { %v686_v47 = vpop.permute.xlu1 %685 }
 0x3d8   :  { %v580_v49 = vadd.f32 %v577_v29, %v570_v46  ;;  %v690_v51 = vadd.f32 %v686_v47, %v670_v48 }
 0x3da   :  { %vm582_vm6 = vcmp.gt.f32.partialorder %v580_v49, 0.0  ;;  %v584_v50 = vmul.f32 0.01, %v580_v49 }
 0x3db   :  { %v706_v52 = vpop.permute.xlu1 %705 }
 0x3dc   :  { %v710_v53 = vadd.f32 %v706_v52, %v690_v51  ;;  %v3279_v54 = vsel %vm582_vm6, %v580_v49, %v584_v50 }
 0x3dd   :  { %v628_v55 = vmul.f32 %v625_v32, %v3279_v54  ;;  %v608_v56 = vmul.f32 %v605_v28, %v3279_v54 }
 0x3de   :  { %v730_v59 = vadd.f32 %v726_v57, %v710_v53 }
 0x3df   :  { %633 = vrot.lane.b32.xlu1 %v628_v55, %s2921_s20  ;;  %613 = vrot.lane.b32.xlu0 %v608_v56, %s2920_s19 }
 0x3e0   :  { %v740_v60 = vadd.f32 %v737_v31, %v730_v59 }
 0x3e2   :  { %v744_v40 = vmul.f32 0.01, %v740_v60  ;;  %vm742_vm7 = vcmp.gt.f32.partialorder %v740_v60, 0.0 }
 0x3e3   :  { %804 = vperm.xlu0 %2640, %v3173_v58  }
 0x3e4   :  { %v746_v61 = vsel %vm742_vm7, %v740_v60, %v744_v40  ;;  %v785_v8 = vpop.permute.xlu0 %784 }
 0x3e5   :  { %v788_v19 = vmul.f32 %v785_v8, %v746_v61 }
 0x3e7   :  { %2641 = vset.pattern.permute.xlu0 %v4441_v5 }
 0x3e8   :  { %479 = vperm.xlu0 %2641, %v3242_v25  }
 0x3e9   :  { %v493_v58 = vpop.permute.xlu0 %492 }
 0x3ec   :  { %v765_v62 = vpop.permute.xlu1 %764  ;;  %2643 = vset.pattern.permute.xlu0 %v4453_v15 }
 0x3ed   :  { %v768_v63 = vmul.f32 %v765_v62, %v746_v61  ;;  %572 = vperm.xlu0 %2643, %v3242_v25  }
 0x3ef   :  { %773 = vrot.lane.b32.xlu1 %v768_v63, %s2920_s19 }
 0x3f1   :  { %2646 = vset.pattern.permute.xlu0 %v4451_v12  ;;  %v468_v22 = vpop.permute.xlu0 %467 }
 0x3f3   :  { %793 = vrot.lane.b32.xlu1 %v788_v19, %s2921_s20 }
 0x3f7   :  { %640 = vperm.xlu1 %2642, %v3242_v25  }
 0x3fb   :  { %2644 = vset.pattern.permute.xlu1 %v4443_v16 }
 0x3fe   :  { %v453_v21 = vpop.permute.xlu1 %452 }
 0x3ff   :  { %v473_v23 = vsel %vm95_vm0, %v453_v21, %v468_v22 }
 0x402   :  { %v653_v20 = vpop.permute.xlu0 %652 }
 0x403   :  { %v461_v24 = vpop.permute.xlu1 %460 }
 0x404   :  { %v3297_v26 = vsel %vm98_vm1, %v473_v23, %v461_v24 }
 0x405   :  { %v499_v2 = vmul.f32 %v493_v58, %v3297_v26  ;;  %v659_v3 = vmul.f32 %v653_v20, %v3297_v26 }
 0x407   :  { %503 = vrot.lane.b32.xlu1 %v499_v2, %s2920_s19  ;;  %v713_v30 = vpop.permute.xlu0 %712 }
 0x408   :  { %v513_v27 = vpop.permute.xlu1 %512  ;;  %v719_v37 = vmul.f32 %v713_v30, %v3297_v26 }
 0x409   :  { %v519_v28 = vmul.f32 %v513_v27, %v3297_v26 }
 0x40b   :  { %523 = vrot.lane.b32.xlu1 %v519_v28, %s2921_s20 }
 0x40d   :  { %v533_v29 = vpop.permute.xlu1 %532 }
 0x40e   :  { %v539_v31 = vmul.f32 %v533_v29, %v3297_v26 }
 0x410   :  { %543 = vrot.lane.b32.xlu1 %v539_v31, %s2919_s13 }
 0x412   :  { %v553_v32 = vpop.permute.xlu1 %552 }
 0x413   :  { %v559_v33 = vmul.f32 %v553_v32, %v3297_v26 }
 0x414   :  { %600 = vperm.xlu1 %2644, %v3242_v25  }
 0x415   :  { %563 = vrot.lane.b32.xlu0 %v559_v33, %s2922_s21 }
 0x417   :  { %v673_v34 = vpop.permute.xlu1 %672 }
 0x418   :  { %2645 = vset.pattern.permute.xlu1 %v4439_v17  ;;  %v679_v35 = vmul.f32 %v673_v34, %v3297_v26 }
 0x419   :  { %732 = vperm.xlu1 %2645, %v3242_v25   ;;  %663 = vrot.lane.b32.xlu0 %v659_v3, %s2920_s19 }
 0x41c   :  { %v693_v36 = vpop.permute.xlu1 %692 }
 0x41d   :  { %683 = vrot.lane.b32.xlu1 %v679_v35, %s2921_s20  ;;  %620 = vperm.xlu0 %2646, %v3242_v25   ;;  %v699_v38 = vmul.f32 %v693_v36, %v3297_v26 }
 0x41e   :  { %2647 = vset.pattern.permute.xlu1 %v4445_v18 }
 0x421   :  { %703 = vrot.lane.b32.xlu1 %v699_v38, %s2919_s13  ;;  %723 = vrot.lane.b32.xlu0 %v719_v37, %s2922_s21  ;;  %v593_v45 = vpop.permute.xlu1 %592 }
 0x422   :  { %2648 = vset.pattern.permute.xlu0 %v4449_v14  ;;  %v596_v47 = vmul.f32 %v593_v45, %v3279_v54 }
 0x425   :  { %780 = vperm.xlu0 %2648, %v3242_v25   ;;  %760 = vperm.xlu1 %2647, %v3242_v25  }
 0x426   :  { %v753_v48 = vpop.permute.xlu1 %752 }
 0x427   :  { %v756_v52 = vmul.f32 %v753_v48, %v746_v61 }
 0x429   :  { %2650 = vset.pattern.permute.xlu0 %v4457_v43  ;;  %2649 = vset.pattern.permute.xlu1 %v4459_v42 }
 0x42a   :  { %748 = vperm.xlu0 %2650, %v3242_v25  }
 0x42e   :  { %2651 = vset.pattern.permute.xlu0 %v4461_v41 }
 0x42f   :  { %800 = vperm.xlu0 %2651, %v3242_v25  }
 0x433   :  { %2660 = vset.pattern.permute.xlu0 %v4437_v0 }
 0x451   :  { %v614_v46 = vpop.permute.xlu0 %613  ;;  %v634_v50 = vpop.permute.xlu1 %633 }
 0x452   :  { %v618_v49 = vadd.f32 %v614_v46, %v596_v47 }
 0x454   :  { %v638_v51 = vadd.f32 %v634_v50, %v618_v49 }
 0x456   :  { %v758_v55 = vadd.f32 %v756_v52, %v638_v51 }
 0x461   :  { %v774_v53 = vpop.permute.xlu1 %773 }
 0x462   :  { %v778_v56 = vadd.f32 %v774_v53, %v758_v55  ;;  %v805_v60 = vpop.permute.xlu0 %804  ;;  %v820_v55 = vld [vmem:[%s4422_s5] sm:$0xff] }
 0x463   :  { %2511 = vmatprep.subr.mxu0 %v820_v55 }
 0x464   :  { %2512 = vmatpush3.msra.mxu0 %v820_v55 }
 0x465   :  { %v794_v57 = vpop.permute.xlu1 %793 }
 0x466   :  { %v798_v59 = vadd.f32 %v794_v57, %v778_v56  ;;  %v3350_v56 = vld [vmem:[#allocation6] sm:$0xff]  ;;  %v3353_v57 = vld [vmem:[#allocation6 + $0x10] sm:$0xff] }
 0x467   :  { %v480_v8 = vpop.permute.xlu0 %479 }
 0x468   :  { %v808_v40 = vadd.f32 %v805_v60, %v798_v59  ;;  %v487_v61 = vmul.f32 %v480_v8, %v3297_v26  ;;  %v3356_v59 = vld [vmem:[#allocation6 + $0x18] sm:$0xff] }
 0x46a   :  { %2797 = vtanh.f32 %v808_v40 }
 0x46c   :  { %v573_v58 = vpop.permute.xlu0 %572 }
 0x474   :  { %v2798_v62 = vpop.eup %2797 }
 0x475   :  { %813 = vrot.lane.b32.xlu1 %v2798_v62, %s2899_s14  ;;  %v3364_v62 = vld [vmem:[#allocation6 + $0x8] sm:$0xff] }
 0x476   :  { %v641_v63 = vpop.permute.xlu1 %640 }
 0x477   :  { %v647_v3 = vmul.f32 %v641_v63, %v3297_v26 }
 0x479   :  { %588 = vperm.xlu1 %2649, %v3242_v25  }
 0x47a   :  { %v504_v54 = vpop.permute.xlu1 %503 }
 0x47b   :  { %v509_v21 = vadd.f32 %v504_v54, %v487_v61 }
 0x47d   :  { %2652 = vset.pattern.permute.xlu1 %v4441_v5 }
 0x47e   :  { %v524_v19 = vpop.permute.xlu1 %523 }
 0x47f   :  { %v529_v23 = vadd.f32 %v524_v19, %v509_v21 }
 0x482   :  { %v544_v22 = vpop.permute.xlu1 %543 }
 0x483   :  { %v549_v24 = vadd.f32 %v544_v22, %v529_v23 }
 0x487   :  { %v564_v2 = vpop.permute.xlu0 %563 }
 0x488   :  { %v569_v27 = vadd.f32 %v564_v2, %v549_v24 }
 0x48a   :  { %v579_v28 = vadd.f32 %v573_v58, %v569_v27 }
 0x48b   :  { %v664_v33 = vpop.permute.xlu0 %663 }
 0x48c   :  { %v583_v29 = vmul.f32 0.01, %v579_v28  ;;  %vm581_vm8 = vcmp.gt.f32.partialorder %v579_v28, 0.0  ;;  %v669_v30 = vadd.f32 %v664_v33, %v647_v3 }
 0x48e   :  { %v3334_v32 = vsel %vm581_vm8, %v579_v28, %v583_v29 }
 0x493   :  { %v601_v31 = vpop.permute.xlu1 %600 }
 0x494   :  { %v607_v25 = vmul.f32 %v601_v31, %v3334_v32 }
 0x496   :  { %611 = vrot.lane.b32.xlu1 %v607_v25, %s2920_s19 }
 0x498   :  { %v733_v20 = vpop.permute.xlu1 %732 }
 0x49c   :  { %v684_v34 = vpop.permute.xlu1 %683  ;;  %v621_v35 = vpop.permute.xlu0 %620 }
 0x49d   :  { %v627_v36 = vmul.f32 %v621_v35, %v3334_v32  ;;  %v689_v37 = vadd.f32 %v684_v34, %v669_v30 }
 0x49f   :  { %631 = vrot.lane.b32.xlu1 %v627_v36, %s2921_s20 }
 0x4a0   :  { %v704_v38 = vpop.permute.xlu1 %703  ;;  %v724_v46 = vpop.permute.xlu0 %723 }
 0x4a1   :  { %v709_v45 = vadd.f32 %v704_v38, %v689_v37 }
 0x4a3   :  { %v729_v47 = vadd.f32 %v724_v46, %v709_v45 }
 0x4a4   :  { %v761_v50 = vpop.permute.xlu1 %760  ;;  %v781_v52 = vpop.permute.xlu0 %780 }
 0x4a5   :  { %v739_v48 = vadd.f32 %v733_v20, %v729_v47 }
 0x4a7   :  { %v743_v49 = vmul.f32 0.01, %v739_v48  ;;  %vm741_vm9 = vcmp.gt.f32.partialorder %v739_v48, 0.0 }
 0x4a9   :  { %v3341_v51 = vsel %vm741_vm9, %v739_v48, %v743_v49  ;;  %v749_v61 = vpop.permute.xlu0 %748 }
 0x4aa   :  { %v767_v26 = vmul.f32 %v761_v50, %v3341_v51  ;;  %v787_v53 = vmul.f32 %v781_v52, %v3341_v51  ;;  %v755_v21 = vmul.f32 %v749_v61, %v3341_v51 }
 0x4ac   :  { %771 = vrot.lane.b32.xlu1 %v767_v26, %s2920_s19 }
 0x4ae   :  { %v801_v27 = vpop.permute.xlu0 %800 }
 0x4b0   :  { %791 = vrot.lane.b32.xlu1 %v787_v53, %s2921_s20 }
 0x4b4   :  { %967 = vperm.xlu1 %2652, %v3350_v56  }
 0x4b8   :  { %977 = vperm.xlu1 %2652, %v3353_v57  }
 0x4bc   :  { %2653 = vset.pattern.permute.xlu1 %v4437_v0 }
 0x4bd   :  { %1006 = vperm.xlu1 %2653, %v3356_v59  }
 0x4c1   :  { %2654 = vset.pattern.permute.xlu1 %v4455_v1 }
 0x4c2   :  { %1086 = vperm.xlu1 %2654, %v3356_v59  }
 0x4c6   :  { %2655 = vset.pattern.permute.xlu1 %v4433_v6 }
 0x4c7   :  { %1126 = vperm.xlu1 %2655, %v3356_v59  }
 0x4cb   :  { %2656 = vset.pattern.permute.xlu1 %v4427_v7 }
 0x4cc   :  { %1366 = vperm.xlu1 %2656, %v3356_v59  }
 0x4d0   :  { %2657 = vset.pattern.permute.xlu1 %v4431_v11 }
 0x4d1   :  { %1406 = vperm.xlu1 %2657, %v3356_v59  }
 0x4d5   :  { %2658 = vset.pattern.permute.xlu1 %v4441_v5 }
 0x4d6   :  { %982 = vperm.xlu1 %2658, %v3356_v59  }
 0x4da   :  { %2659 = vset.pattern.permute.xlu1 %v4437_v0 }
 0x4db   :  { %994 = vperm.xlu1 %2659, %v3350_v56  }
 0x4df   :  { %1002 = vperm.xlu1 %2659, %v3353_v57  }
 0x4e3   :  { %2662 = vset.pattern.permute.xlu1 %v4435_v4 }
 0x4e4   :  { %1038 = vperm.xlu1 %2662, %v3364_v62  }
 0x4e7   :  { %v814_v60 = vpop.permute.xlu1 %813 }
 0x4e8   :  { %v816_v40 = vsub.f32 %v3251_v39, %v814_v60  ;;  %2664 = vset.pattern.permute.xlu1 %v4455_v1 }
 0x4e9   :  { %1078 = vperm.xlu1 %2664, %v3364_v62  }
 0x4ea   :  { %818 = vrot.lane.b32.xlu0 %v816_v40, %s2903_s18 }
 0x4ed   :  { %1082 = vperm.xlu1 %2664, %v3353_v57  }
 0x4ee   :  { %998 = vperm.xlu0 %2660, %v3364_v62  }
 0x4f1   :  { %2665 = vset.pattern.permute.xlu1 %v4429_v9 }
 0x4f2   :  { %2661 = vset.pattern.permute.xlu0 %v4435_v4  ;;  %1318 = vperm.xlu1 %2665, %v3364_v62  }
 0x4f3   :  { %1046 = vperm.xlu0 %2661, %v3356_v59  }
 0x4f6   :  { %2666 = vset.pattern.permute.xlu1 %v4433_v6 }
 0x4f7   :  { %1042 = vperm.xlu0 %2661, %v3353_v57   ;;  %1122 = vperm.xlu1 %2666, %v3353_v57  }
 0x4f8   :  { %v589_v39 = vpop.permute.xlu1 %588 }
 0x4f9   :  { %v595_v54 = vmul.f32 %v589_v39, %v3334_v32 }
 0x4fb   :  { %2663 = vset.pattern.permute.xlu0 %v4429_v9  ;;  %2667 = vset.pattern.permute.xlu1 %v4447_v13 }
 0x4fc   :  { %1326 = vperm.xlu0 %2663, %v3356_v59   ;;  %1302 = vperm.xlu1 %2667, %v3356_v59  }
 0x500   :  { %1322 = vperm.xlu0 %2663, %v3353_v57   ;;  %2668 = vset.pattern.permute.xlu1 %v4427_v7 }
 0x501   :  { %1358 = vperm.xlu1 %2668, %v3364_v62  }
 0x504   :  { %2669 = vset.pattern.permute.xlu0 %v4427_v7 }
 0x505   :  { %1362 = vperm.xlu0 %2669, %v3353_v57   ;;  %2670 = vset.pattern.permute.xlu1 %v4431_v11 }
 0x506   :  { %1398 = vperm.xlu1 %2670, %v3364_v62  }
 0x508   :  { %v612_v63 = vpop.permute.xlu1 %611 }
 0x509   :  { %2671 = vset.pattern.permute.xlu0 %v4453_v15  ;;  %v617_v19 = vadd.f32 %v612_v63, %v595_v54 }
 0x50a   :  { %1166 = vperm.xlu0 %2671, %v3356_v59   ;;  %1402 = vperm.xlu1 %2670, %v3353_v57  }
 0x50e   :  { %2672 = vset.pattern.permute.xlu0 %v4425_v10  ;;  %2673 = vset.pattern.permute.xlu1 %v4425_v10 }
 0x50f   :  { %1446 = vperm.xlu0 %2672, %v3356_v59   ;;  %1438 = vperm.xlu1 %2673, %v3364_v62  }
 0x511   :  { %v632_v8 = vpop.permute.xlu1 %631 }
 0x512   :  { %v637_v58 = vadd.f32 %v632_v8, %v617_v19 }
 0x513   :  { %1442 = vperm.xlu0 %2672, %v3353_v57   ;;  %2674 = vset.pattern.permute.xlu1 %v4439_v17 }
 0x514   :  { %v757_v23 = vadd.f32 %v755_v21, %v637_v58  ;;  %1486 = vperm.xlu1 %2674, %v3356_v59  }
 0x517   :  { %2675 = vset.pattern.permute.xlu0 %v4451_v12 }
 0x518   :  { %1262 = vperm.xlu0 %2675, %v3356_v59   ;;  %2677 = vset.pattern.permute.xlu1 %v4445_v18 }
 0x519   :  { %1542 = vperm.xlu1 %2677, %v3356_v59  }
 0x51c   :  { %2676 = vset.pattern.permute.xlu0 %v4433_v6 }
 0x51d   :  { %1118 = vperm.xlu0 %2676, %v3364_v62   ;;  %2678 = vset.pattern.permute.xlu1 %v4435_v4 }
 0x51e   :  { %v772_v22 = vpop.permute.xlu1 %771  ;;  %1034 = vperm.xlu1 %2678, %v3350_v56  }
 0x51f   :  { %v777_v24 = vadd.f32 %v772_v22, %v757_v23 }
 0x521   :  { %1114 = vperm.xlu0 %2676, %v3350_v56  }
 0x522   :  { %v792_v2 = vpop.permute.xlu1 %791  ;;  %2679 = vset.pattern.permute.xlu1 %v4455_v1 }
 0x523   :  { %v797_v28 = vadd.f32 %v792_v2, %v777_v24  ;;  %1074 = vperm.xlu1 %2679, %v3350_v56  }
 0x525   :  { %v807_v29 = vadd.f32 %v801_v27, %v797_v28  ;;  %2682 = vset.pattern.permute.xlu0 %v4447_v13 }
 0x526   :  { %1298 = vperm.xlu0 %2682, %v3353_v57  }
 0x527   :  { %2799 = vtanh.f32 %v807_v29  ;;  %2680 = vset.pattern.permute.xlu1 %v4447_v13 }
 0x528   :  { %1294 = vperm.xlu1 %2680, %v3364_v62  }
 0x52a   :  { %2688 = vset.pattern.permute.xlu0 %v4455_v1 }
 0x52c   :  { %2681 = vset.pattern.permute.xlu1 %v4429_v9 }
 0x52d   :  { %1314 = vperm.xlu1 %2681, %v3350_v56  }
 0x531   :  { %v2800_v31 = vpop.eup %2799  ;;  %2683 = vset.pattern.permute.xlu1 %v4427_v7 }
 0x532   :  { %v811_v32 = vadd.f32 %v2800_v31, %v3181_v44  ;;  %1354 = vperm.xlu1 %2683, %v3350_v56  }
 0x533   :  { %v3437_v25 = vpop.permute.xlu1 %967 }
 0x534   :  { %2513 = vmatprep.mubr.msk.f32.mxu0 %vm821_vm10, %v811_v32 }
 0x536   :  { %2684 = vset.pattern.permute.xlu1 %v4453_v15 }
 0x537   :  { %v3439_v33 = vpop.permute.xlu1 %977 }
 0x53c   :  { %v3441_v20 = vpop.permute.xlu1 %1006 }
 0x541   :  { %v3443_v3 = vpop.permute.xlu1 %1086 }
 0x546   :  { %v3445_v34 = vpop.permute.xlu1 %1126 }
 0x54b   :  { %v3447_v35 = vpop.permute.xlu1 %1366 }
 0x550   :  { %v3449_v30 = vpop.permute.xlu1 %1406 }
 0x555   :  { %v3457_v38 = vpop.permute.xlu1 %982 }
 0x55a   :  { %v3463_v45 = vpop.permute.xlu1 %994 }
 0x55c   :  { %v819_v44 = vpop.permute.xlu0 %818 }
 0x55d   :  { %2514 = vmatmul.mubr.msk.f32.vlgmr.msra.gmra.mrb[0].mxu0 %vm821_vm10, %v819_v44 }
 0x55e   :  { %v3467_v46 = vpop.permute.xlu1 %1002 }
 0x563   :  { %v3471_v47 = vpop.permute.xlu1 %1038 }
 0x568   :  { %v3477_v48 = vpop.permute.xlu1 %1078 }
 0x56c   :  { %v3481_v49 = vpop.permute.xlu1 %1082 }
 0x56d   :  { %v3499_v39 = vpop.permute.xlu0 %998 }
 0x571   :  { %v3483_v50 = vpop.permute.xlu1 %1318 }
 0x572   :  { %v3503_v54 = vpop.permute.xlu0 %1046 }
 0x576   :  { %v3485_v51 = vpop.permute.xlu1 %1122  ;;  %v1043_v19 = vpop.permute.xlu0 %1042 }
 0x57b   :  { %v3487_v26 = vpop.permute.xlu1 %1302  ;;  %v3509_v58 = vpop.permute.xlu0 %1326 }
 0x57f   :  { %v3513_v22 = vpop.permute.xlu0 %1322 }
 0x580   :  { %v3489_v52 = vpop.permute.xlu1 %1358 }
 0x584   :  { %v3517_v24 = vpop.permute.xlu0 %1362 }
 0x585   :  { %v3491_v53 = vpop.permute.xlu1 %1398 }
 0x589   :  { %v3493_v55 = vpop.permute.xlu1 %1402  ;;  %v3521_v27 = vpop.permute.xlu0 %1166 }
 0x58e   :  { %v3495_v60 = vpop.permute.xlu1 %1438  ;;  %v3523_v29 = vpop.permute.xlu0 %1446 }
 0x592   :  { %v3530_v31 = vpop.permute.xlu0 %1442 }
 0x593   :  { %v3497_v40 = vpop.permute.xlu1 %1486 }
 0x597   :  { %v3537_v32 = vpop.permute.xlu0 %1262 }
 0x598   :  { %v3501_v63 = vpop.permute.xlu1 %1542 }
 0x59d   :  { %v3505_v8 = vpop.permute.xlu1 %1034 }
 0x5a2   :  { %v3507_v61 = vpop.permute.xlu1 %1074 }
 0x5a7   :  { %v3511_v21 = vpop.permute.xlu1 %1294 }
 0x5ac   :  { %v3515_v23 = vpop.permute.xlu1 %1314 }
 0x5b1   :  { %v3519_v2 = vpop.permute.xlu1 %1354 }
 0x630   :  { %v3451_v36 = vpop.f32.mrb[0].mxu0 }
 0x631   :  { %906 = vrot.lane.b32.xlu1 %v3451_v36, %s2922_s21  ;;  %v3455_v37 = vpop.f32.mrb[1].mxu0 }
 0x632   :  { %903 = vrot.lane.b32.xlu0 %v3455_v37, %s2922_s21 }
 0x635   :  { %1158 = vperm.xlu1 %2684, %v3364_v62  }
 0x636   :  { %929 = vperm.xlu0 %2688, %v3455_v37  }
 0x639   :  { %2685 = vset.pattern.permute.xlu1 %v4441_v5 }
 0x63a   :  { %921 = vperm.xlu1 %2685, %v3451_v36  }
 0x63e   :  { %2686 = vset.pattern.permute.xlu1 %v4455_v1 }
 0x63f   :  { %937 = vperm.xlu1 %2686, %v3451_v36  }
 0x643   :  { %948 = vrot.lane.b32.xlu1 %v3451_v36, %s2908_s3 }
 0x644   :  { %2687 = vset.pattern.permute.xlu1 %v4441_v5 }
 0x647   :  { %913 = vperm.xlu1 %2687, %v3455_v37  }
 0x64b   :  { %944 = vrot.lane.b32.xlu1 %v3455_v37, %s2908_s3 }
 0x6a3   :  { %v907_v28 = vpop.permute.xlu1 %906 }
 0x6a4   :  { %925 = vperm.xlu1 %2687, %v907_v28   ;;  %941 = vperm.xlu0 %2688, %v907_v28  }
 0x6a8   :  { %2691 = vset.pattern.permute.xlu1 %v4453_v15  ;;  %950 = vrot.lane.b32.xlu0 %v907_v28, %s2908_s3  ;;  %v3545_v28 = vpop.permute.xlu0 %1118 }
 0x6a9   :  { %1162 = vperm.xlu1 %2691, %v3353_v57   ;;  %2689 = vset.pattern.permute.xlu0 %v4431_v11 }
 0x6ac   :  { %1394 = vperm.xlu0 %2689, %v3350_v56   ;;  %v3552_v7 = vpop.permute.xlu0 %1114 }
 0x6ad   :  { %2692 = vset.pattern.permute.xlu1 %v4425_v10 }
 0x6ae   :  { %1434 = vperm.xlu1 %2692, %v3350_v56  }
 0x6b0   :  { %2690 = vset.pattern.permute.xlu0 %v4443_v16  ;;  %v3557_v11 = vpop.permute.xlu0 %1298 }
 0x6b1   :  { %1222 = vperm.xlu0 %2690, %v3356_v59  }
 0x6b2   :  { %2693 = vset.pattern.permute.xlu1 %v4443_v16 }
 0x6b3   :  { %1214 = vperm.xlu1 %2693, %v3364_v62  }
 0x6b4   :  { %v3541_v44 = vpop.permute.xlu1 %1158  ;;  %v904_v4 = vpop.permute.xlu0 %903 }
 0x6b5   :  { %1218 = vperm.xlu0 %2690, %v3353_v57  }
 0x6b7   :  { %2694 = vset.pattern.permute.xlu1 %v4439_v17 }
 0x6b8   :  { %1478 = vperm.xlu1 %2694, %v3364_v62  }
 0x6b9   :  { %2696 = vset.pattern.permute.xlu0 %v4439_v17  ;;  %v922_v10 = vpop.permute.xlu1 %921 }
 0x6ba   :  { %1482 = vperm.xlu0 %2696, %v3353_v57  }
 0x6bc   :  { %2695 = vset.pattern.permute.xlu1 %v4451_v12 }
 0x6bd   :  { %1254 = vperm.xlu1 %2695, %v3364_v62  }
 0x6be   :  { %2697 = vset.pattern.permute.xlu0 %v4449_v14  ;;  %v938_v9 = vpop.permute.xlu1 %937 }
 0x6bf   :  { %1582 = vperm.xlu0 %2697, %v3356_v59  }
 0x6c1   :  { %1258 = vperm.xlu1 %2695, %v3353_v57  }
 0x6c2   :  { %v949_v6 = vpop.permute.xlu1 %948 }
 0x6c3   :  { %1574 = vperm.xlu0 %2697, %v3364_v62   ;;  %v958_v0 = vsel %vm95_vm0, %v922_v10, %v949_v6 }
 0x6c4   :  { %v3567_v17 = vsel %vm960_vm11, %v958_v0, %v938_v9 }
 0x6c5   :  { %2698 = vset.pattern.permute.xlu1 %v4457_v43  ;;  %v1011_v0 = vmul.f32 %v3467_v46, %v3567_v17  ;;  %v1091_v6 = vmul.f32 %v3481_v49, %v3567_v17  ;;  %v1371_v10 = vmul.f32 %v3517_v24, %v3567_v17  ;;  %v1411_v49 = vmul.f32 %v3493_v55, %v3567_v17 }
 0x6c6   :  { %1518 = vperm.xlu1 %2698, %v3356_v59   ;;  %v914_v9 = vpop.permute.xlu1 %913 }
 0x6c7   :  { %2700 = vset.pattern.permute.xlu0 %v4441_v5  ;;  %v1051_v5 = vmul.f32 %v1043_v19, %v3567_v17 }
 0x6c8   :  { %972 = vperm.xlu0 %2700, %v3364_v62  }
 0x6ca   :  { %2699 = vset.pattern.permute.xlu1 %v4445_v18  ;;  %v945_v46 = vpop.permute.xlu1 %944 }
 0x6cb   :  { %1538 = vperm.xlu1 %2699, %v3353_v57   ;;  %v956_v19 = vsel %vm95_vm0, %v914_v9, %v945_v46 }
 0x6cc   :  { %917 = vperm.xlu0 %2700, %v904_v4  }
 0x6cf   :  { %2701 = vset.pattern.permute.xlu1 %v4449_v14 }
 0x6d0   :  { %1578 = vperm.xlu1 %2701, %v3353_v57   ;;  %946 = vrot.lane.b32.xlu0 %v904_v4, %s2908_s3  ;;  %s2929_s3 = smov 16  }
 0x6d1   :  { %2704 = vset.pattern.permute.xlu0 %v4447_v13 }
 0x6d4   :  { %2702 = vset.pattern.permute.xlu1 %v4461_v41  ;;  %1061 = vrot.lane.b32.xlu0 %v1051_v5, %s2921_s20  ;;  %v1131_v5 = vmul.f32 %v3485_v51, %v3567_v17  ;;  %v930_v51 = vpop.permute.xlu0 %929 }
 0x6d5   :  { %1622 = vperm.xlu1 %2702, %v3356_v59  }
 0x6d9   :  { %2703 = vset.pattern.permute.xlu1 %v4455_v1 }
 0x6da   :  { %933 = vperm.xlu1 %2703, %v904_v4   ;;  %v1331_v4 = vmul.f32 %v3513_v22, %v3567_v17  ;;  %v1451_v22 = vmul.f32 %v3530_v31, %v3567_v17 }
 0x6de   :  { %1021 = vrot.lane.b32.xlu1 %v1011_v0, %s2920_s19  ;;  %v3601_v0 = vsel %vm960_vm11, %v956_v19, %v930_v51 }
 0x6df   :  { %2706 = vset.pattern.permute.xlu1 %v4453_v15  ;;  %v1009_v24 = vmul.f32 %v3463_v45, %v3601_v0 }
 0x6e2   :  { %1101 = vrot.lane.b32.xlu1 %v1091_v6, %s2919_s13 }
 0x6e6   :  { %1141 = vrot.lane.b32.xlu1 %v1131_v5, %s2922_s21 }
 0x6ea   :  { %1341 = vrot.lane.b32.xlu1 %v1331_v4, %s2920_s19 }
 0x6ee   :  { %1381 = vrot.lane.b32.xlu1 %v1371_v10, %s2921_s20 }
 0x6f2   :  { %1421 = vrot.lane.b32.xlu1 %v1411_v49, %s2919_s13 }
 0x6f6   :  { %1461 = vrot.lane.b32.xlu1 %v1451_v22, %s2922_s21 }
 0x6fa   :  { %1017 = vrot.lane.b32.xlu1 %v1009_v24, %s2920_s19 }
 0x723   :  { %v942_v6 = vpop.permute.xlu0 %941  ;;  %v926_v55 = vpop.permute.xlu1 %925 }
 0x727   :  { %v951_v5 = vpop.permute.xlu0 %950 }
 0x728   :  { %v959_v4 = vsel %vm95_vm0, %v926_v55, %v951_v5  ;;  %v3608_v9 = vpop.permute.xlu1 %1162  ;;  %v1089_v55 = vmul.f32 %v3507_v61, %v3601_v0 }
 0x729   :  { %v3611_v10 = vsel %vm960_vm11, %v959_v4, %v942_v6 }
 0x72a   :  { %v1052_v31 = vmul.f32 %v3503_v54, %v3611_v10  ;;  %v1012_v46 = vmul.f32 %v3441_v20, %v3611_v10  ;;  %v1092_v19 = vmul.f32 %v3443_v3, %v3611_v10  ;;  %v1132_v54 = vmul.f32 %v3445_v34, %v3611_v10 }
 0x72b   :  { %v1395_v49 = vpop.permute.xlu0 %1394  ;;  %v1452_v20 = vmul.f32 %v3523_v29, %v3611_v10  ;;  %v1332_v3 = vmul.f32 %v3509_v58, %v3611_v10  ;;  %v1372_v29 = vmul.f32 %v3447_v35, %v3611_v10  ;;  %v1412_v4 = vmul.f32 %v3449_v30, %v3611_v10 }
 0x72c   :  { %1063 = vrot.lane.b32.xlu1 %v1052_v31, %s2921_s20  ;;  %1023 = vrot.lane.b32.xlu0 %v1012_v46, %s2920_s19  ;;  %v1049_v31 = vmul.f32 %v3505_v8, %v3601_v0  ;;  %v1129_v46 = vmul.f32 %v3552_v7, %v3601_v0  ;;  %v4464_v7 = vmov 11  }
 0x72d   :  { %v3619_v45 = vpop.permute.xlu1 %1434 }
 0x730   :  { %1103 = vrot.lane.b32.xlu1 %v1092_v19, %s2919_s13  ;;  %1290 = vperm.xlu0 %2704, %v3350_v56   ;;  %v3625_v51 = vpop.permute.xlu0 %1222 }
 0x732   :  { %v3631_v22 = vpop.permute.xlu1 %1214 }
 0x734   :  { %1143 = vrot.lane.b32.xlu1 %v1132_v54, %s2922_s21  ;;  %1463 = vrot.lane.b32.xlu0 %v1452_v20, %s2922_s21  ;;  %v3635_v24 = vpop.permute.xlu0 %1218  ;;  %v1329_v20 = vmul.f32 %v3515_v23, %v3601_v0 }
 0x735   :  { %2705 = vset.pattern.permute.xlu0 %v4459_v42 }
 0x737   :  { %v3640_v6 = vpop.permute.xlu1 %1478 }
 0x738   :  { %1343 = vrot.lane.b32.xlu1 %v1332_v3, %s2920_s19  ;;  %1198 = vperm.xlu0 %2705, %v3356_v59  }
 0x739   :  { %v3644_v34 = vpop.permute.xlu0 %1482 }
 0x73c   :  { %1383 = vrot.lane.b32.xlu1 %v1372_v29, %s2921_s20  ;;  %1097 = vrot.lane.b32.xlu0 %v1089_v55, %s2919_s13  ;;  %v3652_v5 = vpop.permute.xlu1 %1254 }
 0x73e   :  { %v3654_v58 = vpop.permute.xlu0 %1582 }
 0x740   :  { %1423 = vrot.lane.b32.xlu1 %v1412_v4, %s2919_s13  ;;  %1190 = vperm.xlu0 %2705, %v3364_v62   ;;  %v3660_v59 = vpop.permute.xlu1 %1258 }
 0x742   :  { %v3662_v35 = vpop.permute.xlu0 %1574 }
 0x744   :  { %1154 = vperm.xlu1 %2706, %v3350_v56   ;;  %1194 = vperm.xlu0 %2705, %v3353_v57  }
 0x745   :  { %v3666_v61 = vpop.permute.xlu1 %1518 }
 0x747   :  { %v3674_v30 = vpop.permute.xlu0 %972 }
 0x748   :  { %1057 = vrot.lane.b32.xlu1 %v1049_v31, %s2921_s20  ;;  %2709 = vset.pattern.permute.xlu0 %v4451_v12 }
 0x749   :  { %1250 = vperm.xlu0 %2709, %v3350_v56   ;;  %2707 = vset.pattern.permute.xlu1 %v4443_v16 }
 0x74a   :  { %v3678_v19 = vpop.permute.xlu1 %1538 }
 0x74b   :  { %v918_v54 = vpop.permute.xlu0 %917 }
 0x74c   :  { %1137 = vrot.lane.b32.xlu1 %v1129_v46, %s2922_s21  ;;  %v1369_v46 = vmul.f32 %v3519_v2, %v3601_v0 }
 0x74d   :  { %2710 = vset.pattern.permute.xlu0 %v4445_v18 }
 0x74e   :  { %1534 = vperm.xlu0 %2710, %v3364_v62  }
 0x74f   :  { %v3683_v8 = vpop.permute.xlu1 %1578  ;;  %v947_v29 = vpop.permute.xlu0 %946 }
 0x750   :  { %1210 = vperm.xlu1 %2707, %v3350_v56   ;;  %v957_v55 = vsel %vm95_vm0, %v918_v54, %v947_v29 }
 0x754   :  { %1337 = vrot.lane.b32.xlu1 %v1329_v20, %s2920_s19  ;;  %v3689_v3 = vpop.permute.xlu1 %1622  ;;  %v1409_v20 = vmul.f32 %v1395_v49, %v3601_v0 }
 0x755   :  { %2708 = vset.pattern.permute.xlu1 %v4464_v7 }
 0x758   :  { %1474 = vperm.xlu1 %2708, %v3350_v56  }
 0x759   :  { %v934_v4 = vpop.permute.xlu1 %933 }
 0x75a   :  { %v3695_v31 = vsel %vm960_vm11, %v957_v55, %v934_v4 }
 0x75b   :  { %v1010_v23 = vmul.f32 %v3499_v39, %v3695_v31  ;;  %v1090_v54 = vmul.f32 %v3477_v48, %v3695_v31  ;;  %v1130_v2 = vmul.f32 %v3545_v28, %v3695_v31  ;;  %v1449_v39 = vmul.f32 %v3619_v45, %v3601_v0 }
 0x75c   :  { %1377 = vrot.lane.b32.xlu1 %v1369_v46, %s2921_s20  ;;  %v1330_v49 = vmul.f32 %v3483_v50, %v3695_v31  ;;  %v1050_v48 = vmul.f32 %v3471_v47, %v3695_v31  ;;  %v1410_v28 = vmul.f32 %v3491_v53, %v3695_v31  ;;  %v1370_v45 = vmul.f32 %v3489_v52, %v3695_v31 }
 0x75d   :  { %1019 = vrot.lane.b32.xlu0 %v1010_v23, %s2920_s19  ;;  %2711 = vset.pattern.permute.xlu1 %v4457_v43  ;;  %v1450_v50 = vmul.f32 %v3495_v60, %v3695_v31  ;;  %v1022_v29 = vpop.permute.xlu1 %1021  ;;  %v988_v52 = vmul.f32 %v3457_v38, %v3611_v10 }
 0x760   :  { %1417 = vrot.lane.b32.xlu1 %v1409_v20, %s2919_s13  ;;  %v1062_v20 = vpop.permute.xlu0 %1061 }
 0x761   :  { %1099 = vrot.lane.b32.xlu0 %v1090_v54, %s2919_s13  ;;  %v1102_v55 = vpop.permute.xlu1 %1101 }
 0x764   :  { %1514 = vperm.xlu1 %2711, %v3353_v57  }
 0x765   :  { %1139 = vrot.lane.b32.xlu0 %v1130_v2, %s2922_s21  ;;  %v1142_v47 = vpop.permute.xlu1 %1141 }
 0x768   :  { %1457 = vrot.lane.b32.xlu1 %v1449_v39, %s2922_s21 }
 0x769   :  { %1339 = vrot.lane.b32.xlu0 %v1330_v49, %s2920_s19  ;;  %2713 = vset.pattern.permute.xlu1 %v4449_v14  ;;  %v1342_v4 = vpop.permute.xlu1 %1341 }
 0x76c   :  { %1059 = vrot.lane.b32.xlu1 %v1050_v48, %s2921_s20 }
 0x76d   :  { %1419 = vrot.lane.b32.xlu0 %v1410_v28, %s2919_s13  ;;  %v1382_v46 = vpop.permute.xlu1 %1381  ;;  %v1307_v28 = vmul.f32 %v3557_v11, %v3567_v17  ;;  %v987_v11 = vmul.f32 %v3439_v33, %v3567_v17 }
 0x770   :  { %1379 = vrot.lane.b32.xlu1 %v1370_v45, %s2921_s20 }
 0x771   :  { %1459 = vrot.lane.b32.xlu0 %v1450_v50, %s2922_s21  ;;  %v1422_v53 = vpop.permute.xlu1 %1421  ;;  %v1351_v50 = vadd.f32 %v1342_v4, %v1307_v28  ;;  %v1031_v4 = vadd.f32 %v1022_v29, %v987_v11  ;;  %v4466_v11 = vmov 1  }
 0x773   :  { %v1391_v13 = vadd.f32 %v1382_v46, %v1351_v50 }
 0x775   :  { %v1462_v23 = vpop.permute.xlu1 %1461  ;;  %v1431_v12 = vadd.f32 %v1422_v53, %v1391_v13 }
 0x777   :  { %v1471_v38 = vadd.f32 %v1462_v23, %v1431_v12 }
 0x779   :  { %v3732_v54 = vpop.permute.xlu1 %1017 }
 0x79e   :  { %v1064_v2 = vpop.permute.xlu1 %1063  ;;  %v1024_v39 = vpop.permute.xlu0 %1023 }
 0x79f   :  { %v1032_v60 = vadd.f32 %v1024_v39, %v988_v52  ;;  %v1308_v52 = vmul.f32 %v3487_v26, %v3611_v10  ;;  %v1071_v26 = vadd.f32 %v1062_v20, %v1031_v4 }
 0x7a1   :  { %v1072_v49 = vadd.f32 %v1064_v2, %v1032_v60  ;;  %v1111_v29 = vadd.f32 %v1102_v55, %v1071_v26 }
 0x7a2   :  { %v1104_v48 = vpop.permute.xlu1 %1103 }
 0x7a3   :  { %v1112_v45 = vadd.f32 %v1104_v48, %v1072_v49  ;;  %v1151_v53 = vadd.f32 %v1142_v47, %v1111_v29 }
 0x7a5   :  { %v1171_v55 = vadd.f32 %v3608_v9, %v1151_v53 }
 0x7a6   :  { %v1144_v16 = vpop.permute.xlu1 %1143 }
 0x7a7   :  { %v1152_v18 = vadd.f32 %v1144_v16, %v1112_v45  ;;  %v1179_v49 = vmul.f32 0.01, %v1171_v55  ;;  %vm1175_vm15 = vcmp.gt.f32.partialorder %v1171_v55, 0.0  ;;  %v4465_v45 = vmov 15  }
 0x7a9   :  { %v1172_v14 = vadd.f32 %v3521_v27, %v1152_v18  ;;  %v3784_v28 = vsel %vm1175_vm15, %v1171_v55, %v1179_v49  ;;  %vm2411_vm15 = vcmask 97280  }
 0x7aa   :  { %v1344_v15 = vpop.permute.xlu1 %1343 }
 0x7ab   :  { %vm1176_vm12 = vcmp.gt.f32.partialorder %v1172_v14, 0.0  ;;  %v1180_v1 = vmul.f32 0.01, %v1172_v14  ;;  %v1352_v13 = vadd.f32 %v1344_v15, %v1308_v52 }
 0x7ad   :  { %v3739_v43 = vsel %vm1176_vm12, %v1172_v14, %v1180_v1  ;;  %v1491_v1 = vadd.f32 %v3644_v34, %v1471_v38  ;;  %v1227_v38 = vmul.f32 %v3635_v24, %v3784_v28 }
 0x7ae   :  { %v1384_v2 = vpop.permute.xlu1 %1383  ;;  %v1268_v16 = vmul.f32 %v3537_v32, %v3739_v43  ;;  %v1228_v18 = vmul.f32 %v3625_v51, %v3739_v43 }
 0x7af   :  { %v3749_v27 = vpop.permute.xlu0 %1290  ;;  %v1392_v12 = vadd.f32 %v1384_v2, %v1352_v13  ;;  %v1499_v10 = vmul.f32 0.01, %v1491_v1  ;;  %vm1495_vm13 = vcmp.gt.f32.partialorder %v1491_v1, 0.0 }
 0x7b0   :  { %1279 = vrot.lane.b32.xlu0 %v1268_v16, %s2921_s20  ;;  %1239 = vrot.lane.b32.xlu1 %v1228_v18, %s2920_s19 }
 0x7b1   :  { %v3758_v34 = vsel %vm1495_vm13, %v1491_v1, %v1499_v10  ;;  %vm2930_vm13 = vmmov 0  }
 0x7b2   :  { %v1424_v14 = vpop.permute.xlu1 %1423  ;;  %v1547_v39 = vmul.f32 %v3678_v19, %v3758_v34  ;;  %v1587_v47 = vmul.f32 %v3683_v8, %v3758_v34 }
 0x7b3   :  { %v1432_v17 = vadd.f32 %v1424_v14, %v1392_v12  ;;  %v1464_v33 = vpop.permute.xlu0 %1463 }
 0x7b4   :  { %1570 = vperm.xlu1 %2713, %v3350_v56  }
 0x7b5   :  { %v1472_v32 = vadd.f32 %v1464_v33, %v1432_v17 }
 0x7b7   :  { %v1492_v15 = vadd.f32 %v3497_v40, %v1472_v32  ;;  %v3756_v51 = vpop.permute.xlu0 %1198  ;;  %v3817_v32 = vld [vmem:[%s4421_s4 + $0x18] sm:$0xff] }
 0x7b8   :  { %2714 = vset.pattern.permute.xlu1 %v4461_v41 }
 0x7b9   :  { %vm1496_vm14 = vcmp.gt.f32.partialorder %v1492_v15, 0.0  ;;  %v1500_v46 = vmul.f32 0.01, %v1492_v15  ;;  %1614 = vperm.xlu1 %2714, %v3364_v62  }
 0x7bb   :  { %v3762_v23 = vsel %vm1496_vm14, %v1492_v15, %v1500_v46  ;;  %v1098_v20 = vpop.permute.xlu0 %1097  ;;  %v4468_v46 = vmov 4   ;;  %vm2408_vm14 = vcmask 31744  }
 0x7bc   :  { %v1548_v40 = vmul.f32 %v3501_v63, %v3762_v23  ;;  %v985_v63 = vmul.f32 %v3437_v25, %v3601_v0  ;;  %v1588_v17 = vmul.f32 %v3654_v58, %v3762_v23  ;;  %v4467_v58 = vmov 2  }
 0x7bd   :  { %1557 = vrot.lane.b32.xlu1 %v1547_v39, %s2920_s19 }
 0x7be   :  { %1559 = vrot.lane.b32.xlu0 %v1548_v40, %s2920_s19  ;;  %2715 = vset.pattern.permute.xlu1 %v4459_v42  ;;  %v1029_v48 = vadd.f32 %v3732_v54, %v985_v63  ;;  %v1267_v54 = vmul.f32 %v3660_v59, %v3784_v28  ;;  %v1306_v40 = vmul.f32 %v3511_v21, %v3695_v31  ;;  %v4470_v21 = vmov 0  }
 0x7bf   :  { %v3772_v60 = vpop.permute.xlu0 %1190 }
 0x7c1   :  { %1597 = vrot.lane.b32.xlu1 %v1587_v47, %s2921_s20 }
 0x7c2   :  { %1530 = vperm.xlu0 %2710, %v3350_v56  }
 0x7c3   :  { %v1155_v19 = vpop.permute.xlu1 %1154  ;;  %v3780_v9 = vpop.permute.xlu0 %1194 }
 0x7c5   :  { %1186 = vperm.xlu1 %2715, %v3350_v56  }
 0x7c6   :  { %2712 = vset.pattern.permute.xlu0 %v4465_v45 }
 0x7c7   :  { %v1058_v8 = vpop.permute.xlu1 %1057  ;;  %1510 = vperm.xlu0 %2712, %v3364_v62  }
 0x7c8   :  { %v1069_v50 = vadd.f32 %v1058_v8, %v1029_v48  ;;  %v1251_v52 = vpop.permute.xlu0 %1250 }
 0x7c9   :  { %2717 = vset.pattern.permute.xlu1 %v4466_v11 }
 0x7ca   :  { %v1109_v25 = vadd.f32 %v1098_v20, %v1069_v50  ;;  %v4469_v20 = vmov 8  }
 0x7cb   :  { %v1138_v2 = vpop.permute.xlu1 %1137  ;;  %1237 = vrot.lane.b32.xlu0 %v1227_v38, %s2920_s19 }
 0x7cc   :  { %v1149_v16 = vadd.f32 %v1138_v2, %v1109_v25  ;;  %v3842_v2 = vld [vmem:[%s4421_s4 + $0x8] sm:$0xff] }
 0x7cd   :  { %v3794_v13 = vpop.permute.xlu0 %1534 }
 0x7ce   :  { %v1169_v18 = vadd.f32 %v1155_v19, %v1149_v16  ;;  %v4472_v16 = vmov 6  }
 0x7cf   :  { %v1211_v4 = vpop.permute.xlu1 %1210  ;;  %1277 = vrot.lane.b32.xlu0 %v1267_v54, %s2921_s20 }
 0x7d0   :  { %v1177_v62 = vmul.f32 0.01, %v1169_v18  ;;  %vm1173_vm1 = vcmp.gt.f32.partialorder %v1169_v18, 0.0 }
 0x7d1   :  { %v3801_v14 = vpop.permute.xlu0 %1019 }
 0x7d2   :  { %v3797_v24 = vsel %vm1173_vm1, %v1169_v18, %v1177_v62  ;;  %vm2413_vm1 = vcmask 130048  }
 0x7d3   :  { %v1225_v1 = vmul.f32 %v1211_v4, %v3797_v24  ;;  %v1338_v12 = vpop.permute.xlu1 %1337  ;;  %1506 = vperm.xlu0 %2712, %v3350_v56   ;;  %v1265_v33 = vmul.f32 %v1251_v52, %v3797_v24 }
 0x7d5   :  { %1233 = vrot.lane.b32.xlu1 %v1225_v1, %s2920_s19  ;;  %v3810_v26 = vpop.permute.xlu0 %1099  ;;  %v1524_v1 = vmul.f32 %v3666_v61, %v3762_v23  ;;  %v986_v23 = vmul.f32 %v3674_v30, %v3695_v31  ;;  %v1203_v31 = vmul.f32 %v3780_v9, %v3784_v28 }
 0x7d7   :  { %v1475_v59 = vpop.permute.xlu1 %1474  ;;  %2716 = vset.pattern.permute.xlu0 %v4461_v41 }
 0x7d8   :  { %1618 = vperm.xlu0 %2716, %v3353_v57  }
 0x7d9   :  { %1599 = vrot.lane.b32.xlu1 %v1588_v17, %s2921_s20  ;;  %v3820_v57 = vpop.permute.xlu0 %1139 }
 0x7db   :  { %v1378_v10 = vpop.permute.xlu1 %1377 }
 0x7dc   :  { %1610 = vperm.xlu0 %2716, %v3350_v56  }
 0x7dd   :  { %1273 = vrot.lane.b32.xlu1 %v1265_v33, %s2921_s20  ;;  %v1340_v56 = vpop.permute.xlu0 %1339  ;;  %v1305_v33 = vmul.f32 %v3749_v27, %v3601_v0  ;;  %v1030_v27 = vadd.f32 %v3801_v14, %v986_v23  ;;  %v4477_v23 = vmov 17  }
 0x7de   :  { %v1350_v47 = vadd.f32 %v1340_v56, %v1306_v40 }
 0x7df   :  { %v1418_v15 = vpop.permute.xlu1 %1417  ;;  %v1349_v56 = vadd.f32 %v1338_v12, %v1305_v33 }
 0x7e0   :  { %2718 = vset.pattern.permute.xlu0 %v4467_v58 }
 0x7e1   :  { %1798 = vperm.xlu0 %2718, %v3817_v32   ;;  %v1420_v55 = vpop.permute.xlu0 %1419  ;;  %v1389_v40 = vadd.f32 %v1378_v10, %v1349_v56 }
 0x7e3   :  { %v3823_v29 = vpop.permute.xlu1 %1514 }
 0x7e5   :  { %2720 = vset.pattern.permute.xlu0 %v4468_v46  ;;  %v1460_v48 = vpop.permute.xlu0 %1459 }
 0x7e6   :  { %1878 = vperm.xlu0 %2720, %v3817_v32  }
 0x7e7   :  { %v1458_v53 = vpop.permute.xlu1 %1457 }
 0x7ea   :  { %2723 = vset.pattern.permute.xlu0 %v4469_v20 }
 0x7eb   :  { %v1060_v39 = vpop.permute.xlu1 %1059 }
 0x7ef   :  { %v1380_v49 = vpop.permute.xlu1 %1379 }
 0x7f0   :  { %v1390_v19 = vadd.f32 %v1380_v49, %v1350_v47 }
 0x7f2   :  { %v1430_v63 = vadd.f32 %v1420_v55, %v1390_v19  ;;  %v1429_v55 = vadd.f32 %v1418_v15, %v1389_v40 }
 0x7f4   :  { %v1470_v8 = vadd.f32 %v1460_v48, %v1430_v63  ;;  %v1469_v49 = vadd.f32 %v1458_v53, %v1429_v55 }
 0x7f6   :  { %v1490_v50 = vadd.f32 %v3640_v6, %v1470_v8  ;;  %v4471_v6 = vmov 3   ;;  %v1489_v63 = vadd.f32 %v1475_v59, %v1469_v49  ;;  %v1070_v59 = vadd.f32 %v1060_v39, %v1030_v27 }
 0x7f8   :  { %v1498_v38 = vmul.f32 0.01, %v1490_v50  ;;  %vm1494_vm2 = vcmp.gt.f32.partialorder %v1490_v50, 0.0  ;;  %vm1493_vm3 = vcmp.gt.f32.partialorder %v1489_v63, 0.0 }
 0x7fa   :  { %v3831_v52 = vsel %vm1494_vm2, %v1490_v50, %v1498_v38  ;;  %v1110_v38 = vadd.f32 %v3810_v26, %v1070_v59  ;;  %vm2419_vm2 = vcmask 261120  }
 0x7fb   :  { %v1586_v25 = vmul.f32 %v3662_v35, %v3831_v52  ;;  %v1204_v35 = vmul.f32 %v3756_v51, %v3739_v43  ;;  %v1497_v51 = vmul.f32 0.01, %v1489_v63 }
 0x7fd   :  { %1595 = vrot.lane.b32.xlu0 %v1586_v25, %s2921_s20  ;;  %v3855_v50 = vsel %vm1493_vm3, %v1489_v63, %v1497_v51  ;;  %v1546_v51 = vmul.f32 %v3794_v13, %v3831_v52  ;;  %v4475_v13 = vmov 10  }
 0x801   :  { %2158 = vperm.xlu0 %2723, %v3817_v32  }
 0x805   :  { %2726 = vset.pattern.permute.xlu0 %v4470_v21 }
 0x806   :  { %1734 = vperm.xlu0 %2726, %v3817_v32  }
 0x80a   :  { %2728 = vset.pattern.permute.xlu0 %v4471_v6 }
 0x80b   :  { %1830 = vperm.xlu0 %2728, %v3842_v2  }
 0x80f   :  { %2731 = vset.pattern.permute.xlu0 %v4472_v16 }
 0x822   :  { %v1240_v54 = vpop.permute.xlu1 %1239  ;;  %v1280_v4 = vpop.permute.xlu0 %1279 }
 0x823   :  { %v1248_v18 = vadd.f32 %v1240_v54, %v1204_v35  ;;  %v1150_v54 = vadd.f32 %v3820_v57, %v1110_v38 }
 0x825   :  { %v1288_v62 = vadd.f32 %v1280_v4, %v1248_v18  ;;  %v1523_v4 = vmul.f32 %v3823_v29, %v3758_v34  ;;  %v1170_v9 = vadd.f32 %v3541_v44, %v1150_v54  ;;  %v4473_v29 = vmov 7  }
 0x827   :  { %v1528_v17 = vadd.f32 %v1524_v1, %v1288_v62  ;;  %v1178_v33 = vmul.f32 0.01, %v1170_v9  ;;  %vm1174_vm4 = vcmp.gt.f32.partialorder %v1170_v9, 0.0 }
 0x829   :  { %v3884_v56 = vsel %vm1174_vm4, %v1170_v9, %v1178_v33 }
 0x82a   :  { %v1226_v55 = vmul.f32 %v3631_v22, %v3884_v56  ;;  %v1266_v49 = vmul.f32 %v3652_v5, %v3884_v56 }
 0x830   :  { %v1560_v48 = vpop.permute.xlu0 %1559 }
 0x831   :  { %v1568_v14 = vadd.f32 %v1560_v48, %v1528_v17 }
 0x833   :  { %v1571_v47 = vpop.permute.xlu1 %1570 }
 0x834   :  { %v1585_v10 = vmul.f32 %v1571_v47, %v3855_v50  ;;  %v4474_v47 = vmov 9  }
 0x838   :  { %v3853_v19 = vpop.permute.xlu1 %1614 }
 0x83c   :  { %v1558_v43 = vpop.permute.xlu1 %1557 }
 0x840   :  { %v1598_v8 = vpop.permute.xlu1 %1597 }
 0x841   :  { %v1531_v61 = vpop.permute.xlu0 %1530 }
 0x842   :  { %v1545_v0 = vmul.f32 %v1531_v61, %v3855_v50  ;;  %v4476_v61 = vmov 14  }
 0x844   :  { %v3861_v12 = vpop.permute.xlu1 %1186  ;;  %1553 = vrot.lane.b32.xlu1 %v1545_v0, %s2920_s19 }
 0x845   :  { %v1201_v0 = vmul.f32 %v3861_v12, %v3797_v24 }
 0x846   :  { %v3865_v15 = vpop.permute.xlu0 %1510 }
 0x848   :  { %v3867_v53 = vpop.permute.xlu1 %1233  ;;  %1593 = vrot.lane.b32.xlu1 %v1585_v10, %s2921_s20 }
 0x849   :  { %v1245_v59 = vadd.f32 %v3867_v53, %v1201_v0  ;;  %v4479_v0 = vmov 16  }
 0x84a   :  { %v1238_v30 = vpop.permute.xlu0 %1237 }
 0x84b   :  { %v1247_v35 = vadd.f32 %v1238_v30, %v1203_v31 }
 0x84c   :  { %v1600_v25 = vpop.permute.xlu1 %1599  ;;  %1758 = vperm.xlu1 %2717, %v3817_v32  }
 0x84d   :  { %v1608_v39 = vadd.f32 %v1600_v25, %v1568_v14 }
 0x84e   :  { %v1278_v18 = vpop.permute.xlu0 %1277 }
 0x84f   :  { %v1628_v62 = vadd.f32 %v3689_v3, %v1608_v39  ;;  %v1287_v1 = vadd.f32 %v1278_v18, %v1247_v35 }
 0x850   :  { %2719 = vset.pattern.permute.xlu1 %v4471_v6  ;;  %v1274_v27 = vpop.permute.xlu1 %1273 }
 0x851   :  { %2801 = vtanh.f32 %v1628_v62  ;;  %v1527_v26 = vadd.f32 %v1523_v4, %v1287_v1  ;;  %1838 = vperm.xlu1 %2719, %v3817_v32   ;;  %v1285_v38 = vadd.f32 %v1274_v27, %v1245_v59  ;;  %v4481_v59 = vmov 13  }
 0x852   :  { %v1507_v28 = vpop.permute.xlu0 %1506 }
 0x853   :  { %v1567_v17 = vadd.f32 %v1558_v43, %v1527_v26  ;;  %v1521_v10 = vmul.f32 %v1507_v28, %v3855_v50 }
 0x855   :  { %2721 = vset.pattern.permute.xlu1 %v4472_v16  ;;  %v1607_v57 = vadd.f32 %v1598_v8, %v1567_v17  ;;  %v3906_v8 = vld [vmem:[%s4421_s4 + $0x10] sm:$0xff]  ;;  %v1525_v31 = vadd.f32 %v1521_v10, %v1285_v38 }
 0x856   :  { %2078 = vperm.xlu1 %2721, %v3817_v32  }
 0x857   :  { %v1619_v34 = vpop.permute.xlu0 %1618 }
 0x858   :  { %v1627_v3 = vadd.f32 %v1619_v34, %v1607_v57  ;;  %v1202_v34 = vmul.f32 %v3772_v60, %v3884_v56 }
 0x85a   :  { %2803 = vtanh.f32 %v1627_v3  ;;  %2722 = vset.pattern.permute.xlu1 %v4473_v29 }
 0x85b   :  { %v2802_v40 = vpop.eup %2801  ;;  %2118 = vperm.xlu1 %2722, %v3817_v32   ;;  %v1611_v39 = vpop.permute.xlu0 %1610 }
 0x85c   :  { %v1650_v44 = vmul.f32 1.442695, %v2802_v40 }
 0x85e   :  { %2805 = vpow2.f32 %v1650_v44  ;;  %v1522_v44 = vmul.f32 %v3865_v15, %v3831_v52  ;;  %v3980_v52 = vld [vmem:[%s4421_s4] sm:$0xff] }
 0x85f   :  { %1235 = vrot.lane.b32.xlu1 %v1226_v55, %s2920_s19 }
 0x860   :  { %2724 = vset.pattern.permute.xlu1 %v4474_v47  ;;  %v3933_v18 = vpop.permute.xlu0 %1798 }
 0x863   :  { %1275 = vrot.lane.b32.xlu1 %v1266_v49, %s2921_s20 }
 0x864   :  { %v2804_v63 = vpop.eup %2803 }
 0x865   :  { %v1643_v43 = vmul.f32 1.442695, %v2804_v63  ;;  %v3935_v4 = vpop.permute.xlu0 %1878 }
 0x867   :  { %2807 = vpow2.f32 %v1643_v43  ;;  %1555 = vrot.lane.b32.xlu1 %v1546_v51, %s2920_s19 }
 0x868   :  { %v2806_v48 = vpop.eup %2805 }
 0x869   :  { %v3898_v22 = vmul.f32 %v2806_v48, %v3451_v36 }
 0x86b   :  { %2198 = vperm.xlu1 %2724, %v3817_v32  }
 0x86f   :  { %2725 = vset.pattern.permute.xlu1 %v4466_v11  ;;  %v1596_v53 = vpop.permute.xlu0 %1595 }
 0x870   :  { %1750 = vperm.xlu1 %2725, %v3842_v2  }
 0x871   :  { %v2808_v5 = vpop.eup %2807 }
 0x872   :  { %1646 = vrot.lane.b32.xlu0 %v2808_v5, %s2927_s30  ;;  %v4478_v5 = vmov 5  }
 0x874   :  { %1754 = vperm.xlu1 %2725, %v3906_v8  }
 0x876   :  { %1657 = vrot.lane.b32.xlu0 %v3898_v22, %s2927_s30 }
 0x878   :  { %2727 = vset.pattern.permute.xlu1 %v4467_v58 }
 0x879   :  { %1790 = vperm.xlu1 %2727, %v3842_v2  }
 0x87a   :  { %2070 = vperm.xlu0 %2731, %v3842_v2  }
 0x87d   :  { %1794 = vperm.xlu1 %2727, %v3906_v8  }
 0x87e   :  { %2735 = vset.pattern.permute.xlu0 %v4475_v13 }
 0x87f   :  { %1918 = vperm.xlu0 %2735, %v3817_v32  }
 0x880   :  { %v3941_v1 = vpop.permute.xlu0 %2158 }
 0x881   :  { %2729 = vset.pattern.permute.xlu1 %v4471_v6 }
 0x882   :  { %1834 = vperm.xlu1 %2729, %v3906_v8  }
 0x883   :  { %2737 = vset.pattern.permute.xlu0 %v4474_v47 }
 0x884   :  { %2194 = vperm.xlu0 %2737, %v3906_v8  }
 0x885   :  { %v3946_v28 = vpop.permute.xlu0 %1734 }
 0x886   :  { %2730 = vset.pattern.permute.xlu1 %v4468_v46 }
 0x887   :  { %1870 = vperm.xlu1 %2730, %v3842_v2  }
 0x888   :  { %2739 = vset.pattern.permute.xlu0 %v4476_v61 }
 0x889   :  { %2014 = vperm.xlu0 %2739, %v3817_v32  }
 0x88a   :  { %v3951_v33 = vpop.permute.xlu0 %1830 }
 0x88d   :  { %2741 = vset.pattern.permute.xlu0 %v4477_v23 }
 0x88e   :  { %2334 = vperm.xlu0 %2741, %v3817_v32  }
 0x892   :  { %2745 = vset.pattern.permute.xlu0 %v4473_v29 }
 0x8b6   :  { %v1554_v30 = vpop.permute.xlu1 %1553 }
 0x8b7   :  { %v1565_v14 = vadd.f32 %v1554_v30, %v1525_v31 }
 0x8ba   :  { %v1594_v25 = vpop.permute.xlu1 %1593 }
 0x8bb   :  { %v1605_v35 = vadd.f32 %v1594_v25, %v1565_v14 }
 0x8bd   :  { %v1625_v54 = vadd.f32 %v1611_v39, %v1605_v35 }
 0x8bf   :  { %2809 = vtanh.f32 %v1625_v54 }
 0x8c9   :  { %v2810_v62 = vpop.eup %2809 }
 0x8ca   :  { %v1633_v24 = vmul.f32 1.442695, %v2810_v62 }
 0x8cb   :  { %v3937_v12 = vpop.permute.xlu1 %1758 }
 0x8cc   :  { %2811 = vpow2.f32 %v1633_v24 }
 0x8d0   :  { %v3939_v50 = vpop.permute.xlu1 %1838 }
 0x8d5   :  { %v3943_v26 = vpop.permute.xlu1 %2078 }
 0x8d6   :  { %v2812_v9 = vpop.eup %2811 }
 0x8d7   :  { %1636 = vrot.lane.b32.xlu1 %v2812_v9, %s2927_s30 }
 0x8da   :  { %v3948_v17 = vpop.permute.xlu1 %2118 }
 0x8db   :  { %1874 = vperm.xlu1 %2730, %v3906_v8  }
 0x8de   :  { %v1236_v57 = vpop.permute.xlu1 %1235 }
 0x8df   :  { %2732 = vset.pattern.permute.xlu1 %v4472_v16  ;;  %v1246_v3 = vadd.f32 %v1236_v57, %v1202_v34 }
 0x8e0   :  { %2074 = vperm.xlu1 %2732, %v3906_v8  }
 0x8e2   :  { %v1276_v40 = vpop.permute.xlu1 %1275 }
 0x8e3   :  { %v1286_v55 = vadd.f32 %v1276_v40, %v1246_v3 }
 0x8e4   :  { %2733 = vset.pattern.permute.xlu1 %v4473_v29  ;;  %v1647_v49 = vpop.permute.xlu0 %1646 }
 0x8e5   :  { %v3961_v63 = vmul.f32 %v3451_v36, %v1647_v49  ;;  %2110 = vperm.xlu1 %2733, %v3842_v2   ;;  %v1526_v43 = vadd.f32 %v1522_v44, %v1286_v55 }
 0x8e6   :  { %v1556_v60 = vpop.permute.xlu1 %1555 }
 0x8e7   :  { %v1566_v56 = vadd.f32 %v1556_v60, %v1526_v43  ;;  %1690 = vperm.xlu0 %2745, %v3961_v63  }
 0x8e8   :  { %v3971_v36 = vpop.permute.xlu0 %1657 }
 0x8e9   :  { %v1606_v51 = vadd.f32 %v1596_v53, %v1566_v56  ;;  %2114 = vperm.xlu1 %2733, %v3906_v8  }
 0x8eb   :  { %v1626_v48 = vadd.f32 %v3853_v19, %v1606_v51  ;;  %1701 = vrot.lane.b32.xlu0 %v3961_v63, %s2920_s19 }
 0x8ec   :  { %2747 = vset.pattern.permute.xlu0 %v4468_v46 }
 0x8ed   :  { %2813 = vtanh.f32 %v1626_v48  ;;  %2734 = vset.pattern.permute.xlu1 %v4469_v20 }
 0x8ee   :  { %2154 = vperm.xlu1 %2734, %v3906_v8  }
 0x8ef   :  { %1678 = vperm.xlu0 %2747, %v3971_v36  }
 0x8f2   :  { %2736 = vset.pattern.permute.xlu1 %v4474_v47 }
 0x8f3   :  { %2190 = vperm.xlu1 %2736, %v3842_v2   ;;  %2748 = vset.pattern.permute.xlu0 %v4467_v58 }
 0x8f4   :  { %1786 = vperm.xlu0 %2748, %v3980_v52  }
 0x8f7   :  { %v2814_v19 = vpop.eup %2813  ;;  %2738 = vset.pattern.permute.xlu1 %v4464_v7 }
 0x8f8   :  { %v1640_v15 = vmul.f32 1.442695, %v2814_v19  ;;  %2238 = vperm.xlu1 %2738, %v3817_v32   ;;  %2749 = vset.pattern.permute.xlu0 %v4478_v5 }
 0x8f9   :  { %2054 = vperm.xlu0 %2749, %v3817_v32  }
 0x8fa   :  { %2815 = vpow2.f32 %v1640_v15 }
 0x8fc   :  { %2740 = vset.pattern.permute.xlu1 %v4479_v0 }
 0x8fd   :  { %2294 = vperm.xlu1 %2740, %v3817_v32   ;;  %2050 = vperm.xlu0 %2749, %v3906_v8  }
 0x901   :  { %2742 = vset.pattern.permute.xlu1 %v4466_v11  ;;  %2754 = vset.pattern.permute.xlu0 %v4469_v20  ;;  %v4010_v11 = vpop.permute.xlu1 %2198 }
 0x902   :  { %1746 = vperm.xlu1 %2742, %v3980_v52   ;;  %2150 = vperm.xlu0 %2754, %v3842_v2  }
 0x904   :  { %v2816_v58 = vpop.eup %2815 }
 0x905   :  { %v3996_v27 = vmul.f32 %v2816_v58, %v3455_v37  ;;  %v4012_v20 = vpop.permute.xlu1 %1750 }
 0x906   :  { %2743 = vset.pattern.permute.xlu1 %v4470_v21  ;;  %2146 = vperm.xlu0 %2754, %v3980_v52  }
 0x907   :  { %4480 = vst [vmem:[#allocation9_spill] sm:$0xff] %v3996_v27  ;;  %1729 = vperm.xlu1 %2743, %v3906_v8  }
 0x909   :  { %v4014_v10 = vpop.permute.xlu1 %1754 }
 0x90a   :  { %2757 = vset.pattern.permute.xlu0 %v4481_v59 }
 0x90b   :  { %2744 = vset.pattern.permute.xlu1 %v4468_v46  ;;  %1974 = vperm.xlu0 %2757, %v3817_v32  }
 0x90c   :  { %1674 = vperm.xlu1 %2744, %v3961_v63  }
 0x90d   :  { %v4016_v38 = vpop.permute.xlu1 %1790 }
 0x90f   :  { %1970 = vperm.xlu0 %2757, %v3906_v8  }
 0x910   :  { %1654 = vrot.lane.b32.xlu1 %v3996_v27, %s2927_s30 }
 0x911   :  { %v4018_v30 = vpop.permute.xlu1 %1794 }
 0x913   :  { %2760 = vset.pattern.permute.xlu0 %v4468_v46  ;;  %v4028_v46 = vpop.permute.xlu0 %2070 }
 0x914   :  { %1866 = vperm.xlu0 %2760, %v3980_v52  }
 0x915   :  { %v1835_v31 = vpop.permute.xlu1 %1834 }
 0x917   :  { %v4032_v39 = vpop.permute.xlu0 %1918 }
 0x919   :  { %v4020_v14 = vpop.permute.xlu1 %1870 }
 0x949   :  { %v1637_v25 = vpop.permute.xlu1 %1636 }
 0x94a   :  { %v4023_v35 = vmul.f32 %v1637_v25, %v3455_v37  ;;  %v4037_v37 = vpop.permute.xlu0 %2194 }
 0x94c   :  { %1665 = vperm.xlu1 %2744, %v4023_v35  }
 0x94e   :  { %v4041_v24 = vpop.permute.xlu0 %2014 }
 0x950   :  { %2746 = vset.pattern.permute.xlu1 %v4473_v29 }
 0x951   :  { %1682 = vperm.xlu1 %2746, %v4023_v35  }
 0x952   :  { %v4050_v9 = vpop.permute.xlu0 %2334 }
 0x955   :  { %2750 = vset.pattern.permute.xlu1 %v4471_v6 }
 0x956   :  { %1826 = vperm.xlu1 %2750, %v3980_v52  }
 0x95a   :  { %1697 = vrot.lane.b32.xlu1 %v4023_v35, %s2920_s19  ;;  %v1875_v54 = vpop.permute.xlu1 %1874 }
 0x95b   :  { %2751 = vset.pattern.permute.xlu1 %v4478_v5 }
 0x95e   :  { %2046 = vperm.xlu1 %2751, %v3842_v2  }
 0x95f   :  { %v2075_v62 = vpop.permute.xlu1 %2074 }
 0x962   :  { %2752 = vset.pattern.permute.xlu1 %v4473_v29 }
 0x963   :  { %1694 = vperm.xlu1 %2752, %v3971_v36  }
 0x964   :  { %v4044_v6 = vpop.permute.xlu1 %2110 }
 0x966   :  { %v1691_v34 = vpop.permute.xlu0 %1690 }
 0x967   :  { %2753 = vset.pattern.permute.xlu1 %v4472_v16 }
 0x968   :  { %2066 = vperm.xlu1 %2753, %v3980_v52   ;;  %v4048_v53 = vpop.permute.xlu1 %2114 }
 0x96a   :  { %v1702_v16 = vpop.permute.xlu0 %1701 }
 0x96c   :  { %1703 = vrot.lane.b32.xlu1 %v3971_v36, %s2920_s19 }
 0x96d   :  { %2755 = vset.pattern.permute.xlu1 %v4473_v29  ;;  %v4055_v57 = vpop.permute.xlu1 %2154 }
 0x96e   :  { %v1679_v44 = vpop.permute.xlu0 %1678 }
 0x970   :  { %2106 = vperm.xlu1 %2755, %v3980_v52  }
 0x972   :  { %v4058_v3 = vpop.permute.xlu1 %2190 }
 0x973   :  { %v4069_v49 = vpop.permute.xlu0 %1786 }
 0x974   :  { %2756 = vset.pattern.permute.xlu1 %v4475_v13 }
 0x975   :  { %1910 = vperm.xlu1 %2756, %v3842_v2  }
 0x977   :  { %v4062_v40 = vpop.permute.xlu1 %2238 }
 0x978   :  { %v4075_v60 = vpop.permute.xlu0 %2054 }
 0x979   :  { %1914 = vperm.xlu1 %2756, %v3906_v8  }
 0x97c   :  { %v4065_v55 = vpop.permute.xlu1 %2294 }
 0x97d   :  { %2758 = vset.pattern.permute.xlu1 %v4474_v47  ;;  %v2051_v47 = vpop.permute.xlu0 %2050 }
 0x97e   :  { %2186 = vperm.xlu1 %2758, %v3980_v52  }
 0x981   :  { %v4071_v43 = vpop.permute.xlu1 %1746 }
 0x982   :  { %2759 = vset.pattern.permute.xlu1 %v4481_v59 }
 0x983   :  { %1966 = vperm.xlu1 %2759, %v3842_v2  }
 0x986   :  { %v4077_v56 = vpop.permute.xlu1 %1729 }
 0x987   :  { %2761 = vset.pattern.permute.xlu1 %v4464_v7 }
 0x988   :  { %2230 = vperm.xlu1 %2761, %v3842_v2  }
 0x98b   :  { %v1675_v51 = vpop.permute.xlu1 %1674 }
 0x98c   :  { %v1711_v48 = vsel %vm95_vm0, %v1675_v51, %v1702_v16  ;;  %2763 = vset.pattern.permute.xlu1 %v4473_v29 }
 0x98d   :  { %v4084_v36 = vsel %vm960_vm11, %v1711_v48, %v1691_v34 }
 0x98e   :  { %v4087_v19 = vmul.f32 %v2051_v47, %v4084_v36  ;;  %v1843_v58 = vmul.f32 %v1835_v31, %v4084_v36  ;;  %v1763_v29 = vmul.f32 %v4014_v10, %v4084_v36  ;;  %v1883_v25 = vmul.f32 %v1875_v54, %v4084_v36 }
 0x98f   :  { %v1655_v15 = vpop.permute.xlu1 %1654  ;;  %v1803_v34 = vmul.f32 %v4018_v30, %v4084_v36  ;;  %v2083_v31 = vmul.f32 %v2075_v62, %v4084_v36 }
 0x990   :  { %1686 = vperm.xlu1 %2763, %v1655_v15   ;;  %1669 = vperm.xlu0 %2760, %v1655_v15  }
 0x994   :  { %1699 = vrot.lane.b32.xlu1 %v1655_v15, %s2920_s19  ;;  %2762 = vset.pattern.permute.xlu0 %v4459_v42  ;;  %v2151_v42 = vpop.permute.xlu0 %2150 }
 0x995   :  { %1950 = vperm.xlu0 %2762, %v3817_v32   ;;  %2764 = vset.pattern.permute.xlu1 %v4476_v61 }
 0x998   :  { %1853 = vrot.lane.b32.xlu1 %v1843_v58, %s2919_s13 }
 0x999   :  { %1773 = vrot.lane.b32.xlu0 %v1763_v29, %s2920_s19 }
 0x99a   :  { %2765 = vset.pattern.permute.xlu0 %v4464_v7 }
 0x99c   :  { %1893 = vrot.lane.b32.xlu1 %v1883_v25, %s2922_s21 }
 0x99d   :  { %1813 = vrot.lane.b32.xlu0 %v1803_v34, %s2921_s20 }
 0x9a0   :  { %2093 = vrot.lane.b32.xlu1 %v2083_v31, %s2920_s19 }
 0x9cb   :  { %v4106_v10 = vpop.permute.xlu1 %1665 }
 0x9d0   :  { %v4108_v16 = vpop.permute.xlu1 %1682 }
 0x9d5   :  { %v4110_v51 = vpop.permute.xlu1 %1826 }
 0x9d9   :  { %v4112_v54 = vpop.permute.xlu1 %1697 }
 0x9dd   :  { %v4114_v47 = vpop.permute.xlu1 %2046 }
 0x9e2   :  { %v1695_v48 = vpop.permute.xlu1 %1694 }
 0x9e7   :  { %v4116_v30 = vpop.permute.xlu1 %2066 }
 0x9eb   :  { %v1704_v15 = vpop.permute.xlu1 %1703 }
 0x9ec   :  { %v1712_v58 = vsel %vm95_vm0, %v1679_v44, %v1704_v15 }
 0x9ed   :  { %v4120_v62 = vsel %vm960_vm11, %v1712_v58, %v1695_v48 }
 0x9ee   :  { %v2204_v29 = vmul.f32 %v4010_v11, %v4120_v62  ;;  %v1764_v25 = vmul.f32 %v3937_v12, %v4120_v62  ;;  %v1804_v31 = vmul.f32 %v3933_v18, %v4120_v62  ;;  %v1844_v11 = vmul.f32 %v3939_v50, %v4120_v62  ;;  %v4140_v12 = vpop.permute.xlu0 %2146 }
 0x9ef   :  { %v4126_v34 = vpop.permute.xlu1 %2106  ;;  %v1884_v18 = vmul.f32 %v3935_v4, %v4120_v62  ;;  %v2084_v50 = vmul.f32 %v3943_v26, %v4120_v62  ;;  %v2124_v4 = vmul.f32 %v3948_v17, %v4120_v62  ;;  %v2164_v26 = vmul.f32 %v3941_v1, %v4120_v62 }
 0x9f0   :  { %2215 = vrot.lane.b32.xlu0 %v2204_v29, %s2922_s21  ;;  %1775 = vrot.lane.b32.xlu1 %v1764_v25, %s2920_s19 }
 0x9f2   :  { %v4152_v15 = vpop.permute.xlu0 %1974 }
 0x9f4   :  { %2234 = vperm.xlu0 %2765, %v3906_v8   ;;  %1815 = vrot.lane.b32.xlu1 %v1804_v31, %s2921_s20  ;;  %v4134_v44 = vpop.permute.xlu1 %1910 }
 0x9f6   :  { %v4164_v25 = vpop.permute.xlu0 %1970 }
 0x9f8   :  { %2767 = vset.pattern.permute.xlu0 %v4479_v0  ;;  %1855 = vrot.lane.b32.xlu1 %v1844_v11, %s2919_s13  ;;  %v4142_v48 = vpop.permute.xlu1 %1914 }
 0x9f9   :  { %2286 = vperm.xlu0 %2767, %v3842_v2  }
 0x9fc   :  { %1895 = vrot.lane.b32.xlu1 %v1884_v18, %s2922_s21  ;;  %v2123_v18 = vmul.f32 %v4048_v53, %v4084_v36 }
 0x9fd   :  { %2769 = vset.pattern.permute.xlu0 %v4477_v23  ;;  %v4154_v58 = vpop.permute.xlu1 %2186 }
 0x9fe   :  { %2326 = vperm.xlu0 %2769, %v3842_v2  }
 0xa00   :  { %2095 = vrot.lane.b32.xlu1 %v2084_v50, %s2920_s19 }
 0xa02   :  { %2770 = vset.pattern.permute.xlu0 %v4470_v21  ;;  %v4161_v29 = vpop.permute.xlu1 %1966  ;;  %v4172_v21 = vpop.permute.xlu0 %1866 }
 0xa03   :  { %1724 = vperm.xlu0 %2770, %v3842_v2  }
 0xa04   :  { %2135 = vrot.lane.b32.xlu1 %v2124_v4, %s2921_s20 }
 0xa07   :  { %1719 = vperm.xlu0 %2770, %v3980_v52   ;;  %v4170_v31 = vpop.permute.xlu1 %2230 }
 0xa08   :  { %2175 = vrot.lane.b32.xlu1 %v2164_v26, %s2919_s13 }
 0xa0b   :  { %2774 = vset.pattern.permute.xlu0 %v4475_v13  ;;  %v2163_v13 = vmul.f32 %v4055_v57, %v4084_v36 }
 0xa0c   :  { %2006 = vperm.xlu1 %2764, %v3842_v2  }
 0xa0f   :  { %v1687_v17 = vpop.permute.xlu1 %1686  ;;  %v1670_v11 = vpop.permute.xlu0 %1669 }
 0xa10   :  { %2010 = vperm.xlu1 %2764, %v3906_v8  }
 0xa13   :  { %v1700_v1 = vpop.permute.xlu1 %1699 }
 0xa14   :  { %v1710_v50 = vsel %vm95_vm0, %v1670_v11, %v1700_v1  ;;  %2133 = vrot.lane.b32.xlu1 %v2123_v18, %s2921_s20  ;;  %v4181_v4 = vpop.permute.xlu0 %1950  ;;  %v1739_v11 = vmul.f32 %v4077_v56, %v4084_v36 }
 0xa15   :  { %v4184_v26 = vsel %vm960_vm11, %v1710_v50, %v1687_v17  ;;  %2766 = vset.pattern.permute.xlu1 %v4465_v45 }
 0xa16   :  { %v1842_v41 = vmul.f32 %v3951_v33, %v4184_v26  ;;  %v1882_v17 = vmul.f32 %v4020_v14, %v4184_v26  ;;  %v2203_v33 = vmul.f32 %v4037_v37, %v4084_v36  ;;  %v2162_v56 = vmul.f32 %v2151_v42, %v4184_v26 }
 0xa17   :  { %v1854_v18 = vpop.permute.xlu1 %1853  ;;  %v2202_v37 = vmul.f32 %v4058_v3, %v4184_v26  ;;  %v1762_v42 = vmul.f32 %v4012_v20, %v4184_v26  ;;  %v1802_v3 = vmul.f32 %v4016_v38, %v4184_v26 }
 0xa18   :  { %2173 = vrot.lane.b32.xlu1 %v2163_v13, %s2919_s13  ;;  %1851 = vrot.lane.b32.xlu0 %v1842_v41, %s2919_s13  ;;  %v1774_v53 = vpop.permute.xlu0 %1773  ;;  %v2082_v41 = vmul.f32 %v4028_v46, %v4184_v26  ;;  %v4483_v46 = vmov 12  }
 0xa19   :  { %v1783_v1 = vadd.f32 %v1774_v53, %v1739_v11 }
 0xa1b   :  { %v1894_v27 = vpop.permute.xlu1 %1893 }
 0xa1c   :  { %2270 = vperm.xlu1 %2766, %v3817_v32   ;;  %1891 = vrot.lane.b32.xlu0 %v1882_v17, %s2922_s21  ;;  %v1814_v57 = vpop.permute.xlu0 %1813 }
 0xa1d   :  { %v1823_v50 = vadd.f32 %v1814_v57, %v1783_v1 }
 0xa1f   :  { %v1863_v13 = vadd.f32 %v1854_v18, %v1823_v50  ;;  %v4245_v36 = vpop.permute.xlu1 %2093 }
 0xa20   :  { %2213 = vrot.lane.b32.xlu1 %v2203_v33, %s2922_s21  ;;  %2091 = vrot.lane.b32.xlu0 %v2082_v41, %s2920_s19  ;;  %v2060_v33 = vmul.f32 %v4075_v60, %v4120_v62 }
 0xa21   :  { %v4205_v14 = vadd.f32 %v1894_v27, %v1863_v13  ;;  %2768 = vset.pattern.permute.xlu1 %v4479_v0  ;;  %v4482_v27 = vmov 18  }
 0xa24   :  { %2290 = vperm.xlu1 %2768, %v3906_v8   ;;  %2171 = vrot.lane.b32.xlu0 %v2162_v56, %s2919_s13 }
 0xa28   :  { %2771 = vset.pattern.permute.xlu1 %v4477_v23  ;;  %2211 = vrot.lane.b32.xlu0 %v2202_v37, %s2922_s21 }
 0xa29   :  { %2330 = vperm.xlu1 %2771, %v3906_v8  }
 0xa2c   :  { %1906 = vperm.xlu0 %2774, %v3980_v52  }
 0xa2d   :  { %2772 = vset.pattern.permute.xlu1 %v4482_v27 }
 0xa2e   :  { %2374 = vperm.xlu1 %2772, %v3817_v32   ;;  %v1709_v32 = vsel %vm95_vm0, %v4106_v10, %v4112_v54 }
 0xa30   :  { %2776 = vset.pattern.permute.xlu0 %v4481_v59  ;;  %v4236_v59 = vsel %vm960_vm11, %v1709_v32, %v4108_v16  ;;  %v1740_v16 = vmul.f32 %v3946_v28, %v4120_v62 }
 0xa31   :  { %v1761_v20 = vmul.f32 %v4071_v43, %v4236_v59  ;;  %v1801_v38 = vmul.f32 %v4069_v49, %v4236_v59 }
 0xa32   :  { %2773 = vset.pattern.permute.xlu1 %v4478_v5  ;;  %v2122_v5 = vmul.f32 %v4044_v6, %v4184_v26 }
 0xa33   :  { %2042 = vperm.xlu1 %2773, %v3980_v52  }
 0xa37   :  { %1771 = vrot.lane.b32.xlu1 %v1762_v42, %s2920_s19  ;;  %v1841_v42 = vmul.f32 %v4110_v51, %v4236_v59  ;;  %v1881_v51 = vmul.f32 %v4172_v21, %v4236_v59 }
 0xa38   :  { %2775 = vset.pattern.permute.xlu1 %v4483_v46 }
 0xa3b   :  { %1811 = vrot.lane.b32.xlu1 %v1802_v3, %s2921_s20 }
 0xa3f   :  { %2131 = vrot.lane.b32.xlu1 %v2122_v5, %s2921_s20 }
 0xa43   :  { %1769 = vrot.lane.b32.xlu1 %v1761_v20, %s2920_s19 }
 0xa47   :  { %1809 = vrot.lane.b32.xlu1 %v1801_v38, %s2921_s20 }
 0xa62   :  { %v1776_v10 = vpop.permute.xlu1 %1775  ;;  %v2216_v32 = vpop.permute.xlu0 %2215 }
 0xa63   :  { %v1784_v54 = vadd.f32 %v1776_v10, %v1740_v16 }
 0xa66   :  { %v1816_v6 = vpop.permute.xlu1 %1815 }
 0xa67   :  { %v1824_v11 = vadd.f32 %v1816_v6, %v1784_v54  ;;  %v2161_v6 = vmul.f32 %v4140_v12, %v4236_v59 }
 0xa6a   :  { %v1856_v53 = vpop.permute.xlu1 %1855 }
 0xa6b   :  { %v1864_v18 = vadd.f32 %v1856_v53, %v1824_v11 }
 0xa6e   :  { %v1896_v17 = vpop.permute.xlu1 %1895 }
 0xa6f   :  { %v1904_v43 = vadd.f32 %v1896_v17, %v1864_v18 }
 0xa71   :  { %v1924_v1 = vadd.f32 %v4032_v39, %v1904_v43 }
 0xa72   :  { %v2096_v57 = vpop.permute.xlu1 %2095 }
 0xa73   :  { %vm1928_vm0 = vcmp.gt.f32.partialorder %v1924_v1, 0.0  ;;  %v1932_v49 = vmul.f32 0.01, %v1924_v1  ;;  %v2104_v56 = vadd.f32 %v2096_v57, %v2060_v33  ;;  %v4276_v10 = vpop.permute.xlu0 %2234 }
 0xa75   :  { %v4250_v50 = vsel %vm1928_vm0, %v1924_v1, %v1932_v49 }
 0xa76   :  { %v2136_v41 = vpop.permute.xlu1 %2135  ;;  %v2020_v28 = vmul.f32 %v4041_v24, %v4250_v50  ;;  %v1980_v13 = vmul.f32 %v4152_v15, %v4250_v50 }
 0xa77   :  { %v2144_v39 = vadd.f32 %v2136_v41, %v2104_v56 }
 0xa78   :  { %2031 = vrot.lane.b32.xlu0 %v2020_v28, %s2921_s20  ;;  %1991 = vrot.lane.b32.xlu1 %v1980_v13, %s2920_s19 }
 0xa7a   :  { %v2176_v37 = vpop.permute.xlu1 %2175 }
 0xa7b   :  { %v2184_v3 = vadd.f32 %v2176_v37, %v2144_v39  ;;  %v2058_v39 = vmul.f32 %v4114_v47, %v4184_v26 }
 0xa7c   :  { %1849 = vrot.lane.b32.xlu1 %v1841_v42, %s2919_s13 }
 0xa7d   :  { %v2224_v60 = vadd.f32 %v2216_v32, %v2184_v3 }
 0xa7f   :  { %v2244_v24 = vadd.f32 %v4062_v40, %v2224_v60  ;;  %v2081_v40 = vmul.f32 %v4116_v30, %v4236_v59 }
 0xa81   :  { %vm2248_vm5 = vcmp.gt.f32.partialorder %v2244_v24, 0.0  ;;  %v2252_v62 = vmul.f32 0.01, %v2244_v24 }
 0xa83   :  { %v2256_v15 = vsel %vm2248_vm5, %v2244_v24, %v2252_v62 }
 0xa84   :  { %v2340_v5 = vmul.f32 %v4050_v9, %v2256_v15  ;;  %v2300_v20 = vmul.f32 %v4065_v55, %v2256_v15  ;;  %v4280_v55 = vpop.permute.xlu0 %2286 }
 0xa86   :  { %2351 = vrot.lane.b32.xlu1 %v2340_v5, %s2921_s20  ;;  %2311 = vrot.lane.b32.xlu0 %v2300_v20, %s2920_s19 }
 0xa88   :  { %v4290_v16 = vpop.permute.xlu0 %2326 }
 0xa8a   :  { %1942 = vperm.xlu1 %2775, %v3842_v2   ;;  %1889 = vrot.lane.b32.xlu0 %v1881_v51, %s2922_s21 }
 0xa8b   :  { %v4272_v38 = vpop.permute.xlu1 %2006 }
 0xa8c   :  { %v1725_v53 = vpop.permute.xlu0 %1724 }
 0xa8d   :  { %v1738_v33 = vmul.f32 %v1725_v53, %v4184_v26 }
 0xa8e   :  { %2089 = vrot.lane.b32.xlu1 %v2081_v40, %s2920_s19  ;;  %1962 = vperm.xlu0 %2776, %v3980_v52  }
 0xa8f   :  { %v2011_v9 = vpop.permute.xlu1 %2010 }
 0xa90   :  { %v4308_v43 = vpop.permute.xlu0 %1719 }
 0xa92   :  { %1946 = vperm.xlu1 %2775, %v3906_v8   ;;  %2777 = vset.pattern.permute.xlu0 %v4464_v7  ;;  %v2121_v7 = vmul.f32 %v4126_v34, %v4236_v59  ;;  %v2201_v34 = vmul.f32 %v4154_v58, %v4236_v59 }
 0xa93   :  { %v2134_v21 = vpop.permute.xlu1 %2133  ;;  %2226 = vperm.xlu0 %2777, %v3980_v52  }
 0xa96   :  { %2778 = vset.pattern.permute.xlu1 %v4476_v61  ;;  %v1923_v61 = vadd.f32 %v4142_v48, %v4205_v14  ;;  %v1852_v14 = vpop.permute.xlu0 %1851 }
 0xa97   :  { %v2174_v30 = vpop.permute.xlu1 %2173  ;;  %2002 = vperm.xlu1 %2778, %v3980_v52   ;;  %2169 = vrot.lane.b32.xlu0 %v2161_v6, %s2919_s13 }
 0xa98   :  { %2780 = vset.pattern.permute.xlu0 %v4465_v45  ;;  %v1931_v18 = vmul.f32 0.01, %v1923_v61  ;;  %vm1927_vm6 = vcmp.gt.f32.partialorder %v1923_v61, 0.0 }
 0xa9a   :  { %v4313_v48 = vsel %vm1927_vm6, %v1923_v61, %v1931_v18 }
 0xa9b   :  { %v2271_v54 = vpop.permute.xlu1 %2270  ;;  %2129 = vrot.lane.b32.xlu1 %v2121_v7, %s2921_s20  ;;  %2266 = vperm.xlu0 %2780, %v3906_v8  }
 0xa9c   :  { %v4297_v12 = vmul.f32 %v2271_v54, %v2256_v15  ;;  %2779 = vset.pattern.permute.xlu1 %v4465_v45  ;;  %v1956_v54 = vmul.f32 %v4181_v4, %v4250_v50 }
 0xa9f   :  { %v2214_v11 = vpop.permute.xlu1 %2213  ;;  %2262 = vperm.xlu1 %2779, %v3842_v2   ;;  %2782 = vset.pattern.permute.xlu0 %v4477_v23  ;;  %v1979_v23 = vmul.f32 %v4164_v25, %v4313_v48  ;;  %v2103_v25 = vadd.f32 %v4245_v36, %v4087_v19 }
 0xaa0   :  { %2322 = vperm.xlu0 %2782, %v3980_v52  }
 0xaa1   :  { %v2143_v41 = vadd.f32 %v2134_v21, %v2103_v25 }
 0xaa3   :  { %2209 = vrot.lane.b32.xlu1 %v2201_v34, %s2922_s21  ;;  %v2291_v17 = vpop.permute.xlu1 %2290  ;;  %v2183_v28 = vadd.f32 %v2174_v30, %v2143_v41 }
 0xaa4   :  { %2781 = vset.pattern.permute.xlu1 %v4479_v0  ;;  %2783 = vset.pattern.permute.xlu0 %v4482_v27  ;;  %v2019_v0 = vmul.f32 %v2011_v9, %v4313_v48 }
 0xaa5   :  { %2366 = vperm.xlu0 %2783, %v3842_v2   ;;  %v1892_v2 = vpop.permute.xlu0 %1891  ;;  %v2223_v37 = vadd.f32 %v2214_v11, %v2183_v28 }
 0xaa7   :  { %2282 = vperm.xlu1 %2781, %v3980_v52   ;;  %v2243_v19 = vadd.f32 %v4276_v10, %v2223_v37 }
 0xaa8   :  { %v2331_v58 = vpop.permute.xlu1 %2330 }
 0xaa9   :  { %2785 = vset.pattern.permute.xlu0 %v4483_v46  ;;  %v2092_v46 = vpop.permute.xlu0 %2091  ;;  %v2251_v5 = vmul.f32 0.01, %v2243_v19  ;;  %vm2247_vm8 = vcmp.gt.f32.partialorder %v2243_v19, 0.0 }
 0xaab   :  { %1989 = vrot.lane.b32.xlu1 %v1979_v23, %s2920_s19  ;;  %v4343_v9 = vsel %vm2247_vm8, %v2243_v19, %v2251_v5 }
 0xaac   :  { %2784 = vset.pattern.permute.xlu1 %v4482_v27 }
 0xaad   :  { %v4322_v1 = vpop.permute.xlu1 %2374  ;;  %v2172_v3 = vpop.permute.xlu0 %2171 }
 0xaaf   :  { %2029 = vrot.lane.b32.xlu1 %v2019_v0, %s2921_s20 }
 0xab2   :  { %v4325_v57 = vpop.permute.xlu1 %2042 }
 0xab3   :  { %2370 = vperm.xlu1 %2784, %v3906_v8   ;;  %v2102_v8 = vadd.f32 %v2092_v46, %v2058_v39 }
 0xab6   :  { %v1772_v49 = vpop.permute.xlu1 %1771 }
 0xab7   :  { %2786 = vset.pattern.permute.xlu1 %v4465_v45  ;;  %v1782_v13 = vadd.f32 %v1772_v49, %v1738_v33  ;;  %v2212_v45 = vpop.permute.xlu0 %2211 }
 0xaba   :  { %v1812_v56 = vpop.permute.xlu1 %1811 }
 0xabb   :  { %v1822_v42 = vadd.f32 %v1812_v56, %v1782_v13 }
 0xabd   :  { %v1862_v32 = vadd.f32 %v1852_v14, %v1822_v42  ;;  %v1737_v14 = vmul.f32 %v4308_v43, %v4236_v59 }
 0xabe   :  { %v2132_v60 = vpop.permute.xlu1 %2131 }
 0xabf   :  { %v1902_v36 = vadd.f32 %v1892_v2, %v1862_v32  ;;  %v2142_v24 = vadd.f32 %v2132_v60, %v2102_v8  ;;  %v2057_v8 = vmul.f32 %v4325_v57, %v4236_v59 }
 0xac1   :  { %v1922_v62 = vadd.f32 %v4134_v44, %v1902_v36  ;;  %v2182_v15 = vadd.f32 %v2172_v3, %v2142_v24 }
 0xac2   :  { %v1770_v30 = vpop.permute.xlu1 %1769 }
 0xac3   :  { %vm1926_vm7 = vcmp.gt.f32.partialorder %v1922_v62, 0.0  ;;  %v1930_v20 = vmul.f32 0.01, %v1922_v62  ;;  %v2222_v51 = vadd.f32 %v2212_v45, %v2182_v15  ;;  %v1781_v2 = vadd.f32 %v1770_v30, %v1737_v14 }
 0xac5   :  { %v2242_v47 = vadd.f32 %v4170_v31, %v2222_v51  ;;  %v4337_v26 = vsel %vm1926_vm7, %v1922_v62, %v1930_v20  ;;  %v2299_v31 = vmul.f32 %v2291_v17, %v4343_v9 }
 0xac6   :  { %v2018_v40 = vmul.f32 %v4272_v38, %v4337_v26  ;;  %v1978_v10 = vmul.f32 %v4161_v29, %v4337_v26  ;;  %v2339_v29 = vmul.f32 %v2331_v58, %v4343_v9  ;;  %v1810_v7 = vpop.permute.xlu1 %1809 }
 0xac7   :  { %vm2246_vm9 = vcmp.gt.f32.partialorder %v2242_v47, 0.0  ;;  %v2250_v44 = vmul.f32 0.01, %v2242_v47  ;;  %v1821_v46 = vadd.f32 %v1810_v7, %v1781_v2 }
 0xac8   :  { %2027 = vrot.lane.b32.xlu0 %v2018_v40, %s2921_s20  ;;  %1987 = vrot.lane.b32.xlu1 %v1978_v10, %s2920_s19 }
 0xac9   :  { %v4347_v21 = vsel %vm2246_vm9, %v2242_v47, %v2250_v44 }
 0xaca   :  { %v2298_v6 = vmul.f32 %v4280_v55, %v4347_v21  ;;  %v2338_v38 = vmul.f32 %v4290_v16, %v4347_v21  ;;  %v1907_v55 = vpop.permute.xlu0 %1906 }
 0xacc   :  { %2309 = vrot.lane.b32.xlu0 %v2299_v31, %s2920_s19  ;;  %2307 = vrot.lane.b32.xlu1 %v2298_v6, %s2920_s19 }
 0xad0   :  { %2349 = vrot.lane.b32.xlu0 %v2339_v29, %s2921_s20  ;;  %2347 = vrot.lane.b32.xlu1 %v2338_v38, %s2921_s20 }
 0xad4   :  { %1938 = vperm.xlu0 %2785, %v3980_v52  }
 0xad8   :  { %2788 = vset.pattern.permute.xlu0 %v4482_v27 }
 0xaea   :  { %v1992_v61 = vpop.permute.xlu1 %1991  ;;  %v2032_v11 = vpop.permute.xlu0 %2031 }
 0xaeb   :  { %v2000_v53 = vadd.f32 %v1992_v61, %v1956_v54 }
 0xaed   :  { %v2040_v34 = vadd.f32 %v2032_v11, %v2000_v53 }
 0xaee   :  { %v1850_v18 = vpop.permute.xlu1 %1849 }
 0xaef   :  { %v2280_v16 = vadd.f32 %v4297_v12, %v2040_v34  ;;  %v1861_v50 = vadd.f32 %v1850_v18, %v1821_v46  ;;  %v2417_v46 = vld [vmem:[%s4423_s6 + $0x10] sm:$0xff] }
 0xaf8   :  { %v2312_v17 = vpop.permute.xlu0 %2311  ;;  %v2352_v58 = vpop.permute.xlu1 %2351 }
 0xaf9   :  { %v2320_v23 = vadd.f32 %v2312_v17, %v2280_v16 }
 0xafb   :  { %v2360_v0 = vadd.f32 %v2352_v58, %v2320_v23 }
 0xafc   :  { %v1890_v4 = vpop.permute.xlu0 %1889 }
 0xafd   :  { %v2380_v25 = vadd.f32 %v4322_v1, %v2360_v0  ;;  %v1901_v49 = vadd.f32 %v1890_v4, %v1861_v50  ;;  %v2928_v4 = vmov 0.0|0.0  }
 0xafe   :  { %2527 = vmatprep.subr.bf16.mxu1 %v2928_v4 }
 0xaff   :  { %2817 = vtanh.f32 %v2380_v25  ;;  %v1921_v33 = vadd.f32 %v1907_v55, %v1901_v49  ;;  %v2418_v49 = vld [vmem:[%s4423_s6 + $0x18] sm:$0xff] }
 0xb01   :  { %v1929_v12 = vmul.f32 0.01, %v1921_v33  ;;  %vm1925_vm11 = vcmp.gt.f32.partialorder %v1921_v33, 0.0 }
 0xb03   :  { %v4369_v43 = vsel %vm1925_vm11, %v1921_v33, %v1929_v12  ;;  %v2531_v33 = vpack.c.bf16 %v2418_v49, %v2417_v46 }
 0xb09   :  { %v2818_v41 = vpop.eup %2817  ;;  %v1943_v28 = vpop.permute.xlu1 %1942 }
 0xb0a   :  { %2393 = vrot.lane.b32.xlu1 %v2818_v41, %s2927_s30  ;;  %v1954_v29 = vmul.f32 %v1943_v28, %v4337_v26 }
 0xb0d   :  { %v2090_v13 = vpop.permute.xlu1 %2089  ;;  %v1963_v56 = vpop.permute.xlu0 %1962 }
 0xb0e   :  { %2258 = vperm.xlu1 %2786, %v3980_v52   ;;  %v1977_v1 = vmul.f32 %v1963_v56, %v4369_v43  ;;  %v2101_v60 = vadd.f32 %v2090_v13, %v2057_v8  ;;  %v2825_v13 = vld [vmem:[%s4417_s0] sm:$0xff]  ;;  %v2931_v56 = vmov 0.0  }
 0xb0f   :  { %2524 = vmatprep.mubr.msk.f32.mxu1 %vm2930_vm13, %v2931_v56 }
 0xb11   :  { %v1947_v39 = vpop.permute.xlu1 %1946 }
 0xb12   :  { %1985 = vrot.lane.b32.xlu1 %v1977_v1, %s2920_s19  ;;  %v2227_v42 = vpop.permute.xlu0 %2226  ;;  %v1955_v6 = vmul.f32 %v1947_v39, %v4313_v48 }
 0xb13   :  { %2787 = vset.pattern.permute.xlu1 %v4482_v27 }
 0xb16   :  { %v2003_v37 = vpop.permute.xlu1 %2002  ;;  %2362 = vperm.xlu1 %2787, %v3980_v52   ;;  %v2170_v19 = vpop.permute.xlu0 %2169 }
 0xb17   :  { %v2017_v3 = vmul.f32 %v2003_v37, %v4369_v43 }
 0xb19   :  { %2025 = vrot.lane.b32.xlu0 %v2017_v3, %s2921_s20 }
 0xb1a   :  { %v2130_v32 = vpop.permute.xlu1 %2129  ;;  %v2267_v45 = vpop.permute.xlu0 %2266 }
 0xb1b   :  { %v2141_v36 = vadd.f32 %v2130_v32, %v2101_v60  ;;  %v2275_v61 = vmul.f32 %v2267_v45, %v4343_v9  ;;  %v2415_v9 = vld [vmem:[%s4423_s6] sm:$0xff] }
 0xb1d   :  { %v2181_v62 = vadd.f32 %v2170_v19, %v2141_v36 }
 0xb1e   :  { %v2263_v24 = vpop.permute.xlu1 %2262 }
 0xb1f   :  { %v2323_v51 = vpop.permute.xlu0 %2322  ;;  %v2274_v53 = vmul.f32 %v2263_v24, %v4347_v21  ;;  %v2416_v21 = vld [vmem:[%s4423_s6 + $0x8] sm:$0xff] }
 0xb20   :  { %v2528_v50 = vpack.c.bf16 %v2416_v21, %v2415_v9 }
 0xb22   :  { %v2210_v15 = vpop.permute.xlu1 %2209  ;;  %2529 = vmatpush3.bf16.msra.mxu1 %v2528_v50 }
 0xb23   :  { %v2221_v27 = vadd.f32 %v2210_v15, %v2181_v62  ;;  %2530 = vmatprep.subr.bf16.mxu1 %v2928_v4 }
 0xb24   :  { %v2367_v31 = vpop.permute.xlu0 %2366 }
 0xb25   :  { %v2241_v5 = vadd.f32 %v2227_v42, %v2221_v27 }
 0xb26   :  { %v2283_v20 = vpop.permute.xlu1 %2282  ;;  %2532 = vmatpush3.bf16.msra.mxu1 %v2531_v33 }
 0xb27   :  { %v2249_v52 = vmul.f32 0.01, %v2241_v5  ;;  %vm2245_vm12 = vcmp.gt.f32.partialorder %v2241_v5, 0.0 }
 0xb29   :  { %v4379_v47 = vsel %vm2245_vm12, %v2241_v5, %v2249_v52 }
 0xb2a   :  { %v2297_v59 = vmul.f32 %v2283_v20, %v4379_v47  ;;  %v2337_v57 = vmul.f32 %v2323_v51, %v4379_v47  ;;  %v1990_v40 = vpop.permute.xlu1 %1989 }
 0xb2b   :  { %v1999_v38 = vadd.f32 %v1990_v40, %v1955_v6 }
 0xb2c   :  { %2305 = vrot.lane.b32.xlu0 %v2297_v59, %s2920_s19  ;;  %2345 = vrot.lane.b32.xlu1 %v2337_v57, %s2921_s20 }
 0xb2e   :  { %v2030_v10 = vpop.permute.xlu1 %2029 }
 0xb2f   :  { %v2039_v55 = vadd.f32 %v2030_v10, %v1999_v38 }
 0xb31   :  { %v2279_v17 = vadd.f32 %v2275_v61, %v2039_v55 }
 0xb32   :  { %v2371_v44 = vpop.permute.xlu1 %2370 }
 0xb3a   :  { %v1988_v30 = vpop.permute.xlu1 %1987  ;;  %v2028_v7 = vpop.permute.xlu0 %2027 }
 0xb3b   :  { %v1998_v54 = vadd.f32 %v1988_v30, %v1954_v29 }
 0xb3d   :  { %v2038_v11 = vadd.f32 %v2028_v7, %v1998_v54 }
 0xb3e   :  { %v2308_v34 = vpop.permute.xlu1 %2307  ;;  %v2310_v16 = vpop.permute.xlu0 %2309 }
 0xb3f   :  { %v2278_v18 = vadd.f32 %v2274_v53, %v2038_v11  ;;  %v2319_v58 = vadd.f32 %v2310_v16, %v2279_v17 }
 0xb41   :  { %v2318_v23 = vadd.f32 %v2308_v34, %v2278_v18 }
 0xb42   :  { %v2348_v14 = vpop.permute.xlu1 %2347  ;;  %v2350_v48 = vpop.permute.xlu0 %2349 }
 0xb43   :  { %v2358_v0 = vadd.f32 %v2348_v14, %v2318_v23  ;;  %v2359_v26 = vadd.f32 %v2350_v48, %v2319_v58 }
 0xb45   :  { %v2378_v2 = vadd.f32 %v2367_v31, %v2358_v0  ;;  %v2379_v25 = vadd.f32 %v2371_v44, %v2359_v26 }
 0xb47   :  { %2819 = vtanh.f32 %v2378_v2 }
 0xb48   :  { %2821 = vtanh.f32 %v2379_v25 }
 0xb51   :  { %v2820_v41 = vpop.eup %2819 }
 0xb52   :  { %v2822_v28 = vpop.eup %2821  ;;  %2387 = vrot.lane.b32.xlu0 %v2820_v41, %s2927_s30 }
 0xb53   :  { %v2391_v12 = vadd.f32 %v2822_v28, %v3898_v22  ;;  %v1939_v42 = vpop.permute.xlu0 %1938 }
 0xb54   :  { %v1953_v22 = vmul.f32 %v1939_v42, %v4369_v43  ;;  %v4484_v43 = vld [vmem:[#allocation9_spill] sm:$0xff] }
 0xb55   :  { %2398 = vrot.lane.b32.xlu1 %v2391_v12, %s2899_s14 }
 0xb59   :  { %2405 = vrot.lane.b32.xlu1 %v2825_v13, %s2929_s3 }
 0xb7c   :  { %v2394_v1 = vpop.permute.xlu1 %2393 }
 0xb7d   :  { %v2396_v39 = vsub.f32 %v3961_v63, %v2394_v1 }
 0xb7f   :  { %2402 = vrot.lane.b32.xlu0 %v2396_v39, %s2899_s14 }
 0xb8b   :  { %v2026_v32 = vpop.permute.xlu0 %2025 }
 0xb8d   :  { %v2259_v37 = vpop.permute.xlu1 %2258 }
 0xb8e   :  { %v2273_v19 = vmul.f32 %v2259_v37, %v4379_v47 }
 0xb91   :  { %v1986_v3 = vpop.permute.xlu1 %1985 }
 0xb92   :  { %v1997_v8 = vadd.f32 %v1986_v3, %v1953_v22 }
 0xb94   :  { %v2037_v60 = vadd.f32 %v2026_v32, %v1997_v8 }
 0xb95   :  { %v2363_v36 = vpop.permute.xlu1 %2362 }
 0xb96   :  { %v2277_v62 = vadd.f32 %v2273_v19, %v2037_v60 }
 0xb9e   :  { %v2306_v24 = vpop.permute.xlu0 %2305  ;;  %v2346_v45 = vpop.permute.xlu1 %2345 }
 0xb9f   :  { %v2317_v15 = vadd.f32 %v2306_v24, %v2277_v62 }
 0xba1   :  { %v2357_v27 = vadd.f32 %v2346_v45, %v2317_v15 }
 0xba3   :  { %v2377_v5 = vadd.f32 %v2363_v36, %v2357_v27 }
 0xba5   :  { %2823 = vtanh.f32 %v2377_v5 }
 0xbaf   :  { %v2824_v20 = vpop.eup %2823 }
 0xbb0   :  { %v2385_v59 = vadd.f32 %v2824_v20, %v4484_v43 }
 0xbc4   :  { %v2388_v63 = vpop.permute.xlu0 %2387 }
 0xbc5   :  { %v2390_v52 = vsub.f32 %v4023_v35, %v2388_v63 }
 0xbc7   :  { %v2399_v51 = vpop.permute.xlu1 %2398  ;;  %v2409_v57 = vsel %vm2408_vm14, %v2385_v59, %v2390_v52 }
 0xbc8   :  { %v2410_v40 = vsel %vm821_vm10, %v2409_v57, %v2399_v51 }
 0xbcb   :  { %v2406_v47 = vpop.permute.xlu1 %2405 }
 0xbf1   :  { %v2403_v10 = vpop.permute.xlu0 %2402 }
 0xbf2   :  { %v2412_v44 = vsel %vm2411_vm15, %v2410_v40, %v2403_v10 }
 0xbf3   :  { %v2414_v31 = vsel %vm2413_vm1, %v2412_v44, %v2406_v47 }
 0xbf4   :  { %2525 = vmatmul.mubr.msk.f32.vlgmr.msra.gmra.mrb[0].mxu1 %vm2419_vm2, %v2414_v31 }
 0xcc7   :  { %v2489_v6 = vpop.f32.mrb[0].mxu1 }
 0xcc8   :  { %2493 = vst.msk [vmem:[%s4424_s7] sm:$0xff] %vm2408_vm14, %v2489_v6  ;;  %v2526_v35 = vpop.f32.mrb[1].mxu1 }
 0xcc9   :  { %2498 = vsyncpa [#allocation3], 1 }
 0xcca   :  { %2499 = vsyncpa [#allocation5], 1 }

</bundles_post_ra>
